<compile_context>
chip_gen: v5e
topology: v5e:2x2
jax: 0.10.0
libtpu: 0.0.40
codegen_flags: <defaults>
</compile_context>

<pallas_src>
import functools
import math

import jax
import jax.numpy as jnp
import numpy as np
from jax.experimental import pallas as pl
from jax.experimental.pallas import tpu as pltpu

_HIGHEST = jax.lax.Precision.HIGHEST


# ----------------------------------------------------------------------------
# In-kernel helpers
# ----------------------------------------------------------------------------
def _erf_approx(z):
    # Abramowitz & Stegun 7.1.26, |err| < 1.5e-7 (float32-level accuracy).
    a1, a2, a3, a4, a5 = (0.254829592, -0.284496736, 1.421413741,
                          -1.453152027, 1.061405429)
    p = 0.3275911
    sgn = jnp.where(z >= 0.0, 1.0, -1.0)
    az = jnp.abs(z)
    t = 1.0 / (1.0 + p * az)
    poly = ((((a5 * t + a4) * t + a3) * t + a2) * t + a1) * t
    return sgn * (1.0 - poly * jnp.exp(-az * az))


def _gelu_exact(x):
    # Matches torch.nn.GELU() (exact, erf-based) up to ~1e-7.
    return 0.5 * x * (1.0 + _erf_approx(x * (1.0 / math.sqrt(2.0))))


def _layernorm(v, g, b, eps=1e-5):
    mu = jnp.mean(v, axis=-1, keepdims=True)
    var = jnp.mean((v - mu) * (v - mu), axis=-1, keepdims=True)
    return (v - mu) * jax.lax.rsqrt(var + eps) * g + b


# ----------------------------------------------------------------------------
# Pallas kernel: one batch element per grid step
# ----------------------------------------------------------------------------
def _swin_block_kernel(
    # SMEM scalars
    ls_ref, snr_ref,
    # blocked input
    x_ref,
    # grid-invariant parameters (resident in VMEM, single-buffered)
    w_qkv_ref, b_qkv_ref, rpb_ref, w_proj_ref, b_proj_ref,
    g1_ref, be1_ref, w_fc1_ref, b_fc1_ref, w_fc2_ref, b_fc2_ref,
    g2_ref, be2_ref, w_s1x_ref, w_s1s_ref, b_s1_ref, w_s2_ref, b_s2_ref,
    # output
    o_ref,
    # scratch
    ctx_ref,
    *, window_size, num_heads, shift_size, pass_channel):
    f32 = jnp.float32
    bf16 = jnp.bfloat16

    x = x_ref[0]                               # (L, C) -- residual shortcut
    L, C = x.shape
    ws = window_size
    hd = C // num_heads
    nW = L // ws

    # ---- (shifted) window partition: roll(-s), zero the wrapped rows ----
    if shift_size > 0:
        rolled = jnp.concatenate([x[shift_size:, :], x[:shift_size, :]], axis=0)
        row = jax.lax.broadcasted_iota(jnp.int32, (L, 1), 0)
        shifted = jnp.where(row < (L - shift_size), rolled, 0.0)
    else:
        shifted = x

    # ---- QKV: one full-slab matmul, bf16-in / f32-accumulate (fills MXU) ----
    qkv = jnp.dot(shifted.astype(bf16), w_qkv_ref[...],
                  preferred_element_type=f32) + b_qkv_ref[...]      # (L, 3C)
    q = qkv[:, 0 * C:1 * C]
    k = qkv[:, 1 * C:2 * C]
    v = qkv[:, 2 * C:3 * C]

    # ---- cosine attention, batched over windows; short static head loop ----
    for h in range(num_heads):
        sl = slice(h * hd, (h + 1) * hd)
        qh = q[:, sl].reshape(nW, ws, hd)
        kh = k[:, sl].reshape(nW, ws, hd)
        vh = v[:, sl].reshape(nW, ws, hd)
        # F.normalize(., dim=-1), eps = 1e-12  (squared -> 1e-24); rsqrt on EUP
        qn = qh * jax.lax.rsqrt(
            jnp.maximum(jnp.sum(qh * qh, axis=-1, keepdims=True), 1e-24))
        kn = kh * jax.lax.rsqrt(
            jnp.maximum(jnp.sum(kh * kh, axis=-1, keepdims=True), 1e-24))
        s = jnp.einsum("wid,wjd->wij", qn, kn,
                       precision=_HIGHEST, preferred_element_type=f32)
        s = s * ls_ref[h] + rpb_ref[h][None]                 # (nW, ws, ws)
        s = s - jnp.max(s, axis=-1, keepdims=True)
        p = jnp.exp(s)
        p = p / jnp.sum(p, axis=-1, keepdims=True)
        ctx_h = jnp.einsum("wij,wjd->wid", p, vh,
                           precision=_HIGHEST, preferred_element_type=f32)
        ctx_ref[:, sl] = ctx_h.reshape(L, hd)                # static-slice store

    # ---- output projection (full slab, bf16-in / f32-acc) ----
    y = jnp.dot(ctx_ref[...].astype(bf16), w_proj_ref[...],
                preferred_element_type=f32) + b_proj_ref[...]        # (L, C)

    # ---- reverse shift: roll(+s), zero the first s rows ----
    if shift_size > 0:
        y = jnp.concatenate([y[L - shift_size:, :], y[:L - shift_size, :]],
                            axis=0)
        row = jax.lax.broadcasted_iota(jnp.int32, (L, 1), 0)
        y = jnp.where(row >= shift_size, y, 0.0)

    # ---- residual branch 1 (post-norm) ----
    x1 = x + _layernorm(y, g1_ref[...], be1_ref[...])

    # ---- MLP + residual branch 2 (post-norm) ----
    h1 = jnp.dot(x1.astype(bf16), w_fc1_ref[...],
                 preferred_element_type=f32) + b_fc1_ref[...]
    h1 = _gelu_exact(h1)
    m = jnp.dot(h1.astype(bf16), w_fc2_ref[...],
                preferred_element_type=f32) + b_fc2_ref[...]
    x2 = x1 + _layernorm(m, g2_ref[...], be2_ref[...])

    # ---- SNR-adaptive channel gating (two tiny f32 matmuls) ----
    if pass_channel:
        xp = jnp.mean(x2, axis=0, keepdims=True)             # (1, C)  avg pool
        sh = jnp.dot(xp, w_s1x_ref[...],
                     precision=_HIGHEST, preferred_element_type=f32)
        sh = sh + snr_ref[0] * w_s1s_ref[...] + b_s1_ref[...]   # (1, Cr)
        sh = jnp.maximum(sh, 0.0)                            # ReLU
        z = jnp.dot(sh, w_s2_ref[...],
                    precision=_HIGHEST,
                    preferred_element_type=f32) + b_s2_ref[...]   # (1, C)
        a = 1.0 / (1.0 + jnp.exp(-z))                        # Sigmoid
        x2 = x2 + a * x2

    o_ref[0] = x2


# ----------------------------------------------------------------------------
# Parameter-only precompute (plain JAX glue)
# ----------------------------------------------------------------------------
def compute_relative_position_bias(p, window_size, num_heads):
    ws = window_size
    coords = jnp.arange(-(ws - 1), ws, dtype=jnp.float32)
    coords = coords / (ws - 1)                   # pretrained_window_size == 0
    coords = coords * 8.0
    coords = jnp.sign(coords) * jnp.log2(jnp.abs(coords) + 1.0) / math.log2(8.0)
    coords = coords[:, None]                     # (2*ws-1, 1)
    hidden = jax.nn.relu(
        jnp.dot(coords, p["w_cpb1"], precision=_HIGHEST) + p["b_cpb1"])
    table = jnp.dot(hidden, p["w_cpb2"], precision=_HIGHEST)
    idx = jnp.arange(ws)[:, None] - jnp.arange(ws)[None, :] + ws - 1
    rpb = table[idx.reshape(-1)].reshape(ws, ws, num_heads).transpose(2, 0, 1)
    return 16.0 * jax.nn.sigmoid(rpb)            # (nH, ws, ws)


# ----------------------------------------------------------------------------
# Wrapper
# ----------------------------------------------------------------------------
def swin_block_snr_forward(x, snr, params, *, window_size, num_heads,
                           shift_size=0, pass_channel=True):
    # x: (B, L, C), channels-last.  C should be a multiple of 128 so the
    # x / output blocks are lane-dense (unmasked vst); output has same layout.
    B, L, C = x.shape
    assert L % window_size == 0 and C % num_heads == 0
    Cr = params["w_s2"].shape[0]
    H = params["w_fc1"].shape[1]
    f32, bf16 = jnp.float32, jnp.bfloat16

    rpb = compute_relative_position_bias(params, window_size, num_heads)
    ls = jnp.exp(jnp.minimum(params["logit_scale"],
                             math.log(1.0 / 0.01))).reshape(num_heads)
    b_qkv = jnp.concatenate(
        [params["q_bias"], jnp.zeros_like(params["v_bias"]),
         params["v_bias"]]).reshape(1, 3 * C).astype(f32)
    snr_arr = jnp.full((1,), snr, f32)

    # bf16 operands for the FLOP-dominant matmuls (f32 accumulate in-kernel).
    invariant = (
        params["w_qkv"].astype(bf16), b_qkv, rpb,
        params["w_proj"].astype(bf16), params["b_proj"].reshape(1, C),
        params["g1"].reshape(1, C), params["be1"].reshape(1, C),
        params["w_fc1"].astype(bf16), params["b_fc1"].reshape(1, H),
        params["w_fc2"].astype(bf16), params["b_fc2"].reshape(1, C),
        params["g2"].reshape(1, C), params["be2"].reshape(1, C),
        params["w_s1"][:C, :],            # (C, Cr)  -- x part of snr_adap fc1
        params["w_s1"][C:, :],            # (1, Cr)  -- snr column
        params["b_s1"].reshape(1, Cr),
        params["w_s2"], params["b_s2"].reshape(1, C),
    )

    kernel = functools.partial(
        _swin_block_kernel, window_size=window_size, num_heads=num_heads,
        shift_size=shift_size, pass_channel=pass_channel)

    smem = pl.BlockSpec(memory_space=pltpu.MemorySpace.SMEM)
    vmem = pl.BlockSpec(memory_space=pltpu.MemorySpace.VMEM)
    in_specs = ([smem, smem,
                 pl.BlockSpec((1, L, C), lambda b: (b, 0, 0))]
                + [vmem] * len(invariant))

    # Explicit VMEM budget: single-buffered resident params + double-buffered
    # x/out blocks + headroom for the (L,3C)/(L,4C) f32 intermediates.
    inv_bytes = sum(int(np.prod(a.shape)) * a.dtype.itemsize for a in invariant)
    io_bytes = 4 * L * C * 4
    vmem_limit = int(min(64 * 2**20,
                         max(32 * 2**20, inv_bytes + io_bytes + 16 * 2**20)))

    return pl.pallas_call(
        kernel,
        grid=(B,),
        in_specs=in_specs,
        out_specs=pl.BlockSpec((1, L, C), lambda b: (b, 0, 0)),
        out_shape=jax.ShapeDtypeStruct((B, L, C), f32),
        scratch_shapes=[pltpu.VMEM((L, C), f32)],
        compiler_params=pltpu.CompilerParams(
            dimension_semantics=("parallel",),
            vmem_limit_bytes=vmem_limit),
    )(ls, snr_arr, x, *invariant)


# ----------------------------------------------------------------------------
# Pure-JAX reference (mirrors the PyTorch forward, eval mode).
# matmul_dtype=jnp.bfloat16 mirrors the kernel's bf16-in / f32-acc policy for
# the qkv / proj / fc1 / fc2 matmuls (tight check); matmul_dtype=None is the
# full-f32 ground truth (coarse check of the precision policy).
# ----------------------------------------------------------------------------
def reference_forward(x, snr, p, *, window_size, num_heads, shift_size,
                      pass_channel, matmul_dtype=None):
    B, L, C = x.shape
    ws, nH = window_size, num_heads
    hd = C // nH
    f32 = jnp.float32

    def mm_cast(t):
        return t if matmul_dtype is None else t.astype(matmul_dtype)

    shortcut = x
    if shift_size > 0:
        sx = jnp.roll(x, -shift_size, axis=1)
        sx = sx.at[:, L - shift_size:].set(0.0)
    else:
        sx = x
    xw = sx.reshape(B * (L // ws), ws, C)
    qkv_bias = jnp.concatenate(
        [p["q_bias"], jnp.zeros_like(p["v_bias"]), p["v_bias"]])
    qkv = jnp.dot(mm_cast(xw), mm_cast(p["w_qkv"]),
                  preferred_element_type=f32) + qkv_bias
    B_ = xw.shape[0]
    qkv = qkv.reshape(B_, ws, 3, nH, hd).transpose(2, 0, 3, 1, 4)
    q, k, v = qkv[0], qkv[1], qkv[2]
    qn = q / jnp.maximum(jnp.sqrt((q * q).sum(-1, keepdims=True)), 1e-12)
    kn = k / jnp.maximum(jnp.sqrt((k * k).sum(-1, keepdims=True)), 1e-12)
    attn = qn @ jnp.swapaxes(kn, -1, -2)
    ls = jnp.exp(jnp.minimum(p["logit_scale"], math.log(1.0 / 0.01)))
    attn = attn * ls[None]
    rpb = compute_relative_position_bias(p, ws, nH)
    attn = attn + rpb[None]
    attn = jax.nn.softmax(attn, axis=-1)
    out = (attn @ v).transpose(0, 2, 1, 3).reshape(B_, ws, C)
    out = jnp.dot(mm_cast(out), mm_cast(p["w_proj"]),
                  preferred_element_type=f32) + p["b_proj"]
    out = out.reshape(B, L, C)
    if shift_size > 0:
        out = jnp.roll(out, shift_size, axis=1)
        out = out.at[:, :shift_size].set(0.0)

    def ln(v_, g, b):
        mu = v_.mean(-1, keepdims=True)
        var = ((v_ - mu) ** 2).mean(-1, keepdims=True)
        return (v_ - mu) / jnp.sqrt(var + 1e-5) * g + b

    x1 = shortcut + ln(out, p["g1"], p["be1"])
    h = jax.nn.gelu(jnp.dot(mm_cast(x1), mm_cast(p["w_fc1"]),
                            preferred_element_type=f32) + p["b_fc1"],
                    approximate=False)
    m = jnp.dot(mm_cast(h), mm_cast(p["w_fc2"]),
                preferred_element_type=f32) + p["b_fc2"]
    x2 = x1 + ln(m, p["g2"], p["be2"])
    if pass_channel:
        xp = x2.mean(axis=1, keepdims=True)                      # (B, 1, C)
        cat = jnp.concatenate([xp, jnp.full((B, 1, 1), snr, x.dtype)], axis=-1)
        s = jax.nn.relu(cat @ p["w_s1"] + p["b_s1"])
        a = jax.nn.sigmoid(s @ p["w_s2"] + p["b_s2"])
        x2 = x2 + a * x2
    return x2


# ----------------------------------------------------------------------------
# Deterministic parameter init
# ----------------------------------------------------------------------------
def init_params(key, C, num_heads, mlp_hidden):
    ks = jax.random.split(key, 20)
    nrm = lambda k, s, sc=0.02: sc * jax.random.normal(k, s, dtype=jnp.float32)
    return dict(
        w_qkv=nrm(ks[0], (C, 3 * C)),
        q_bias=nrm(ks[1], (C,)),
        v_bias=nrm(ks[2], (C,)),
        logit_scale=jnp.full((num_heads, 1, 1), math.log(10.0), jnp.float32),
        w_cpb1=nrm(ks[3], (1, 512)),
        b_cpb1=nrm(ks[4], (512,)),
        w_cpb2=nrm(ks[5], (512, num_heads)),
        w_proj=nrm(ks[6], (C, C)),
        b_proj=nrm(ks[7], (C,)),
        g1=1.0 + nrm(ks[8], (C,), 0.1),
        be1=nrm(ks[9], (C,), 0.1),
        w_fc1=nrm(ks[10], (C, mlp_hidden)),
        b_fc1=nrm(ks[11], (mlp_hidden,)),
        w_fc2=nrm(ks[12], (mlp_hidden, C)),
        b_fc2=nrm(ks[13], (C,)),
        g2=1.0 + nrm(ks[14], (C,), 0.1),
        be2=nrm(ks[15], (C,), 0.1),
        w_s1=nrm(ks[16], (C + 1, C // 16)),
        b_s1=nrm(ks[17], (C // 16,)),
        w_s2=nrm(ks[18], (C // 16, C)),
        b_s2=nrm(ks[19], (C,)),
    )


if __name__ == "__main__":
    key = jax.random.PRNGKey(0)
    # C = 128 keeps every VMEM block lane-dense (last dim a multiple of 128)
    # while staying small (x is only 2*16*128 floats).
    B, L, C = 2, 16, 128
    num_heads, window_size = 4, 8
    mlp_hidden = int(C * 4.0)
    snr = 5.0

    kp, kx = jax.random.split(key)
    params = init_params(kp, C, num_heads, mlp_hidden)
    x = jax.random.normal(kx, (B, L, C), dtype=jnp.float32)

    for shift_size in (0, 2):   # exercise both W-MSA and SW-MSA paths
        out = swin_block_snr_forward(
            x, snr, params, window_size=window_size, num_heads=num_heads,
            shift_size=shift_size, pass_channel=True)
        out = jax.block_until_ready(out)

        with jax.default_matmul_precision("float32"):
            ref_bf16 = reference_forward(
                x, snr, params, window_size=window_size, num_heads=num_heads,
                shift_size=shift_size, pass_channel=True,
                matmul_dtype=jnp.bfloat16)
            ref_f32 = reference_forward(
                x, snr, params, window_size=window_size, num_heads=num_heads,
                shift_size=shift_size, pass_channel=True, matmul_dtype=None)
        ref_bf16 = jax.block_until_ready(ref_bf16)
        ref_f32 = jax.block_until_ready(ref_f32)

        # Tight check vs the precision-matched reference (implementation).
        np.testing.assert_allclose(np.asarray(out), np.asarray(ref_bf16),
                                   rtol=2e-3, atol=2e-3)
        # Coarse sanity check of the bf16-in/f32-acc policy vs pure f32
        # (the two post-norm LayerNorms amplify matmul rounding by ~1/sigma).
        np.testing.assert_allclose(np.asarray(out), np.asarray(ref_f32),
                                   rtol=1e-1, atol=1e-1)

    print("KERNEL_OK")
</pallas_src>

<mosaic_0001>
module attributes {stable_mosaic.version = 11 : i64} {
  func.func @_swin_block_kernel(%arg0: i32, %arg1: memref<4xf32, #tpu.memory_space<smem>>, %arg2: memref<1xf32, #tpu.memory_space<smem>>, %arg3: memref<1x16x128xf32, #tpu.memory_space<vmem>>, %arg4: memref<128x384xbf16, #tpu.memory_space<vmem>>, %arg5: memref<1x384xf32, #tpu.memory_space<vmem>>, %arg6: memref<4x8x8xf32, #tpu.memory_space<vmem>>, %arg7: memref<128x128xbf16, #tpu.memory_space<vmem>>, %arg8: memref<1x128xf32, #tpu.memory_space<vmem>>, %arg9: memref<1x128xf32, #tpu.memory_space<vmem>>, %arg10: memref<1x128xf32, #tpu.memory_space<vmem>>, %arg11: memref<128x512xbf16, #tpu.memory_space<vmem>>, %arg12: memref<1x512xf32, #tpu.memory_space<vmem>>, %arg13: memref<512x128xbf16, #tpu.memory_space<vmem>>, %arg14: memref<1x128xf32, #tpu.memory_space<vmem>>, %arg15: memref<1x128xf32, #tpu.memory_space<vmem>>, %arg16: memref<1x128xf32, #tpu.memory_space<vmem>>, %arg17: memref<128x8xf32, #tpu.memory_space<vmem>>, %arg18: memref<1x8xf32, #tpu.memory_space<vmem>>, %arg19: memref<1x8xf32, #tpu.memory_space<vmem>>, %arg20: memref<8x128xf32, #tpu.memory_space<vmem>>, %arg21: memref<1x128xf32, #tpu.memory_space<vmem>>, %arg22: memref<1x16x128xf32, #tpu.memory_space<vmem>>, %arg23: memref<16x128xf32, #tpu.memory_space<vmem>>) attributes {dimension_semantics = [#tpu.dimension_semantics<parallel>], iteration_bounds = array<i64: 2>, scalar_prefetch = 0 : i64, scratch_operands = 1 : i64, tpu.core_type = #tpu.core_type<tc>, window_params = [{transform_indices = @transform_0, window_bounds = array<i64: 4>}, {transform_indices = @transform_1, window_bounds = array<i64: 1>}, {transform_indices = @transform_2, window_bounds = array<i64: 1, 16, 128>}, {pipeline_mode = #tpu.pipeline_mode<synchronous>, transform_indices = @transform_3, window_bounds = array<i64: 128, 384>}, {pipeline_mode = #tpu.pipeline_mode<synchronous>, transform_indices = @transform_4, window_bounds = array<i64: 1, 384>}, {pipeline_mode = #tpu.pipeline_mode<synchronous>, transform_indices = @transform_5, window_bounds = array<i64: 4, 8, 8>}, {pipeline_mode = #tpu.pipeline_mode<synchronous>, transform_indices = @transform_6, window_bounds = array<i64: 128, 128>}, {pipeline_mode = #tpu.pipeline_mode<synchronous>, transform_indices = @transform_7, window_bounds = array<i64: 1, 128>}, {pipeline_mode = #tpu.pipeline_mode<synchronous>, transform_indices = @transform_8, window_bounds = array<i64: 1, 128>}, {pipeline_mode = #tpu.pipeline_mode<synchronous>, transform_indices = @transform_9, window_bounds = array<i64: 1, 128>}, {pipeline_mode = #tpu.pipeline_mode<synchronous>, transform_indices = @transform_10, window_bounds = array<i64: 128, 512>}, {pipeline_mode = #tpu.pipeline_mode<synchronous>, transform_indices = @transform_11, window_bounds = array<i64: 1, 512>}, {pipeline_mode = #tpu.pipeline_mode<synchronous>, transform_indices = @transform_12, window_bounds = array<i64: 512, 128>}, {pipeline_mode = #tpu.pipeline_mode<synchronous>, transform_indices = @transform_13, window_bounds = array<i64: 1, 128>}, {pipeline_mode = #tpu.pipeline_mode<synchronous>, transform_indices = @transform_14, window_bounds = array<i64: 1, 128>}, {pipeline_mode = #tpu.pipeline_mode<synchronous>, transform_indices = @transform_15, window_bounds = array<i64: 1, 128>}, {pipeline_mode = #tpu.pipeline_mode<synchronous>, transform_indices = @transform_16, window_bounds = array<i64: 128, 8>}, {pipeline_mode = #tpu.pipeline_mode<synchronous>, transform_indices = @transform_17, window_bounds = array<i64: 1, 8>}, {pipeline_mode = #tpu.pipeline_mode<synchronous>, transform_indices = @transform_18, window_bounds = array<i64: 1, 8>}, {pipeline_mode = #tpu.pipeline_mode<synchronous>, transform_indices = @transform_19, window_bounds = array<i64: 8, 128>}, {pipeline_mode = #tpu.pipeline_mode<synchronous>, transform_indices = @transform_20, window_bounds = array<i64: 1, 128>}, {transform_indices = @transform_21, window_bounds = array<i64: 1, 16, 128>}]} {
    %c0 = arith.constant 0 : index
    %c0_0 = arith.constant 0 : index
    %c0_1 = arith.constant 0 : index
    %0 = vector.load %arg3[%c0, %c0_0, %c0_1] : memref<1x16x128xf32, #tpu.memory_space<vmem>>, vector<1x16x128xf32>
    %1 = vector.shape_cast %0 : vector<1x16x128xf32> to vector<16x128xf32>
    %2 = arith.truncf %1 : vector<16x128xf32> to vector<16x128xbf16>
    %c0_2 = arith.constant 0 : index
    %c0_3 = arith.constant 0 : index
    %3 = vector.load %arg4[%c0_2, %c0_3] : memref<128x384xbf16, #tpu.memory_space<vmem>>, vector<128x384xbf16>
    %cst = arith.constant dense<0.000000e+00> : vector<16x384xf32>
    %4 = tpu.matmul %2, %3, %cst {dimension_numbers = #tpu.dot_dimension_numbers<[1], [0], [0], [1], [0, 0, 1, 1], [], []>} : vector<16x128xbf16>, vector<128x384xbf16>, vector<16x384xf32> -> vector<16x384xf32>
    %c0_4 = arith.constant 0 : index
    %c0_5 = arith.constant 0 : index
    %5 = vector.load %arg5[%c0_4, %c0_5] : memref<1x384xf32, #tpu.memory_space<vmem>>, vector<1x384xf32>
    %6 = vector.broadcast %5 : vector<1x384xf32> to vector<16x384xf32>
    %7 = arith.addf %4, %6 : vector<16x384xf32>
    %8 = vector.extract_strided_slice %7 {offsets = [0, 0], sizes = [16, 128], strides = [1, 1]} : vector<16x384xf32> to vector<16x128xf32>
    %9 = vector.extract_strided_slice %7 {offsets = [0, 128], sizes = [16, 128], strides = [1, 1]} : vector<16x384xf32> to vector<16x128xf32>
    %10 = vector.extract_strided_slice %7 {offsets = [0, 256], sizes = [16, 128], strides = [1, 1]} : vector<16x384xf32> to vector<16x128xf32>
    %11 = vector.extract_strided_slice %8 {offsets = [0, 0], sizes = [16, 32], strides = [1, 1]} : vector<16x128xf32> to vector<16x32xf32>
    %12 = vector.shape_cast %11 : vector<16x32xf32> to vector<2x8x32xf32>
    %13 = vector.extract_strided_slice %9 {offsets = [0, 0], sizes = [16, 32], strides = [1, 1]} : vector<16x128xf32> to vector<16x32xf32>
    %14 = vector.shape_cast %13 : vector<16x32xf32> to vector<2x8x32xf32>
    %15 = vector.extract_strided_slice %10 {offsets = [0, 0], sizes = [16, 32], strides = [1, 1]} : vector<16x128xf32> to vector<16x32xf32>
    %16 = vector.shape_cast %15 : vector<16x32xf32> to vector<2x8x32xf32>
    %17 = arith.mulf %12, %12 : vector<2x8x32xf32>
    %cst_6 = arith.constant dense<0.000000e+00> : vector<2x8xf32>
    %18 = vector.multi_reduction <add>, %17, %cst_6 [2] : vector<2x8x32xf32> to vector<2x8xf32>
    %19 = vector.shape_cast %18 : vector<2x8xf32> to vector<2x8x1xf32>
    %cst_7 = arith.constant 1.000000e-24 : f32
    %20 = vector.broadcast %cst_7 : f32 to vector<2x8x1xf32>
    %21 = arith.maximumf %19, %20 : vector<2x8x1xf32>
    %22 = math.rsqrt %21 : vector<2x8x1xf32>
    %23 = vector.broadcast %22 : vector<2x8x1xf32> to vector<2x8x32xf32>
    %24 = arith.mulf %12, %23 : vector<2x8x32xf32>
    %25 = arith.mulf %14, %14 : vector<2x8x32xf32>
    %cst_8 = arith.constant dense<0.000000e+00> : vector<2x8xf32>
    %26 = vector.multi_reduction <add>, %25, %cst_8 [2] : vector<2x8x32xf32> to vector<2x8xf32>
    %27 = vector.shape_cast %26 : vector<2x8xf32> to vector<2x8x1xf32>
    %cst_9 = arith.constant 1.000000e-24 : f32
    %28 = vector.broadcast %cst_9 : f32 to vector<2x8x1xf32>
    %29 = arith.maximumf %27, %28 : vector<2x8x1xf32>
    %30 = math.rsqrt %29 : vector<2x8x1xf32>
    %31 = vector.broadcast %30 : vector<2x8x1xf32> to vector<2x8x32xf32>
    %32 = arith.mulf %14, %31 : vector<2x8x32xf32>
    "tpu.trace_start"() <{level = 10 : i32, message = "wid,wjd->wij"}> : () -> ()
    %cst_10 = arith.constant dense<0.000000e+00> : vector<2x8x8xf32>
    %33 = tpu.matmul %24, %32, %cst_10 {dimension_numbers = #tpu.dot_dimension_numbers<[2], [2], [1], [1], [0, 0, 0, 1, 1, 1], [0], [0]>, precision = #tpu.contract_precision<fp32>} : vector<2x8x32xf32>, vector<2x8x32xf32>, vector<2x8x8xf32> -> vector<2x8x8xf32>
    "tpu.trace_stop"() : () -> ()
    %c0_11 = arith.constant 0 : index
    %34 = memref.load %arg1[%c0_11] : memref<4xf32, #tpu.memory_space<smem>>
    %35 = vector.broadcast %34 : f32 to vector<2x8x8xf32>
    %36 = arith.mulf %33, %35 : vector<2x8x8xf32>
    %c0_12 = arith.constant 0 : index
    %c0_13 = arith.constant 0 : index
    %c0_14 = arith.constant 0 : index
    %37 = vector.load %arg6[%c0_12, %c0_13, %c0_14] : memref<4x8x8xf32, #tpu.memory_space<vmem>>, vector<1x8x8xf32>
    %38 = vector.shape_cast %37 : vector<1x8x8xf32> to vector<8x8xf32>
    %39 = vector.shape_cast %38 : vector<8x8xf32> to vector<1x8x8xf32>
    %40 = vector.broadcast %39 : vector<1x8x8xf32> to vector<2x8x8xf32>
    %41 = arith.addf %36, %40 : vector<2x8x8xf32>
    %cst_15 = arith.constant dense<0xFF800000> : vector<2x8xf32>
    %42 = vector.multi_reduction <maximumf>, %41, %cst_15 [2] : vector<2x8x8xf32> to vector<2x8xf32>
    %43 = vector.shape_cast %42 : vector<2x8xf32> to vector<2x8x1xf32>
    %44 = vector.broadcast %43 : vector<2x8x1xf32> to vector<2x8x8xf32>
    %45 = arith.subf %41, %44 : vector<2x8x8xf32>
    %46 = math.exp %45 : vector<2x8x8xf32>
    %cst_16 = arith.constant dense<0.000000e+00> : vector<2x8xf32>
    %47 = vector.multi_reduction <add>, %46, %cst_16 [2] : vector<2x8x8xf32> to vector<2x8xf32>
    %48 = vector.shape_cast %47 : vector<2x8xf32> to vector<2x8x1xf32>
    %49 = vector.broadcast %48 : vector<2x8x1xf32> to vector<2x8x8xf32>
    %50 = arith.divf %46, %49 : vector<2x8x8xf32>
    "tpu.trace_start"() <{level = 10 : i32, message = "wij,wjd->wid"}> : () -> ()
    %cst_17 = arith.constant dense<0.000000e+00> : vector<2x8x32xf32>
    %51 = tpu.matmul %50, %16, %cst_17 {dimension_numbers = #tpu.dot_dimension_numbers<[2], [1], [1], [2], [0, 0, 0, 1, 1, 2], [0], [0]>, precision = #tpu.contract_precision<fp32>} : vector<2x8x8xf32>, vector<2x8x32xf32>, vector<2x8x32xf32> -> vector<2x8x32xf32>
    "tpu.trace_stop"() : () -> ()
    %52 = vector.shape_cast %51 : vector<2x8x32xf32> to vector<16x32xf32>
    %c0_18 = arith.constant 0 : index
    %c0_19 = arith.constant 0 : index
    %53 = vector.load %arg23[%c0_18, %c0_19] : memref<16x128xf32, #tpu.memory_space<vmem>>, vector<16x32xf32>
    tpu.vector_store %arg23[%c0_18, %c0_19], %52 {strides = array<i32>} : memref<16x128xf32, #tpu.memory_space<vmem>>, vector<16x32xf32>,
    %54 = vector.extract_strided_slice %8 {offsets = [0, 32], sizes = [16, 32], strides = [1, 1]} : vector<16x128xf32> to vector<16x32xf32>
    %55 = vector.shape_cast %54 : vector<16x32xf32> to vector<2x8x32xf32>
    %56 = vector.extract_strided_slice %9 {offsets = [0, 32], sizes = [16, 32], strides = [1, 1]} : vector<16x128xf32> to vector<16x32xf32>
    %57 = vector.shape_cast %56 : vector<16x32xf32> to vector<2x8x32xf32>
    %58 = vector.extract_strided_slice %10 {offsets = [0, 32], sizes = [16, 32], strides = [1, 1]} : vector<16x128xf32> to vector<16x32xf32>
    %59 = vector.shape_cast %58 : vector<16x32xf32> to vector<2x8x32xf32>
    %60 = arith.mulf %55, %55 : vector<2x8x32xf32>
    %cst_20 = arith.constant dense<0.000000e+00> : vector<2x8xf32>
    %61 = vector.multi_reduction <add>, %60, %cst_20 [2] : vector<2x8x32xf32> to vector<2x8xf32>
    %62 = vector.shape_cast %61 : vector<2x8xf32> to vector<2x8x1xf32>
    %cst_21 = arith.constant 1.000000e-24 : f32
    %63 = vector.broadcast %cst_21 : f32 to vector<2x8x1xf32>
    %64 = arith.maximumf %62, %63 : vector<2x8x1xf32>
    %65 = math.rsqrt %64 : vector<2x8x1xf32>
    %66 = vector.broadcast %65 : vector<2x8x1xf32> to vector<2x8x32xf32>
    %67 = arith.mulf %55, %66 : vector<2x8x32xf32>
    %68 = arith.mulf %57, %57 : vector<2x8x32xf32>
    %cst_22 = arith.constant dense<0.000000e+00> : vector<2x8xf32>
    %69 = vector.multi_reduction <add>, %68, %cst_22 [2] : vector<2x8x32xf32> to vector<2x8xf32>
    %70 = vector.shape_cast %69 : vector<2x8xf32> to vector<2x8x1xf32>
    %cst_23 = arith.constant 1.000000e-24 : f32
    %71 = vector.broadcast %cst_23 : f32 to vector<2x8x1xf32>
    %72 = arith.maximumf %70, %71 : vector<2x8x1xf32>
    %73 = math.rsqrt %72 : vector<2x8x1xf32>
    %74 = vector.broadcast %73 : vector<2x8x1xf32> to vector<2x8x32xf32>
    %75 = arith.mulf %57, %74 : vector<2x8x32xf32>
    "tpu.trace_start"() <{level = 10 : i32, message = "wid,wjd->wij"}> : () -> ()
    %cst_24 = arith.constant dense<0.000000e+00> : vector<2x8x8xf32>
    %76 = tpu.matmul %67, %75, %cst_24 {dimension_numbers = #tpu.dot_dimension_numbers<[2], [2], [1], [1], [0, 0, 0, 1, 1, 1], [0], [0]>, precision = #tpu.contract_precision<fp32>} : vector<2x8x32xf32>, vector<2x8x32xf32>, vector<2x8x8xf32> -> vector<2x8x8xf32>
    "tpu.trace_stop"() : () -> ()
    %c1 = arith.constant 1 : index
    %77 = memref.load %arg1[%c1] : memref<4xf32, #tpu.memory_space<smem>>
    %78 = vector.broadcast %77 : f32 to vector<2x8x8xf32>
    %79 = arith.mulf %76, %78 : vector<2x8x8xf32>
    %c1_25 = arith.constant 1 : index
    %c0_26 = arith.constant 0 : index
    %c0_27 = arith.constant 0 : index
    %80 = vector.load %arg6[%c1_25, %c0_26, %c0_27] : memref<4x8x8xf32, #tpu.memory_space<vmem>>, vector<1x8x8xf32>
    %81 = vector.shape_cast %80 : vector<1x8x8xf32> to vector<8x8xf32>
    %82 = vector.shape_cast %81 : vector<8x8xf32> to vector<1x8x8xf32>
    %83 = vector.broadcast %82 : vector<1x8x8xf32> to vector<2x8x8xf32>
    %84 = arith.addf %79, %83 : vector<2x8x8xf32>
    %cst_28 = arith.constant dense<0xFF800000> : vector<2x8xf32>
    %85 = vector.multi_reduction <maximumf>, %84, %cst_28 [2] : vector<2x8x8xf32> to vector<2x8xf32>
    %86 = vector.shape_cast %85 : vector<2x8xf32> to vector<2x8x1xf32>
    %87 = vector.broadcast %86 : vector<2x8x1xf32> to vector<2x8x8xf32>
    %88 = arith.subf %84, %87 : vector<2x8x8xf32>
    %89 = math.exp %88 : vector<2x8x8xf32>
    %cst_29 = arith.constant dense<0.000000e+00> : vector<2x8xf32>
    %90 = vector.multi_reduction <add>, %89, %cst_29 [2] : vector<2x8x8xf32> to vector<2x8xf32>
    %91 = vector.shape_cast %90 : vector<2x8xf32> to vector<2x8x1xf32>
    %92 = vector.broadcast %91 : vector<2x8x1xf32> to vector<2x8x8xf32>
    %93 = arith.divf %89, %92 : vector<2x8x8xf32>
    "tpu.trace_start"() <{level = 10 : i32, message = "wij,wjd->wid"}> : () -> ()
    %cst_30 = arith.constant dense<0.000000e+00> : vector<2x8x32xf32>
    %94 = tpu.matmul %93, %59, %cst_30 {dimension_numbers = #tpu.dot_dimension_numbers<[2], [1], [1], [2], [0, 0, 0, 1, 1, 2], [0], [0]>, precision = #tpu.contract_precision<fp32>} : vector<2x8x8xf32>, vector<2x8x32xf32>, vector<2x8x32xf32> -> vector<2x8x32xf32>
    "tpu.trace_stop"() : () -> ()
    %95 = vector.shape_cast %94 : vector<2x8x32xf32> to vector<16x32xf32>
    %c0_31 = arith.constant 0 : index
    %c32 = arith.constant 32 : index
    %96 = vector.load %arg23[%c0_31, %c32] : memref<16x128xf32, #tpu.memory_space<vmem>>, vector<16x32xf32>
    tpu.vector_store %arg23[%c0_31, %c32], %95 {strides = array<i32>} : memref<16x128xf32, #tpu.memory_space<vmem>>, vector<16x32xf32>,
    %97 = vector.extract_strided_slice %8 {offsets = [0, 64], sizes = [16, 32], strides = [1, 1]} : vector<16x128xf32> to vector<16x32xf32>
    %98 = vector.shape_cast %97 : vector<16x32xf32> to vector<2x8x32xf32>
    %99 = vector.extract_strided_slice %9 {offsets = [0, 64], sizes = [16, 32], strides = [1, 1]} : vector<16x128xf32> to vector<16x32xf32>
    %100 = vector.shape_cast %99 : vector<16x32xf32> to vector<2x8x32xf32>
    %101 = vector.extract_strided_slice %10 {offsets = [0, 64], sizes = [16, 32], strides = [1, 1]} : vector<16x128xf32> to vector<16x32xf32>
    %102 = vector.shape_cast %101 : vector<16x32xf32> to vector<2x8x32xf32>
    %103 = arith.mulf %98, %98 : vector<2x8x32xf32>
    %cst_32 = arith.constant dense<0.000000e+00> : vector<2x8xf32>
    %104 = vector.multi_reduction <add>, %103, %cst_32 [2] : vector<2x8x32xf32> to vector<2x8xf32>
    %105 = vector.shape_cast %104 : vector<2x8xf32> to vector<2x8x1xf32>
    %cst_33 = arith.constant 1.000000e-24 : f32
    %106 = vector.broadcast %cst_33 : f32 to vector<2x8x1xf32>
    %107 = arith.maximumf %105, %106 : vector<2x8x1xf32>
    %108 = math.rsqrt %107 : vector<2x8x1xf32>
    %109 = vector.broadcast %108 : vector<2x8x1xf32> to vector<2x8x32xf32>
    %110 = arith.mulf %98, %109 : vector<2x8x32xf32>
    %111 = arith.mulf %100, %100 : vector<2x8x32xf32>
    %cst_34 = arith.constant dense<0.000000e+00> : vector<2x8xf32>
    %112 = vector.multi_reduction <add>, %111, %cst_34 [2] : vector<2x8x32xf32> to vector<2x8xf32>
    %113 = vector.shape_cast %112 : vector<2x8xf32> to vector<2x8x1xf32>
    %cst_35 = arith.constant 1.000000e-24 : f32
    %114 = vector.broadcast %cst_35 : f32 to vector<2x8x1xf32>
    %115 = arith.maximumf %113, %114 : vector<2x8x1xf32>
    %116 = math.rsqrt %115 : vector<2x8x1xf32>
    %117 = vector.broadcast %116 : vector<2x8x1xf32> to vector<2x8x32xf32>
    %118 = arith.mulf %100, %117 : vector<2x8x32xf32>
    "tpu.trace_start"() <{level = 10 : i32, message = "wid,wjd->wij"}> : () -> ()
    %cst_36 = arith.constant dense<0.000000e+00> : vector<2x8x8xf32>
    %119 = tpu.matmul %110, %118, %cst_36 {dimension_numbers = #tpu.dot_dimension_numbers<[2], [2], [1], [1], [0, 0, 0, 1, 1, 1], [0], [0]>, precision = #tpu.contract_precision<fp32>} : vector<2x8x32xf32>, vector<2x8x32xf32>, vector<2x8x8xf32> -> vector<2x8x8xf32>
    "tpu.trace_stop"() : () -> ()
    %c2 = arith.constant 2 : index
    %120 = memref.load %arg1[%c2] : memref<4xf32, #tpu.memory_space<smem>>
    %121 = vector.broadcast %120 : f32 to vector<2x8x8xf32>
    %122 = arith.mulf %119, %121 : vector<2x8x8xf32>
    %c2_37 = arith.constant 2 : index
    %c0_38 = arith.constant 0 : index
    %c0_39 = arith.constant 0 : index
    %123 = vector.load %arg6[%c2_37, %c0_38, %c0_39] : memref<4x8x8xf32, #tpu.memory_space<vmem>>, vector<1x8x8xf32>
    %124 = vector.shape_cast %123 : vector<1x8x8xf32> to vector<8x8xf32>
    %125 = vector.shape_cast %124 : vector<8x8xf32> to vector<1x8x8xf32>
    %126 = vector.broadcast %125 : vector<1x8x8xf32> to vector<2x8x8xf32>
    %127 = arith.addf %122, %126 : vector<2x8x8xf32>
    %cst_40 = arith.constant dense<0xFF800000> : vector<2x8xf32>
    %128 = vector.multi_reduction <maximumf>, %127, %cst_40 [2] : vector<2x8x8xf32> to vector<2x8xf32>
    %129 = vector.shape_cast %128 : vector<2x8xf32> to vector<2x8x1xf32>
    %130 = vector.broadcast %129 : vector<2x8x1xf32> to vector<2x8x8xf32>
    %131 = arith.subf %127, %130 : vector<2x8x8xf32>
    %132 = math.exp %131 : vector<2x8x8xf32>
    %cst_41 = arith.constant dense<0.000000e+00> : vector<2x8xf32>
    %133 = vector.multi_reduction <add>, %132, %cst_41 [2] : vector<2x8x8xf32> to vector<2x8xf32>
    %134 = vector.shape_cast %133 : vector<2x8xf32> to vector<2x8x1xf32>
    %135 = vector.broadcast %134 : vector<2x8x1xf32> to vector<2x8x8xf32>
    %136 = arith.divf %132, %135 : vector<2x8x8xf32>
    "tpu.trace_start"() <{level = 10 : i32, message = "wij,wjd->wid"}> : () -> ()
    %cst_42 = arith.constant dense<0.000000e+00> : vector<2x8x32xf32>
    %137 = tpu.matmul %136, %102, %cst_42 {dimension_numbers = #tpu.dot_dimension_numbers<[2], [1], [1], [2], [0, 0, 0, 1, 1, 2], [0], [0]>, precision = #tpu.contract_precision<fp32>} : vector<2x8x8xf32>, vector<2x8x32xf32>, vector<2x8x32xf32> -> vector<2x8x32xf32>
    "tpu.trace_stop"() : () -> ()
    %138 = vector.shape_cast %137 : vector<2x8x32xf32> to vector<16x32xf32>
    %c0_43 = arith.constant 0 : index
    %c64 = arith.constant 64 : index
    %139 = vector.load %arg23[%c0_43, %c64] : memref<16x128xf32, #tpu.memory_space<vmem>>, vector<16x32xf32>
    tpu.vector_store %arg23[%c0_43, %c64], %138 {strides = array<i32>} : memref<16x128xf32, #tpu.memory_space<vmem>>, vector<16x32xf32>,
    %140 = vector.extract_strided_slice %8 {offsets = [0, 96], sizes = [16, 32], strides = [1, 1]} : vector<16x128xf32> to vector<16x32xf32>
    %141 = vector.shape_cast %140 : vector<16x32xf32> to vector<2x8x32xf32>
    %142 = vector.extract_strided_slice %9 {offsets = [0, 96], sizes = [16, 32], strides = [1, 1]} : vector<16x128xf32> to vector<16x32xf32>
    %143 = vector.shape_cast %142 : vector<16x32xf32> to vector<2x8x32xf32>
    %144 = vector.extract_strided_slice %10 {offsets = [0, 96], sizes = [16, 32], strides = [1, 1]} : vector<16x128xf32> to vector<16x32xf32>
    %145 = vector.shape_cast %144 : vector<16x32xf32> to vector<2x8x32xf32>
    %146 = arith.mulf %141, %141 : vector<2x8x32xf32>
    %cst_44 = arith.constant dense<0.000000e+00> : vector<2x8xf32>
    %147 = vector.multi_reduction <add>, %146, %cst_44 [2] : vector<2x8x32xf32> to vector<2x8xf32>
    %148 = vector.shape_cast %147 : vector<2x8xf32> to vector<2x8x1xf32>
    %cst_45 = arith.constant 1.000000e-24 : f32
    %149 = vector.broadcast %cst_45 : f32 to vector<2x8x1xf32>
    %150 = arith.maximumf %148, %149 : vector<2x8x1xf32>
    %151 = math.rsqrt %150 : vector<2x8x1xf32>
    %152 = vector.broadcast %151 : vector<2x8x1xf32> to vector<2x8x32xf32>
    %153 = arith.mulf %141, %152 : vector<2x8x32xf32>
    %154 = arith.mulf %143, %143 : vector<2x8x32xf32>
    %cst_46 = arith.constant dense<0.000000e+00> : vector<2x8xf32>
    %155 = vector.multi_reduction <add>, %154, %cst_46 [2] : vector<2x8x32xf32> to vector<2x8xf32>
    %156 = vector.shape_cast %155 : vector<2x8xf32> to vector<2x8x1xf32>
    %cst_47 = arith.constant 1.000000e-24 : f32
    %157 = vector.broadcast %cst_47 : f32 to vector<2x8x1xf32>
    %158 = arith.maximumf %156, %157 : vector<2x8x1xf32>
    %159 = math.rsqrt %158 : vector<2x8x1xf32>
    %160 = vector.broadcast %159 : vector<2x8x1xf32> to vector<2x8x32xf32>
    %161 = arith.mulf %143, %160 : vector<2x8x32xf32>
    "tpu.trace_start"() <{level = 10 : i32, message = "wid,wjd->wij"}> : () -> ()
    %cst_48 = arith.constant dense<0.000000e+00> : vector<2x8x8xf32>
    %162 = tpu.matmul %153, %161, %cst_48 {dimension_numbers = #tpu.dot_dimension_numbers<[2], [2], [1], [1], [0, 0, 0, 1, 1, 1], [0], [0]>, precision = #tpu.contract_precision<fp32>} : vector<2x8x32xf32>, vector<2x8x32xf32>, vector<2x8x8xf32> -> vector<2x8x8xf32>
    "tpu.trace_stop"() : () -> ()
    %c3 = arith.constant 3 : index
    %163 = memref.load %arg1[%c3] : memref<4xf32, #tpu.memory_space<smem>>
    %164 = vector.broadcast %163 : f32 to vector<2x8x8xf32>
    %165 = arith.mulf %162, %164 : vector<2x8x8xf32>
    %c3_49 = arith.constant 3 : index
    %c0_50 = arith.constant 0 : index
    %c0_51 = arith.constant 0 : index
    %166 = vector.load %arg6[%c3_49, %c0_50, %c0_51] : memref<4x8x8xf32, #tpu.memory_space<vmem>>, vector<1x8x8xf32>
    %167 = vector.shape_cast %166 : vector<1x8x8xf32> to vector<8x8xf32>
    %168 = vector.shape_cast %167 : vector<8x8xf32> to vector<1x8x8xf32>
    %169 = vector.broadcast %168 : vector<1x8x8xf32> to vector<2x8x8xf32>
    %170 = arith.addf %165, %169 : vector<2x8x8xf32>
    %cst_52 = arith.constant dense<0xFF800000> : vector<2x8xf32>
    %171 = vector.multi_reduction <maximumf>, %170, %cst_52 [2] : vector<2x8x8xf32> to vector<2x8xf32>
    %172 = vector.shape_cast %171 : vector<2x8xf32> to vector<2x8x1xf32>
    %173 = vector.broadcast %172 : vector<2x8x1xf32> to vector<2x8x8xf32>
    %174 = arith.subf %170, %173 : vector<2x8x8xf32>
    %175 = math.exp %174 : vector<2x8x8xf32>
    %cst_53 = arith.constant dense<0.000000e+00> : vector<2x8xf32>
    %176 = vector.multi_reduction <add>, %175, %cst_53 [2] : vector<2x8x8xf32> to vector<2x8xf32>
    %177 = vector.shape_cast %176 : vector<2x8xf32> to vector<2x8x1xf32>
    %178 = vector.broadcast %177 : vector<2x8x1xf32> to vector<2x8x8xf32>
    %179 = arith.divf %175, %178 : vector<2x8x8xf32>
    "tpu.trace_start"() <{level = 10 : i32, message = "wij,wjd->wid"}> : () -> ()
    %cst_54 = arith.constant dense<0.000000e+00> : vector<2x8x32xf32>
    %180 = tpu.matmul %179, %145, %cst_54 {dimension_numbers = #tpu.dot_dimension_numbers<[2], [1], [1], [2], [0, 0, 0, 1, 1, 2], [0], [0]>, precision = #tpu.contract_precision<fp32>} : vector<2x8x8xf32>, vector<2x8x32xf32>, vector<2x8x32xf32> -> vector<2x8x32xf32>
    "tpu.trace_stop"() : () -> ()
    %181 = vector.shape_cast %180 : vector<2x8x32xf32> to vector<16x32xf32>
    %c0_55 = arith.constant 0 : index
    %c96 = arith.constant 96 : index
    %182 = vector.load %arg23[%c0_55, %c96] : memref<16x128xf32, #tpu.memory_space<vmem>>, vector<16x32xf32>
    tpu.vector_store %arg23[%c0_55, %c96], %181 {strides = array<i32>} : memref<16x128xf32, #tpu.memory_space<vmem>>, vector<16x32xf32>,
    %c0_56 = arith.constant 0 : index
    %c0_57 = arith.constant 0 : index
    %183 = vector.load %arg23[%c0_56, %c0_57] : memref<16x128xf32, #tpu.memory_space<vmem>>, vector<16x128xf32>
    %184 = arith.truncf %183 : vector<16x128xf32> to vector<16x128xbf16>
    %c0_58 = arith.constant 0 : index
    %c0_59 = arith.constant 0 : index
    %185 = vector.load %arg7[%c0_58, %c0_59] : memref<128x128xbf16, #tpu.memory_space<vmem>>, vector<128x128xbf16>
    %cst_60 = arith.constant dense<0.000000e+00> : vector<16x128xf32>
    %186 = tpu.matmul %184, %185, %cst_60 {dimension_numbers = #tpu.dot_dimension_numbers<[1], [0], [0], [1], [0, 0, 1, 1], [], []>} : vector<16x128xbf16>, vector<128x128xbf16>, vector<16x128xf32> -> vector<16x128xf32>
    %c0_61 = arith.constant 0 : index
    %c0_62 = arith.constant 0 : index
    %187 = vector.load %arg8[%c0_61, %c0_62] : memref<1x128xf32, #tpu.memory_space<vmem>>, vector<1x128xf32>
    %188 = vector.broadcast %187 : vector<1x128xf32> to vector<16x128xf32>
    %189 = arith.addf %186, %188 : vector<16x128xf32>
    %c0_63 = arith.constant 0 : index
    %c0_64 = arith.constant 0 : index
    %190 = vector.load %arg9[%c0_63, %c0_64] : memref<1x128xf32, #tpu.memory_space<vmem>>, vector<1x128xf32>
    %c0_65 = arith.constant 0 : index
    %c0_66 = arith.constant 0 : index
    %191 = vector.load %arg10[%c0_65, %c0_66] : memref<1x128xf32, #tpu.memory_space<vmem>>, vector<1x128xf32>
    %cst_67 = arith.constant dense<0.000000e+00> : vector<16xf32>
    %192 = vector.multi_reduction <add>, %189, %cst_67 [1] : vector<16x128xf32> to vector<16xf32>
    %193 = vector.shape_cast %192 : vector<16xf32> to vector<16x1xf32>
    %cst_68 = arith.constant 1.280000e+02 : f32
    %194 = vector.broadcast %cst_68 : f32 to vector<16x1xf32>
    %195 = arith.divf %193, %194 : vector<16x1xf32>
    %196 = vector.broadcast %195 : vector<16x1xf32> to vector<16x128xf32>
    %197 = arith.subf %189, %196 : vector<16x128xf32>
    %198 = vector.broadcast %195 : vector<16x1xf32> to vector<16x128xf32>
    %199 = arith.subf %189, %198 : vector<16x128xf32>
    %200 = arith.mulf %197, %199 : vector<16x128xf32>
    %cst_69 = arith.constant dense<0.000000e+00> : vector<16xf32>
    %201 = vector.multi_reduction <add>, %200, %cst_69 [1] : vector<16x128xf32> to vector<16xf32>
    %202 = vector.shape_cast %201 : vector<16xf32> to vector<16x1xf32>
    %cst_70 = arith.constant 1.280000e+02 : f32
    %203 = vector.broadcast %cst_70 : f32 to vector<16x1xf32>
    %204 = arith.divf %202, %203 : vector<16x1xf32>
    %205 = vector.broadcast %195 : vector<16x1xf32> to vector<16x128xf32>
    %206 = arith.subf %189, %205 : vector<16x128xf32>
    %cst_71 = arith.constant 9.99999974E-6 : f32
    %207 = vector.broadcast %cst_71 : f32 to vector<16x1xf32>
    %208 = arith.addf %204, %207 : vector<16x1xf32>
    %209 = math.rsqrt %208 : vector<16x1xf32>
    %210 = vector.broadcast %209 : vector<16x1xf32> to vector<16x128xf32>
    %211 = arith.mulf %206, %210 : vector<16x128xf32>
    %212 = vector.broadcast %190 : vector<1x128xf32> to vector<16x128xf32>
    %213 = arith.mulf %211, %212 : vector<16x128xf32>
    %214 = vector.broadcast %191 : vector<1x128xf32> to vector<16x128xf32>
    %215 = arith.addf %213, %214 : vector<16x128xf32>
    %216 = arith.addf %1, %215 : vector<16x128xf32>
    %217 = arith.truncf %216 : vector<16x128xf32> to vector<16x128xbf16>
    %c0_72 = arith.constant 0 : index
    %c0_73 = arith.constant 0 : index
    %218 = vector.load %arg11[%c0_72, %c0_73] : memref<128x512xbf16, #tpu.memory_space<vmem>>, vector<128x512xbf16>
    %cst_74 = arith.constant dense<0.000000e+00> : vector<16x512xf32>
    %219 = tpu.matmul %217, %218, %cst_74 {dimension_numbers = #tpu.dot_dimension_numbers<[1], [0], [0], [1], [0, 0, 1, 1], [], []>} : vector<16x128xbf16>, vector<128x512xbf16>, vector<16x512xf32> -> vector<16x512xf32>
    %c0_75 = arith.constant 0 : index
    %c0_76 = arith.constant 0 : index
    %220 = vector.load %arg12[%c0_75, %c0_76] : memref<1x512xf32, #tpu.memory_space<vmem>>, vector<1x512xf32>
    %221 = vector.broadcast %220 : vector<1x512xf32> to vector<16x512xf32>
    %222 = arith.addf %219, %221 : vector<16x512xf32>
    %cst_77 = arith.constant 5.000000e-01 : f32
    %223 = vector.broadcast %cst_77 : f32 to vector<16x512xf32>
    %224 = arith.mulf %223, %222 : vector<16x512xf32>
    %cst_78 = arith.constant 0.707106769 : f32
    %225 = vector.broadcast %cst_78 : f32 to vector<16x512xf32>
    %226 = arith.mulf %222, %225 : vector<16x512xf32>
    %cst_79 = arith.constant 0.000000e+00 : f32
    %227 = vector.broadcast %cst_79 : f32 to vector<16x512xf32>
    %228 = arith.cmpf oge, %226, %227 : vector<16x512xf32>
    %cst_80 = arith.constant 1.000000e+00 : f32
    %cst_81 = arith.constant -1.000000e+00 : f32
    %229 = vector.broadcast %cst_80 : f32 to vector<16x512xf32>
    %230 = vector.broadcast %cst_81 : f32 to vector<16x512xf32>
    %231 = arith.select %228, %229, %230 : vector<16x512xi1>, vector<16x512xf32>
    %232 = math.absf %226 : vector<16x512xf32>
    %cst_82 = arith.constant 0.327591091 : f32
    %233 = vector.broadcast %cst_82 : f32 to vector<16x512xf32>
    %234 = arith.mulf %233, %232 : vector<16x512xf32>
    %cst_83 = arith.constant 1.000000e+00 : f32
    %235 = vector.broadcast %cst_83 : f32 to vector<16x512xf32>
    %236 = arith.addf %235, %234 : vector<16x512xf32>
    %cst_84 = arith.constant 1.000000e+00 : f32
    %237 = vector.broadcast %cst_84 : f32 to vector<16x512xf32>
    %238 = arith.divf %237, %236 : vector<16x512xf32>
    %cst_85 = arith.constant 1.06140542 : f32
    %239 = vector.broadcast %cst_85 : f32 to vector<16x512xf32>
    %240 = arith.mulf %239, %238 : vector<16x512xf32>
    %cst_86 = arith.constant -1.45315206 : f32
    %241 = vector.broadcast %cst_86 : f32 to vector<16x512xf32>
    %242 = arith.addf %240, %241 : vector<16x512xf32>
    %243 = arith.mulf %242, %238 : vector<16x512xf32>
    %cst_87 = arith.constant 1.42141378 : f32
    %244 = vector.broadcast %cst_87 : f32 to vector<16x512xf32>
    %245 = arith.addf %243, %244 : vector<16x512xf32>
    %246 = arith.mulf %245, %238 : vector<16x512xf32>
    %cst_88 = arith.constant -0.284496725 : f32
    %247 = vector.broadcast %cst_88 : f32 to vector<16x512xf32>
    %248 = arith.addf %246, %247 : vector<16x512xf32>
    %249 = arith.mulf %248, %238 : vector<16x512xf32>
    %cst_89 = arith.constant 0.254829586 : f32
    %250 = vector.broadcast %cst_89 : f32 to vector<16x512xf32>
    %251 = arith.addf %249, %250 : vector<16x512xf32>
    %252 = arith.mulf %251, %238 : vector<16x512xf32>
    %cst_90 = arith.constant 0.000000e+00 : f32
    %253 = vector.broadcast %cst_90 : f32 to vector<16x512xf32>
    %254 = arith.subf %253, %232 : vector<16x512xf32>
    %255 = arith.mulf %254, %232 : vector<16x512xf32>
    %256 = math.exp %255 : vector<16x512xf32>
    %257 = arith.mulf %252, %256 : vector<16x512xf32>
    %cst_91 = arith.constant 1.000000e+00 : f32
    %258 = vector.broadcast %cst_91 : f32 to vector<16x512xf32>
    %259 = arith.subf %258, %257 : vector<16x512xf32>
    %260 = arith.mulf %231, %259 : vector<16x512xf32>
    %cst_92 = arith.constant 1.000000e+00 : f32
    %261 = vector.broadcast %cst_92 : f32 to vector<16x512xf32>
    %262 = arith.addf %261, %260 : vector<16x512xf32>
    %263 = arith.mulf %224, %262 : vector<16x512xf32>
    %264 = arith.truncf %263 : vector<16x512xf32> to vector<16x512xbf16>
    %c0_93 = arith.constant 0 : index
    %c0_94 = arith.constant 0 : index
    %265 = vector.load %arg13[%c0_93, %c0_94] : memref<512x128xbf16, #tpu.memory_space<vmem>>, vector<512x128xbf16>
    %cst_95 = arith.constant dense<0.000000e+00> : vector<16x128xf32>
    %266 = tpu.matmul %264, %265, %cst_95 {dimension_numbers = #tpu.dot_dimension_numbers<[1], [0], [0], [1], [0, 0, 1, 1], [], []>} : vector<16x512xbf16>, vector<512x128xbf16>, vector<16x128xf32> -> vector<16x128xf32>
    %c0_96 = arith.constant 0 : index
    %c0_97 = arith.constant 0 : index
    %267 = vector.load %arg14[%c0_96, %c0_97] : memref<1x128xf32, #tpu.memory_space<vmem>>, vector<1x128xf32>
    %268 = vector.broadcast %267 : vector<1x128xf32> to vector<16x128xf32>
    %269 = arith.addf %266, %268 : vector<16x128xf32>
    %c0_98 = arith.constant 0 : index
    %c0_99 = arith.constant 0 : index
    %270 = vector.load %arg15[%c0_98, %c0_99] : memref<1x128xf32, #tpu.memory_space<vmem>>, vector<1x128xf32>
    %c0_100 = arith.constant 0 : index
    %c0_101 = arith.constant 0 : index
    %271 = vector.load %arg16[%c0_100, %c0_101] : memref<1x128xf32, #tpu.memory_space<vmem>>, vector<1x128xf32>
    %cst_102 = arith.constant dense<0.000000e+00> : vector<16xf32>
    %272 = vector.multi_reduction <add>, %269, %cst_102 [1] : vector<16x128xf32> to vector<16xf32>
    %273 = vector.shape_cast %272 : vector<16xf32> to vector<16x1xf32>
    %cst_103 = arith.constant 1.280000e+02 : f32
    %274 = vector.broadcast %cst_103 : f32 to vector<16x1xf32>
    %275 = arith.divf %273, %274 : vector<16x1xf32>
    %276 = vector.broadcast %275 : vector<16x1xf32> to vector<16x128xf32>
    %277 = arith.subf %269, %276 : vector<16x128xf32>
    %278 = vector.broadcast %275 : vector<16x1xf32> to vector<16x128xf32>
    %279 = arith.subf %269, %278 : vector<16x128xf32>
    %280 = arith.mulf %277, %279 : vector<16x128xf32>
    %cst_104 = arith.constant dense<0.000000e+00> : vector<16xf32>
    %281 = vector.multi_reduction <add>, %280, %cst_104 [1] : vector<16x128xf32> to vector<16xf32>
    %282 = vector.shape_cast %281 : vector<16xf32> to vector<16x1xf32>
    %cst_105 = arith.constant 1.280000e+02 : f32
    %283 = vector.broadcast %cst_105 : f32 to vector<16x1xf32>
    %284 = arith.divf %282, %283 : vector<16x1xf32>
    %285 = vector.broadcast %275 : vector<16x1xf32> to vector<16x128xf32>
    %286 = arith.subf %269, %285 : vector<16x128xf32>
    %cst_106 = arith.constant 9.99999974E-6 : f32
    %287 = vector.broadcast %cst_106 : f32 to vector<16x1xf32>
    %288 = arith.addf %284, %287 : vector<16x1xf32>
    %289 = math.rsqrt %288 : vector<16x1xf32>
    %290 = vector.broadcast %289 : vector<16x1xf32> to vector<16x128xf32>
    %291 = arith.mulf %286, %290 : vector<16x128xf32>
    %292 = vector.broadcast %270 : vector<1x128xf32> to vector<16x128xf32>
    %293 = arith.mulf %291, %292 : vector<16x128xf32>
    %294 = vector.broadcast %271 : vector<1x128xf32> to vector<16x128xf32>
    %295 = arith.addf %293, %294 : vector<16x128xf32>
    %296 = arith.addf %216, %295 : vector<16x128xf32>
    %cst_107 = arith.constant dense<0.000000e+00> : vector<128xf32>
    %297 = vector.multi_reduction <add>, %296, %cst_107 [0] : vector<16x128xf32> to vector<128xf32>
    %298 = vector.shape_cast %297 : vector<128xf32> to vector<1x128xf32>
    %cst_108 = arith.constant 1.600000e+01 : f32
    %299 = vector.broadcast %cst_108 : f32 to vector<1x128xf32>
    %300 = arith.divf %298, %299 : vector<1x128xf32>
    %c0_109 = arith.constant 0 : index
    %c0_110 = arith.constant 0 : index
    %301 = vector.load %arg17[%c0_109, %c0_110] : memref<128x8xf32, #tpu.memory_space<vmem>>, vector<128x8xf32>
    %cst_111 = arith.constant dense<0.000000e+00> : vector<1x8xf32>
    %302 = tpu.matmul %300, %301, %cst_111 {dimension_numbers = #tpu.dot_dimension_numbers<[1], [0], [0], [1], [0, 0, 1, 1], [], []>, precision = #tpu.contract_precision<fp32>} : vector<1x128xf32>, vector<128x8xf32>, vector<1x8xf32> -> vector<1x8xf32>
    %c0_112 = arith.constant 0 : index
    %303 = memref.load %arg2[%c0_112] : memref<1xf32, #tpu.memory_space<smem>>
    %c0_113 = arith.constant 0 : index
    %c0_114 = arith.constant 0 : index
    %304 = vector.load %arg18[%c0_113, %c0_114] : memref<1x8xf32, #tpu.memory_space<vmem>>, vector<1x8xf32>
    %305 = vector.broadcast %303 : f32 to vector<1x8xf32>
    %306 = arith.mulf %305, %304 : vector<1x8xf32>
    %307 = arith.addf %302, %306 : vector<1x8xf32>
    %c0_115 = arith.constant 0 : index
    %c0_116 = arith.constant 0 : index
    %308 = vector.load %arg19[%c0_115, %c0_116] : memref<1x8xf32, #tpu.memory_space<vmem>>, vector<1x8xf32>
    %309 = arith.addf %307, %308 : vector<1x8xf32>
    %cst_117 = arith.constant 0.000000e+00 : f32
    %310 = vector.broadcast %cst_117 : f32 to vector<1x8xf32>
    %311 = arith.maximumf %309, %310 : vector<1x8xf32>
    %c0_118 = arith.constant 0 : index
    %c0_119 = arith.constant 0 : index
    %312 = vector.load %arg20[%c0_118, %c0_119] : memref<8x128xf32, #tpu.memory_space<vmem>>, vector<8x128xf32>
    %cst_120 = arith.constant dense<0.000000e+00> : vector<1x128xf32>
    %313 = tpu.matmul %311, %312, %cst_120 {dimension_numbers = #tpu.dot_dimension_numbers<[1], [0], [0], [1], [0, 0, 1, 1], [], []>, precision = #tpu.contract_precision<fp32>} : vector<1x8xf32>, vector<8x128xf32>, vector<1x128xf32> -> vector<1x128xf32>
    %c0_121 = arith.constant 0 : index
    %c0_122 = arith.constant 0 : index
    %314 = vector.load %arg21[%c0_121, %c0_122] : memref<1x128xf32, #tpu.memory_space<vmem>>, vector<1x128xf32>
    %315 = arith.addf %313, %314 : vector<1x128xf32>
    %cst_123 = arith.constant 0.000000e+00 : f32
    %316 = vector.broadcast %cst_123 : f32 to vector<1x128xf32>
    %317 = arith.subf %316, %315 : vector<1x128xf32>
    %318 = math.exp %317 : vector<1x128xf32>
    %cst_124 = arith.constant 1.000000e+00 : f32
    %319 = vector.broadcast %cst_124 : f32 to vector<1x128xf32>
    %320 = arith.addf %319, %318 : vector<1x128xf32>
    %cst_125 = arith.constant 1.000000e+00 : f32
    %321 = vector.broadcast %cst_125 : f32 to vector<1x128xf32>
    %322 = arith.divf %321, %320 : vector<1x128xf32>
    %323 = vector.broadcast %322 : vector<1x128xf32> to vector<16x128xf32>
    %324 = arith.mulf %323, %296 : vector<16x128xf32>
    %325 = arith.addf %296, %324 : vector<16x128xf32>
    %c0_126 = arith.constant 0 : index
    %c0_127 = arith.constant 0 : index
    %c0_128 = arith.constant 0 : index
    %326 = vector.load %arg22[%c0_126, %c0_127, %c0_128] : memref<1x16x128xf32, #tpu.memory_space<vmem>>, vector<1x16x128xf32>
    %327 = vector.shape_cast %326 : vector<1x16x128xf32> to vector<16x128xf32>
    %328 = vector.shape_cast %325 : vector<16x128xf32> to vector<1x16x128xf32>
    tpu.vector_store %arg22[%c0_126, %c0_127, %c0_128], %328 {strides = array<i32>} : memref<1x16x128xf32, #tpu.memory_space<vmem>>, vector<1x16x128xf32>,
    return
  }
  func.func @transform_0(%arg0: i32) -> i32 {
    %c0_i32 = arith.constant 0 : i32
    %c0_i32_0 = arith.constant 0 : i32
    return %c0_i32 : i32
  }
  func.func @transform_1(%arg0: i32) -> i32 {
    %c0_i32 = arith.constant 0 : i32
    %c0_i32_0 = arith.constant 0 : i32
    return %c0_i32 : i32
  }
  func.func @transform_2(%arg0: i32) -> (i32, i32, i32) {
    %c0_i32 = arith.constant 0 : i32
    %c0_i32_0 = arith.constant 0 : i32
    %c0_i32_1 = arith.constant 0 : i32
    return %arg0, %c0_i32, %c0_i32_0 : i32, i32, i32
  }
  func.func @transform_3(%arg0: i32) -> (i32, i32) {
    %c0_i32 = arith.constant 0 : i32
    %c0_i32_0 = arith.constant 0 : i32
    %c0_i32_1 = arith.constant 0 : i32
    return %c0_i32, %c0_i32_0 : i32, i32
  }
  func.func @transform_4(%arg0: i32) -> (i32, i32) {
    %c0_i32 = arith.constant 0 : i32
    %c0_i32_0 = arith.constant 0 : i32
    %c0_i32_1 = arith.constant 0 : i32
    return %c0_i32, %c0_i32_0 : i32, i32
  }
  func.func @transform_5(%arg0: i32) -> (i32, i32, i32) {
    %c0_i32 = arith.constant 0 : i32
    %c0_i32_0 = arith.constant 0 : i32
    %c0_i32_1 = arith.constant 0 : i32
    %c0_i32_2 = arith.constant 0 : i32
    return %c0_i32, %c0_i32_0, %c0_i32_1 : i32, i32, i32
  }
  func.func @transform_6(%arg0: i32) -> (i32, i32) {
    %c0_i32 = arith.constant 0 : i32
    %c0_i32_0 = arith.constant 0 : i32
    %c0_i32_1 = arith.constant 0 : i32
    return %c0_i32, %c0_i32_0 : i32, i32
  }
  func.func @transform_7(%arg0: i32) -> (i32, i32) {
    %c0_i32 = arith.constant 0 : i32
    %c0_i32_0 = arith.constant 0 : i32
    %c0_i32_1 = arith.constant 0 : i32
    return %c0_i32, %c0_i32_0 : i32, i32
  }
  func.func @transform_8(%arg0: i32) -> (i32, i32) {
    %c0_i32 = arith.constant 0 : i32
    %c0_i32_0 = arith.constant 0 : i32
    %c0_i32_1 = arith.constant 0 : i32
    return %c0_i32, %c0_i32_0 : i32, i32
  }
  func.func @transform_9(%arg0: i32) -> (i32, i32) {
    %c0_i32 = arith.constant 0 : i32
    %c0_i32_0 = arith.constant 0 : i32
    %c0_i32_1 = arith.constant 0 : i32
    return %c0_i32, %c0_i32_0 : i32, i32
  }
  func.func @transform_10(%arg0: i32) -> (i32, i32) {
    %c0_i32 = arith.constant 0 : i32
    %c0_i32_0 = arith.constant 0 : i32
    %c0_i32_1 = arith.constant 0 : i32
    return %c0_i32, %c0_i32_0 : i32, i32
  }
  func.func @transform_11(%arg0: i32) -> (i32, i32) {
    %c0_i32 = arith.constant 0 : i32
    %c0_i32_0 = arith.constant 0 : i32
    %c0_i32_1 = arith.constant 0 : i32
    return %c0_i32, %c0_i32_0 : i32, i32
  }
  func.func @transform_12(%arg0: i32) -> (i32, i32) {
    %c0_i32 = arith.constant 0 : i32
    %c0_i32_0 = arith.constant 0 : i32
    %c0_i32_1 = arith.constant 0 : i32
    return %c0_i32, %c0_i32_0 : i32, i32
  }
  func.func @transform_13(%arg0: i32) -> (i32, i32) {
    %c0_i32 = arith.constant 0 : i32
    %c0_i32_0 = arith.constant 0 : i32
    %c0_i32_1 = arith.constant 0 : i32
    return %c0_i32, %c0_i32_0 : i32, i32
  }
  func.func @transform_14(%arg0: i32) -> (i32, i32) {
    %c0_i32 = arith.constant 0 : i32
    %c0_i32_0 = arith.constant 0 : i32
    %c0_i32_1 = arith.constant 0 : i32
    return %c0_i32, %c0_i32_0 : i32, i32
  }
  func.func @transform_15(%arg0: i32) -> (i32, i32) {
    %c0_i32 = arith.constant 0 : i32
    %c0_i32_0 = arith.constant 0 : i32
    %c0_i32_1 = arith.constant 0 : i32
    return %c0_i32, %c0_i32_0 : i32, i32
  }
  func.func @transform_16(%arg0: i32) -> (i32, i32) {
    %c0_i32 = arith.constant 0 : i32
    %c0_i32_0 = arith.constant 0 : i32
    %c0_i32_1 = arith.constant 0 : i32
    return %c0_i32, %c0_i32_0 : i32, i32
  }
  func.func @transform_17(%arg0: i32) -> (i32, i32) {
    %c0_i32 = arith.constant 0 : i32
    %c0_i32_0 = arith.constant 0 : i32
    %c0_i32_1 = arith.constant 0 : i32
    return %c0_i32, %c0_i32_0 : i32, i32
  }
  func.func @transform_18(%arg0: i32) -> (i32, i32) {
    %c0_i32 = arith.constant 0 : i32
    %c0_i32_0 = arith.constant 0 : i32
    %c0_i32_1 = arith.constant 0 : i32
    return %c0_i32, %c0_i32_0 : i32, i32
  }
  func.func @transform_19(%arg0: i32) -> (i32, i32) {
    %c0_i32 = arith.constant 0 : i32
    %c0_i32_0 = arith.constant 0 : i32
    %c0_i32_1 = arith.constant 0 : i32
    return %c0_i32, %c0_i32_0 : i32, i32
  }
  func.func @transform_20(%arg0: i32) -> (i32, i32) {
    %c0_i32 = arith.constant 0 : i32
    %c0_i32_0 = arith.constant 0 : i32
    %c0_i32_1 = arith.constant 0 : i32
    return %c0_i32, %c0_i32_0 : i32, i32
  }
  func.func @transform_21(%arg0: i32) -> (i32, i32, i32) {
    %c0_i32 = arith.constant 0 : i32
    %c0_i32_0 = arith.constant 0 : i32
    %c0_i32_1 = arith.constant 0 : i32
    return %arg0, %c0_i32, %c0_i32_0 : i32, i32, i32
  }
}

</mosaic_0001>

<bundles_post_ra>
// kernel: tpu_custom_call.1
= control target key start
LH: loop header
LB: loop body
LE: loop exit
PB: predicated region body
PF: predicated region fallthrough
CT: control target
= control target key end

     0   :  { %s8217_s0 = inlined_call_operand.vmem [shape: f32[4], index: 0, kind: input, shape index: {}]   ;;  %s8218_s1 = inlined_call_operand.<no memory space> [shape: f32[1], index: 1, kind: input, shape index: {}]   ;;  %s8219_s2 = inlined_call_operand.vmem [shape: f32[2,16,128], index: 2, kind: input, shape index: {}]   ;;  %s8220_s3 = inlined_call_operand.hbm [shape: bf16[128,384], index: 3, kind: input, shape index: {}]   ;;  %s8221_s4 = inlined_call_operand.hbm [shape: f32[1,384], index: 4, kind: input, shape index: {}]   ;;  %s8222_s5 = inlined_call_operand.vmem [shape: f32[4,8,8], index: 5, kind: input, shape index: {}]   ;;  %s8223_s6 = inlined_call_operand.vmem [shape: bf16[128,128], index: 6, kind: input, shape index: {}]   ;;  %s8224_s7 = inlined_call_operand.vmem [shape: f32[1,128], index: 7, kind: input, shape index: {}]   ;;  %s8225_s8 = inlined_call_operand.vmem [shape: f32[1,128], index: 8, kind: input, shape index: {}]   ;;  %s8226_s9 = inlined_call_operand.vmem [shape: f32[1,128], index: 9, kind: input, shape index: {}]   ;;  %s8227_s10 = inlined_call_operand.hbm [shape: bf16[128,512], index: 10, kind: input, shape index: {}]   ;;  %s8228_s11 = inlined_call_operand.vmem [shape: f32[1,512], index: 11, kind: input, shape index: {}]   ;;  %s8229_s12 = inlined_call_operand.hbm [shape: bf16[512,128], index: 12, kind: input, shape index: {}]   ;;  %s8230_s13 = inlined_call_operand.hbm [shape: f32[1,128], index: 13, kind: input, shape index: {}]   ;;  %s8231_s14 = inlined_call_operand.hbm [shape: f32[1,128], index: 14, kind: input, shape index: {}]   ;;  %s8232_s15 = inlined_call_operand.hbm [shape: f32[1,128], index: 15, kind: input, shape index: {}]   ;;  %s8233_s16 = inlined_call_operand.vmem [shape: f32[128,8], index: 16, kind: input, shape index: {}]   ;;  %s8234_s17 = inlined_call_operand.vmem [shape: f32[1,8], index: 17, kind: input, shape index: {}]   ;;  %s8235_s18 = inlined_call_operand.hbm [shape: f32[1,8], index: 18, kind: input, shape index: {}]   ;;  %s8236_s19 = inlined_call_operand.vmem [shape: f32[8,128], index: 19, kind: input, shape index: {}]   ;;  %s8237_s20 = inlined_call_operand.vmem [shape: f32[1,128], index: 20, kind: input, shape index: {}]   ;;  %s8238_s21 = inlined_call_operand.hbm [shape: f32[2,16,128], index: 21, kind: output, shape index: {}]  }
   0x1   :  { %8250 = sst [smem:[#allocation36_spill]] %s8217_s0 }
   0x2   :  { %8251 = sst [smem:[#allocation37_spill]] %s8218_s1 }
   0x3   :  { %8252 = sst [smem:[#allocation38_spill]] %s8219_s2 }
   0x4   :  { %8253 = sst [smem:[#allocation39_spill]] %s8220_s3 }
   0x5   :  { %8254 = sst [smem:[#allocation40_spill]] %s8221_s4 }
   0x6   :  { %8255 = sst [smem:[#allocation41_spill]] %s8222_s5 }
   0x7   :  { %8256 = sst [smem:[#allocation42_spill]] %s8229_s12 }
   0x8   :  { %8257 = sst [smem:[#allocation43_spill]] %s8237_s20 }
   0x9   :  { %8258 = sst [smem:[#allocation44_spill]] %s8238_s21 }
   0xa   :  { %s8259_s26 = sld [smem:[#allocation37_spill]] }
  0x10   :  { %26 = sst [smem:[#allocation3]] %s8259_s26 }
  0x11   :  { %27 = vsyncpa [#allocation7], 0 }
  0x12   :  { %28 = vsyncpa [#allocation5], 0 }
  0x13   :  { %29 = vsyncpa [#allocation10], 0 }
  0x14   :  { %30 = vsyncpa [#allocation13], 0 }
  0x15   :  { %31 = vsyncpa [#allocation16], 0 }
  0x16   :  { %32 = vsyncpa [#allocation19], 0 }
  0x17   :  { %33 = vsyncpa [#allocation6], 0 }
  0x18   :  { %35 = vsyncpa [#allocation6 + $0x1], 0  ;;  %s7087_s27 = smov 0   ;;  %s7089_s3 = smov 0  }
  0x19   :  { %s7091_s28 = smov 0   ;;  %s7093_s29 = smov 0  }
  0x1a LB: > { %8260 = sst [smem:[#allocation28_spill]] %s6937_s27  ;;  %s7108_s0 = sadd.s32 4294967295, %s6949_s29   ;;  %s6949_s29 = sphi %s7093_s29, %s8289_s29   ;;  %s6945_s28 = sphi %s7091_s28, %s8292_s28   ;;  %s6941_s3 = sphi %s7089_s3, %s8291_s3   ;;  %s6937_s27 = sphi %s7087_s27, %s8290_s27  }
  0x1b   : > { %8261 = sst [smem:[#allocation29_spill]] %s6941_s3  ;;  %s5826_s4 = sadd.s32 4294967294, %s6949_s29  }
  0x1c   : > { %8262 = sst [smem:[#allocation30_spill]] %s6945_s28  ;;  %s7112_s30 = sadd.s32 1, %s6949_s29  }
  0x1d   : > { %8263 = sst [smem:[#allocation31_spill]] %s6949_s29  ;;  %s494_s5 = sadd.s32 1, %s6945_s28 }
  0x1e   : > { %8264 = sst [smem:[#allocation32_spill]] %s7112_s30  ;;  %s491_s22 = ssub.s32 %s6949_s29, %s7112_s30 }
  0x1f   : > { %p504_p0 = scmp.ne.s32.totalorder %s6945_s28, %s6941_s3  ;;  %p492_p1 = scmp.eq.s32.totalorder %s491_s22, 0 }
  0x20   : > { %p505_p2 = scmp.eq.s32.totalorder %s7108_s0, 1  ;;  %p510_p3 = scmp.ne.s32.totalorder %s6941_s3, %s6937_s27 }
  0x21   : > { %p511_p4 = scmp.eq.s32.totalorder %s5826_s4, 1  ;;  %p5827_p7 = scmp.ge.s32.totalorder %s6949_s29, 1 }
  0x22   : > { %s7123_s23 = scalar_select %p492_p1, %s6945_s28, %s494_s5  }
  0x23   : > { %p7125_p5 = por %p505_p2, %p504_p0  ;;  %p7129_p6 = por %p511_p4, %p510_p3 }
  0x24   : > { %8265 = sst [smem:[#allocation33_spill]] %s7123_s23  ;;  %p518_p8 = scmp.lt.s32.totalorder %s6949_s29, 3 }
  0x25   : > { %s8266_s1 = scalar_select %p7125_p5, 1, 0 }
  0x26   : > { %s8268_s24 = scalar_select %p7129_p6, 1, 0 }
  0x27   : > { %8267 = sst [smem:[#allocation34_spill]] %s8266_s1  ;;  %p6414_p9 = scmp.eq.s32.totalorder %s7108_s0, 0 }
  0x28   : > { %8269 = sst [smem:[#allocation35_spill]] %s8268_s24  ;;  %p7136_p10 = pnand %p5827_p7, %p518_p8 }
  0x29   : > { %s8271_s4 = sld [smem:[#allocation40_spill]]  ;;  %s6951_s22 = smov [#allocation9]  }
  0x2a   : > { %p6382_p11 = pneg %p7136_p10  ;;  %s559_s23 = sshll.u32 %s6951_s22, 4  ;;  %s560_s23 = int_to_ptr.vmem [resolvable:$true] %s559_s23 }
  0x2b   : > { %s8272_s12 = sld [smem:[#allocation42_spill]]  ;;  %s6952_s25 = smov [#allocation12]  }
  0x2c   : > { %p7150_p12 = pnand %p6414_p9, %p6382_p11  ;;  %s602_s26 = sshll.u32 %s6952_s25, 4  ;;  %s603_s26 = int_to_ptr.vmem [resolvable:$true] %s602_s26 }
  0x2d   : > { %s6954_s22 = smov 4   ;;  %s6955_s29 = smov [#allocation15]  }
  0x2e   : > { %s629_s1 = sshll.u32 %s6955_s29, 4  ;;  %s8274_s20 = sld [smem:[#allocation36_spill]]  ;;  %s630_s1 = int_to_ptr.vmem [resolvable:$true] %s629_s1 }
  0x2f   : > { %s557_s5 = sshll.u32 %s8271_s4, 4  ;;  %s6953_s4 = smov 64   ;;  %s558_s5 = int_to_ptr.hbm [resolvable:$true] %s557_s5 }
  0x30   : > { %6391 = dma.hbm_to_vmem [thread:$0]  (!%p7150_p12), %s558_s5, 48, %s560_s23, [#allocation10]  }
  0x31   : > { %s600_s24 = sshll.u32 %s8272_s12, 4  ;;  %s627_s12 = sshll.u32 %s8231_s14, 4  ;;  %s601_s24 = int_to_ptr.hbm [resolvable:$true] %s600_s24  ;;  %s628_s12 = int_to_ptr.hbm [resolvable:$true] %s627_s12 }
  0x32   : > { %6397 = dma.hbm_to_vmem [thread:$0]  (!%p7150_p12), %s601_s24, 4096, %s603_s26, [#allocation13], %s6953_s4, %s6953_s4, %s6954_s22  }
  0x33   : > { %6403 = dma.hbm_to_vmem [thread:$0]  (!%p7150_p12), %s628_s12, 16, %s630_s1, [#allocation16]  }
  0x34   : > { %s530_s25 = sshll.u32 %s8274_s20, 4  ;;  %s6956_s23 = smov [#allocation4]   ;;  %s531_s25 = int_to_ptr.vmem [resolvable:$true] %s530_s25 }
  0x35   : > { %6385 = dma.vmem_to_smem (!%p7150_p12), %s531_s25, 16, %s6956_s23, [#allocation7]  }
  0x36   : > { %s8275_s26 = sld [smem:[#allocation39_spill]]  ;;  %s6957_s22 = smov [#allocation8]  }
  0x37   : > { %s544_s28 = sshll.u32 %s6957_s22, 4  ;;  %s583_s21 = sshll.u32 %s8227_s10, 4  ;;  %s545_s28 = int_to_ptr.vmem [resolvable:$true] %s544_s28  ;;  %s584_s21 = int_to_ptr.hbm [resolvable:$true] %s583_s21 }
  0x38   : > { %s6958_s20 = smov 192   ;;  %s6959_s12 = smov 12  }
  0x39   : > { %s6960_s3 = smov [#allocation11]   ;;  %s6961_s25 = smov 256  }
  0x3a   : > { %s585_s1 = sshll.u32 %s6960_s3, 4  ;;  %s6962_s23 = smov 16   ;;  %s586_s1 = int_to_ptr.vmem [resolvable:$true] %s585_s1 }
  0x3b   : > { %6394 = dma.hbm_to_vmem [thread:$0]  (!%p7150_p12), %s584_s21, 4096, %s586_s1, [#allocation10], %s6961_s25, %s6961_s25, %s6962_s23  }
  0x3c   : > { %s542_s4 = sshll.u32 %s8275_s26, 4  ;;  %s615_s26 = sshll.u32 %s8230_s13, 4  ;;  %s543_s4 = int_to_ptr.hbm [resolvable:$true] %s542_s4  ;;  %s616_s26 = int_to_ptr.hbm [resolvable:$true] %s615_s26 }
  0x3d   : > { %6388 = dma.hbm_to_vmem [thread:$0]  (!%p7150_p12), %s543_s4, 3072, %s545_s28, [#allocation5], %s6958_s20, %s6958_s20, %s6959_s12  }
  0x3e   : > { %s6963_s22 = smov [#allocation14]   ;;  %s639_s28 = sshll.u32 %s8232_s15, 4  ;;  %s640_s28 = int_to_ptr.hbm [resolvable:$true] %s639_s28 }
  0x3f   : > { %s617_s29 = sshll.u32 %s6963_s22, 4  ;;  %s6964_s20 = smov [#allocation17]   ;;  %s618_s29 = int_to_ptr.vmem [resolvable:$true] %s617_s29 }
  0x40   : > { %6400 = dma.hbm_to_vmem [thread:$0]  (!%p7150_p12), %s616_s26, 16, %s618_s29, [#allocation13]  }
  0x41   : > { %s641_s12 = sshll.u32 %s6964_s20, 4  ;;  %s657_s1 = sshll.u32 %s8235_s18, 4  ;;  %s642_s12 = int_to_ptr.vmem [resolvable:$true] %s641_s12  ;;  %s658_s1 = int_to_ptr.hbm [resolvable:$true] %s657_s1 }
  0x42   : > { %6406 = dma.hbm_to_vmem [thread:$0]  (!%p7150_p12), %s640_s28, 16, %s642_s12, [#allocation16]  }
  0x43   : > { %s6965_s25 = smov [#allocation18]   ;;  %686 = sbr.rel (%p7136_p10) target bundleno = 3980 (0xf8c), region = 104 }
  0x44   : > { %s659_s23 = sshll.u32 %s6965_s25, 4  ;;  %s660_s23 = int_to_ptr.vmem [resolvable:$true] %s659_s23 }
  0x45   : > { %6409 = dma.hbm_to_vmem [thread:$0]  (!%p7150_p12), %s658_s1, 16, %s660_s23, [#allocation19]  }
  0x48   : > { %6908 = dma.done.wait (%p6414_p9), [#allocation7], 16  }
  0x49   : > { %6910 = vsyncadd (%p6414_p9), [#allocation7], 4294967280 }
  0x4a   : > { %6912 = dma.done.wait (%p6414_p9), [#allocation5], 3072  }
  0x4b   : > { %6914 = vsyncadd (%p6414_p9), [#allocation5], 4294964224 }
  0x4c   : > { %6916 = dma.done.wait (%p6414_p9), [#allocation10], 4144  }
  0x4d   : > { %6918 = vsyncadd (%p6414_p9), [#allocation10], 4294963152 }
  0x4e   : > { %6920 = dma.done.wait (%p6414_p9), [#allocation13], 4112  }
  0x4f   : > { %6922 = vsyncadd (%p6414_p9), [#allocation13], 4294963184 }
  0x50   : > { %6924 = dma.done.wait (%p6414_p9), [#allocation16], 32  }
  0x51   : > { %6926 = vsyncadd (%p6414_p9), [#allocation16], 4294967264 }
  0x52   : > { %6928 = dma.done.wait (%p6414_p9), [#allocation19], 16  }
  0x53   : > { %6930 = vsyncadd (%p6414_p9), [#allocation19], 4294967280 }
  0x54   : > { %733 = sfence }
  0x55   : > { %v5937_v0 = vld [vmem:[#allocation8 + $0xa8] sm:$0xf]  ;;  %v6269_v1 = vld [vmem:[#allocation8 + $0xb0] sm:$0xf0]  ;;  %v6268_v2 = vld [vmem:[#allocation8 + $0xac] sm:$0xf] }
  0x56   : > { %v5938_v3 = vor.u32 %v6269_v1, %v5937_v0  ;;  %v5939_v4 = vld [vmem:[#allocation8 + $0xb4] sm:$0xf0]  ;;  %v5925_v5 = vld [vmem:[#allocation8 + $0x90] sm:$0xf]  ;;  %v6266_v6 = vld [vmem:[#allocation8 + $0x98] sm:$0xf0] }
  0x57   : > { %v5942_v7 = vor.u32 %v6268_v2, %v5939_v4  ;;  %v6265_v8 = vld [vmem:[#allocation8 + $0x94] sm:$0xf]  ;;  %v5927_v9 = vld [vmem:[#allocation8 + $0x9c] sm:$0xf0]  ;;  %v5926_v10 = vor.u32 %v6266_v6, %v5925_v5  ;;  %v5913_v12 = vld [vmem:[#allocation8 + $0x78] sm:$0xf] }
  0x58   : > { %964 = vmatpush.bf16.msra.mxu0 %v5938_v3  ;;  %v5930_v11 = vor.u32 %v6265_v8, %v5927_v9  ;;  %v6263_v13 = vld [vmem:[#allocation8 + $0x80] sm:$0xf0]  ;;  %v6262_v14 = vld [vmem:[#allocation8 + $0x7c] sm:$0xf]  ;;  %v5915_v15 = vld [vmem:[#allocation8 + $0x84] sm:$0xf0] }
  0x59   : > { %978 = vmatpush.bf16.msra.mxu1 %v5942_v7  ;;  %v5914_v16 = vor.u32 %v6263_v13, %v5913_v12  ;;  %v5918_v17 = vor.u32 %v6262_v14, %v5915_v15  ;;  %v5901_v18 = vld [vmem:[#allocation8 + $0x60] sm:$0xf]  ;;  %v6260_v19 = vld [vmem:[#allocation8 + $0x68] sm:$0xf0]  ;;  %v6259_v20 = vld [vmem:[#allocation8 + $0x64] sm:$0xf] }
  0x5a   : > { %v5903_v21 = vld [vmem:[#allocation8 + $0x6c] sm:$0xf0]  ;;  %v5889_v22 = vld [vmem:[#allocation8 + $0x48] sm:$0xf]  ;;  %v6257_v23 = vld [vmem:[#allocation8 + $0x50] sm:$0xf0]  ;;  %v5902_v24 = vor.u32 %v6260_v19, %v5901_v18 }
  0x5b   : > { %v6256_v25 = vld [vmem:[#allocation8 + $0x4c] sm:$0xf]  ;;  %v5906_v26 = vor.u32 %v6259_v20, %v5903_v21  ;;  %v5891_v27 = vld [vmem:[#allocation8 + $0x54] sm:$0xf0]  ;;  %p788_p13 = scmp.lt.s32.totalorder %s7108_s0, 1  ;;  %v5890_v28 = vor.u32 %v6257_v23, %v5889_v22  ;;  %s8276_s26 = sld [smem:[#allocation38_spill]] }
  0x5c   : > { %965 = vmatpush.bf16.msra.mxu0 %v5926_v10  ;;  %v5894_v29 = vor.u32 %v6256_v25, %v5891_v27  ;;  %v5877_v30 = vld [vmem:[#allocation8 + $0x30] sm:$0xf]  ;;  %v6254_v31 = vld [vmem:[#allocation8 + $0x38] sm:$0xf0]  ;;  %v6253_v32 = vld [vmem:[#allocation8 + $0x34] sm:$0xf] }
  0x5d   : > { %979 = vmatpush.bf16.msra.mxu1 %v5930_v11  ;;  %v5879_v33 = vld [vmem:[#allocation8 + $0x3c] sm:$0xf0]  ;;  %s789_s27 = scalar_select %p788_p13, %s7108_s0, 1  ;;  %v5878_v34 = vor.u32 %v6254_v31, %v5877_v30  ;;  %v5865_v36 = vld [vmem:[#allocation8 + $0x18] sm:$0xf]  ;;  %vm1008_vm0 = vcmask 261120  }
  0x5e   : > { %v5882_v35 = vor.u32 %v6253_v32, %v5879_v33  ;;  %v6251_v37 = vld [vmem:[#allocation8 + $0x20] sm:$0xf0]  ;;  %v6250_v38 = vld [vmem:[#allocation8 + $0x1c] sm:$0xf]  ;;  %v5867_v39 = vld [vmem:[#allocation8 + $0x24] sm:$0xf0] }
  0x5f   : > { %s6246_s2 = sshll.u32 %s789_s27, 4  ;;  %v5866_v40 = vor.u32 %v6251_v37, %v5865_v36  ;;  %v5870_v41 = vor.u32 %v6250_v38, %v5867_v39  ;;  %v5853_v42 = vld [vmem:[#allocation8] sm:$0xf]  ;;  %v6248_v43 = vld [vmem:[#allocation8 + $0x8] sm:$0xf0]  ;;  %s6966_s29 = smov 96  }
  0x60   : > { %966 = vmatpush.bf16.msra.mxu0 %v5914_v16  ;;  %v6247_v44 = vld [vmem:[#allocation8 + $0x4] sm:$0xf]  ;;  %v5855_v45 = vld [vmem:[#allocation8 + $0xc] sm:$0xf0]  ;;  %v5854_v46 = vor.u32 %v6248_v43, %v5853_v42  ;;  %v7232_v51 = vld [vmem:[#allocation9] sm:$0x7] }
  0x61   : > { %980 = vmatpush.bf16.msra.mxu1 %v5918_v17  ;;  %s7224_s22 = scalar_lea.vmem %s8276_s26, %s6246_s2  ;;  %v5858_v49 = vor.u32 %v6247_v44, %v5855_v45  ;;  %v830_v52 = vperm.slane %v7232_v51, 0  ;;  %v831_v53 = vperm.slane %v7232_v51, 1  ;;  %v5945_v6 = vld [vmem:[#allocation8 + $0xb0] sm:$0xf]  ;;  %v6270_v7 = vld [vmem:[#allocation8 + $0xb8] sm:$0xf0] }
  0x62   : > { %v793_v47 = vld [vmem:[%s7224_s22] sm:$0xff]  ;;  %v794_v48 = vld [vmem:[%s7224_s22 + $0x8] sm:$0xff]  ;;  %v5946_v8 = vor.u32 %v6270_v7, %v5945_v6  ;;  %v6267_v10 = vld [vmem:[#allocation8 + $0xa0] sm:$0xf0]  ;;  %s6967_s30 = smov 64   ;;  %s1375_s4 = sld [smem:[#allocation4]] }
  0x63   : > { %v7228_v50 = vpack.c.bf16 %v794_v48, %v793_v47  ;;  %v5933_v9 = vld [vmem:[#allocation8 + $0x98] sm:$0xf]  ;;  %v5921_v12 = vld [vmem:[#allocation8 + $0x80] sm:$0xf]  ;;  %v6264_v13 = vld [vmem:[#allocation8 + $0x88] sm:$0xf0] }
  0x64   : > { %967 = vmatpush.bf16.msra.mxu0 %v5902_v24  ;;  %992 = vmatpush.bf16.msra.mxu2 %v5946_v8  ;;  %v5934_v11 = vor.u32 %v6267_v10, %v5933_v9  ;;  %v5922_v14 = vor.u32 %v6264_v13, %v5921_v12  ;;  %v5909_v16 = vld [vmem:[#allocation8 + $0x68] sm:$0xf]  ;;  %v6261_v17 = vld [vmem:[#allocation8 + $0x70] sm:$0xf0]  ;;  %v5897_v20 = vld [vmem:[#allocation8 + $0x50] sm:$0xf] }
  0x65   : > { %981 = vmatpush.bf16.msra.mxu1 %v5906_v26  ;;  %v5910_v19 = vor.u32 %v6261_v17, %v5909_v16  ;;  %v6258_v21 = vld [vmem:[#allocation8 + $0x58] sm:$0xf0]  ;;  %v5885_v23 = vld [vmem:[#allocation8 + $0x38] sm:$0xf]  ;;  %v6255_v24 = vld [vmem:[#allocation8 + $0x40] sm:$0xf0] }
  0x66   : > { %v5898_v22 = vor.u32 %v6258_v21, %v5897_v20  ;;  %v5886_v25 = vor.u32 %v6255_v24, %v5885_v23  ;;  %v5873_v26 = vld [vmem:[#allocation8 + $0x20] sm:$0xf]  ;;  %v6252_v27 = vld [vmem:[#allocation8 + $0x28] sm:$0xf0]  ;;  %v6249_v30 = vld [vmem:[#allocation8 + $0x10] sm:$0xf0] }
  0x67   : > { %s8277_s12 = sld [smem:[#allocation41_spill]]  ;;  %s6968_s25 = smov 32  }
  0x68   : > { %968 = vmatpush.bf16.msra.mxu0 %v5890_v28  ;;  %993 = vmatpush.bf16.msra.mxu2 %v5934_v11  ;;  %v5874_v28 = vor.u32 %v6252_v27, %v5873_v26  ;;  %s5947_s3 = sld [smem:[#allocation4 + $0x1]] }
  0x69   : > { %982 = vmatpush.bf16.msra.mxu1 %v5894_v29  ;;  %v5861_v29 = vld [vmem:[#allocation8 + $0x8] sm:$0xf]  ;;  %s5949_s23 = sld [smem:[#allocation4 + $0x2]] }
  0x6a   : > { %v5862_v31 = vor.u32 %v6249_v30, %v5861_v29  ;;  %s5951_s24 = sld [smem:[#allocation4 + $0x3]] }
  0x6c   : > { %969 = vmatpush.bf16.msra.mxu0 %v5878_v34  ;;  %994 = vmatpush.bf16.msra.mxu2 %v5922_v14 }
  0x6d   : > { %983 = vmatpush.bf16.msra.mxu1 %v5882_v35 }
  0x70   : > { %970 = vmatpush.bf16.msra.mxu0 %v5866_v40  ;;  %995 = vmatpush.bf16.msra.mxu2 %v5910_v19 }
  0x71   : > { %984 = vmatpush.bf16.msra.mxu1 %v5870_v41 }
  0x74   : > { %971 = vmatpush.bf16.msra.mxu0 %v5854_v46  ;;  %996 = vmatpush.bf16.msra.mxu2 %v5898_v22 }
  0x75   : > { %985 = vmatpush.bf16.msra.mxu1 %v5858_v49 }
  0x77   : > { %972 = vmatmul.bf16.vlgmr.msra.gmra.mxu0 %v7228_v50 }
  0x78   : > { %986 = vmatmul.bf16.vlgmr.msra.gmra.mxu1 %v7228_v50  ;;  %997 = vmatpush.bf16.msra.mxu2 %v5886_v25 }
  0x7c   : > { %998 = vmatpush.bf16.msra.mxu2 %v5874_v28 }
  0x80   : > { %999 = vmatpush.bf16.msra.mxu2 %v5862_v31 }
  0x83   : > { %1000 = vmatmul.bf16.vlgmr.msra.gmra.mxu2 %v7228_v50 }
  0xf4   : > { %v973_v54 = vpop.f32.mrf.mxu0 }
  0xf5   : > { %v7236_v55 = vadd.f32 %v973_v54, %v830_v52  ;;  %v987_v56 = vpop.f32.mrf.mxu1 }
  0xf6   : > { %v7238_v57 = vadd.f32 %v987_v56, %v831_v53 }
  0xf7   : > { %v7242_v58 = vmul.f32 %v7236_v55, %v7236_v55 }
  0xf8   : > { %v7246_v59 = vmul.f32 %v7238_v57, %v7238_v57 }
  0xf9   : > { %v1009_v60 = vsel %vm1008_vm0, %v7242_v58, 0.0 }
  0xfa   : > { %1771 = vrot.lane.b32.xlu2 %v7246_v59, %s6966_s29  ;;  %1010 = vadd.xlane.f32.xlu0 %v1009_v60  ;;  %v1041_v0 = vsel %vm1008_vm0, %v7246_v59, 0.0 }
  0xfc   : > { %v975_v63 = vpop.f32.mrf.mxu0 }
  0xfd   : > { %v989_v61 = vpop.f32.mrf.mxu1  ;;  %v7260_v2 = vadd.f32 %v975_v63, %v830_v52 }
  0xfe   : > { %v7252_v62 = vadd.f32 %v989_v61, %v831_v53 }
  0xff   : > { %v7268_v4 = vmul.f32 %v7260_v2, %v7260_v2 }
 0x100   : > { %v7258_v1 = vmul.f32 %v7252_v62, %v7252_v62 }
 0x101   : > { %v1012_v5 = vsel %vm1008_vm0, %v7268_v4, 0.0 }
 0x102   : > { %1733 = vrot.lane.b32.xlu2 %v7242_v58, %s6966_s29  ;;  %v1044_v3 = vsel %vm1008_vm0, %v7258_v1, 0.0  ;;  %1042 = vadd.xlane.f32.xlu0 %v1041_v0 }
 0x103   : > { %1045 = vadd.xlane.f32.xlu1 %v1044_v3 }
 0x10b   : > { %1013 = vadd.xlane.f32.xlu1 %v1012_v5 }
 0x124   : > { %1773 = vrot.lane.b32.xlu1 %v7258_v1, %s6966_s29 }
 0x154   : > { %v1772_v15 = vpop.permute.xlu2 %1771 }
 0x155   : > { %v1777_v18 = vsel %vm1008_vm0, %v1772_v15, 0.0 }
 0x156   : > { %1778 = vadd.xlane.f32.xlu1 %v1777_v18 }
 0x16d   : > { %v1011_v32 = vpop.xlane.xlu0 %1010 }
 0x16e   : > { %v1015_v33 = vmax.f32 %v1011_v32, 1e-24 }
 0x170   : > { %6494 = vrsqrt.f32 %v1015_v33  ;;  %vm1023_vm2 = vweird.f32 %v1015_v33 }
 0x175   : > { %v1043_v34 = vpop.xlane.xlu0 %1042 }
 0x176   : > { %v6495_v35 = vpop.eup %6494  ;;  %v1046_v36 = vpop.xlane.xlu1 %1045  ;;  %v1047_v37 = vmax.f32 %v1043_v34, 1e-24 }
 0x177   : > { %v1018_v38 = vmul.f32 %v6495_v35, %v1015_v33  ;;  %v1048_v39 = vmax.f32 %v1046_v36, 1e-24  ;;  %vm1024_vm1 = vweird.f32 %v6495_v35 }
 0x178   : > { %6496 = vrsqrt.f32 %v1047_v37  ;;  %vm1025_vm3 = vmor %vm1023_vm2, %vm1024_vm1  ;;  %vm1055_vm6 = vweird.f32 %v1047_v37  ;;  %vm1382_vm1 = vcmask 64512  }
 0x179   : > { %v1019_v40 = vmul.f32 %v6495_v35, %v1018_v38  ;;  %6498 = vrsqrt.f32 %v1048_v39  ;;  %vm1065_vm7 = vweird.f32 %v1048_v39 }
 0x17b   : > { %v1020_v41 = vmul.f32 0.5, %v1019_v40 }
 0x17d   : > { %v1021_v42 = vsub.f32 1.5, %v1020_v41 }
 0x17e   : > { %v6497_v43 = vpop.eup %6496  ;;  %v1014_v44 = vpop.xlane.xlu1 %1013 }
 0x17f   : > { %v6499_v45 = vpop.eup %6498  ;;  %v1022_v46 = vmul.f32 %v6495_v35, %v1021_v42  ;;  %v1050_v47 = vmul.f32 %v6497_v43, %v1047_v37  ;;  %v1016_v48 = vmax.f32 %v1014_v44, 1e-24  ;;  %vm1056_vm4 = vweird.f32 %v6497_v43 }
 0x180   : > { %v1060_v49 = vmul.f32 %v6499_v45, %v1048_v39  ;;  %vm1066_vm5 = vweird.f32 %v6499_v45  ;;  %vm1057_vm8 = vmor %vm1055_vm6, %vm1056_vm4 }
 0x181   : > { %v1026_v50 = vsel %vm1025_vm3, %v6495_v35, %v1022_v46  ;;  %v1051_v52 = vmul.f32 %v6497_v43, %v1050_v47  ;;  %6500 = vrsqrt.f32 %v1016_v48  ;;  %vm1067_vm9 = vmor %vm1065_vm7, %vm1066_vm5  ;;  %vm1033_vm11 = vweird.f32 %v1016_v48 }
 0x182   : > { %v1037_v53 = vmul.f32 %v1026_v50, %v7236_v55  ;;  %v1061_v54 = vmul.f32 %v6499_v45, %v1060_v49 }
 0x183   : > { %v1052_v56 = vmul.f32 0.5, %v1051_v52 }
 0x184   : > { %v1062_v60 = vmul.f32 0.5, %v1061_v54  ;;  %v1072_v61 = vsel %vm1008_vm0, %v1037_v53, 0  ;;  %v832_v53 = vperm.slane %v7232_v51, 2  ;;  %v1001_v54 = vpop.f32.mrf.mxu2 }
 0x185   : > { %v1053_v63 = vsub.f32 1.5, %v1052_v56  ;;  %v7278_v0 = vand.u32 4294901760, %v1072_v61 }
 0x186   : > { %v1063_v3 = vsub.f32 1.5, %v1062_v60  ;;  %v7297_v56 = vadd.f32 %v1001_v54, %v832_v53 }
 0x187   : > { %v6501_v5 = vpop.eup %6500  ;;  %v1054_v6 = vmul.f32 %v6497_v43, %v1053_v63  ;;  %v1095_v7 = vsub.f32 %v1072_v61, %v7278_v0 }
 0x188   : > { %v1064_v8 = vmul.f32 %v6499_v45, %v1063_v3  ;;  %v1028_v9 = vmul.f32 %v6501_v5, %v1016_v48  ;;  %vm1034_vm10 = vweird.f32 %v6501_v5  ;;  %v1449_v60 = vand.u32 4294901760, %v7297_v56 }
 0x189   : > { %v1058_v10 = vsel %vm1057_vm8, %v6497_v43, %v1054_v6  ;;  %v1096_v11 = vand.u32 4294901760, %v1095_v7  ;;  %vm1035_vm12 = vmor %vm1033_vm11, %vm1034_vm10 }
 0x18a   : > { %v1068_v12 = vsel %vm1067_vm9, %v6499_v45, %v1064_v8  ;;  %v1069_v13 = vmul.f32 %v1058_v10, %v7238_v57  ;;  %v1029_v14 = vmul.f32 %v6501_v5, %v1028_v9 }
 0x18b   : > { %v1070_v15 = vmul.f32 %v1068_v12, %v7252_v62  ;;  %v1097_v18 = vsub.f32 %v1095_v7, %v1096_v11  ;;  %v1376_v12 = vstv %s1375_s4  ;;  %s8283_s4 = sld [smem:[#allocation29_spill]] }
 0x18c   : > { %v1030_v16 = vmul.f32 0.5, %v1029_v14  ;;  %v1075_v17 = vsel %vm1008_vm0, %v1069_v13, 0 }
 0x18d   : > { %v1092_v19 = vand.u32 4294901760, %v1075_v17  ;;  %v1227_v20 = vsel %vm1008_vm0, %v1070_v15, 0  ;;  %v1098_v26 = vand.u32 4294901760, %v1097_v18  ;;  %v1379_v15 = vld [vmem:[%s8277_s12] sm:$0xff] }
 0x18e   : > { %v1031_v21 = vsub.f32 1.5, %v1030_v16  ;;  %v1244_v22 = vand.u32 4294901760, %v1227_v20 }
 0x18f   : > { %1093 = vmatpush.xpose.msra.mxu3 %v1092_v19  ;;  %v1119_v23 = vsub.f32 %v1075_v17, %v1092_v19 }
 0x190   : > { %v1032_v24 = vmul.f32 %v6501_v5, %v1031_v21  ;;  %1245 = vmatpush.xpose.msrb.mxu0 %v1244_v22  ;;  %v1271_v25 = vsub.f32 %v1227_v20, %v1244_v22 }
 0x191   : > { %v1120_v27 = vand.u32 4294901760, %v1119_v23  ;;  %s785_s28 = sand.u32 1, %s8283_s4  }
 0x192   : > { %1298 = vmatpush.xpose.msrb.mxu2 %v1271_v25  ;;  %1099 = vmatmul.f32.vlgmr.msra.gmra.mxu3 %v1098_v26  ;;  %v1272_v28 = vand.u32 4294901760, %v1271_v25  ;;  %v1036_v29 = vsel %vm1035_vm12, %v6501_v5, %v1032_v24  ;;  %s5848_s20 = sshll.u32 %s785_s28, 4 }
 0x193   : > { %v1121_v30 = vsub.f32 %v1119_v23, %v1120_v27  ;;  %v1038_v31 = vmul.f32 %v1036_v29, %v7260_v2 }
 0x194   : > { %1347 = vmatpush.xpose.msra.mxu0 %v1272_v28  ;;  %v1273_v32 = vsub.f32 %v1271_v25, %v1272_v28 }
 0x195   : > { %v1122_v33 = vand.u32 4294901760, %v1121_v30  ;;  %v1224_v34 = vsel %vm1008_vm0, %v1038_v31, 0 }
 0x196   : > { %v1274_v35 = vand.u32 4294901760, %v1273_v32  ;;  %v1246_v36 = vand.u32 4294901760, %v1224_v34  ;;  %v7290_v41 = vpop.permute.xlu1 %1773  ;;  %1450 = vmatpush.msra.mxu2 %v1449_v60 }
 0x197   : > { %1123 = vmatpush.xpose.msrb.mxu3 %v1122_v33  ;;  %v1780_v32 = vsel %vm1008_vm0, %v7290_v41, 0.0 }
 0x198   : > { %1275 = vmatpush.xpose.msrb.mxu1 %v1274_v35  ;;  %v1247_v37 = vsub.f32 %v1224_v34, %v1246_v36 }
 0x19a   : > { %1301 = vmatmul.f32.vlgmr.msrb.gmra.mxu2 %v1247_v37  ;;  %1125 = vmatmul.f32.vlgmr.msrb.gmra.mxu3 %v7278_v0  ;;  %v1248_v38 = vand.u32 4294901760, %v1247_v37 }
 0x19b   : > { %1146 = vmatpush.xpose.msra.mxu3 %v1119_v23  ;;  %1277 = vmatmul.f32.vlgmr.msrb.gmra.mxu1 %v1246_v36 }
 0x19c   : > { %1369 = vmatpush.xpose.msra.mxu1 %v1244_v22  ;;  %v1249_v39 = vsub.f32 %v1247_v37, %v1248_v38 }
 0x19e   : > { %v1250_v40 = vand.u32 4294901760, %v1249_v39 }
 0x19f   : > { %1169 = vmatpush.xpose.msrb.mxu3 %v1092_v19 }
 0x1a0   : > { %1251 = vmatmul.f32.vlgmr.msrb.gmra.mxu0 %v1250_v40  ;;  %1526 = vmatpush.msrb.mxu1 %v1449_v60 }
 0x1a2   : > { %1149 = vmatmul.f32.vlgmr.msra.gmra.mxu3 %v1095_v7  ;;  %v1003_v7 = vpop.f32.mrf.mxu2 }
 0x1a3   : > { %1195 = vmatpush.xpose.msra.mxu3 %v1120_v27  ;;  %1371 = vmatmul.f32.vlgmr.msra.gmra.mxu1 %v1246_v36  ;;  %v7316_v35 = vadd.f32 %v1003_v7, %v832_v53 }
 0x1a5   : > { %v7320_v37 = vand.u32 4294901760, %v7316_v35 }
 0x1a7   : > { %v7324_v39 = vsub.f32 %v7316_v35, %v7320_v37 }
 0x1a8   : > { %1349 = vmatmul.f32.vlgmr.msra.gmra.mxu0 %v1246_v36  ;;  %v1476_v36 = vsub.f32 %v7297_v56, %v1449_v60 }
 0x1a9   : > { %v1626_v41 = vand.u32 4294901760, %v7324_v39 }
 0x1aa   : > { %1173 = vmatmul.f32.vlgmr.msrb.gmra.mxu3 %v1096_v11  ;;  %1503 = vmatpush.msrb.mxu0 %v1476_v36 }
 0x1ab   : > { %1217 = vmatpush.xpose.msrb.mxu3 %v1092_v19 }
 0x1ac   : > { %1599 = vmatpush.msra.mxu0 %v7320_v37 }
 0x1b2   : > { %1197 = vmatmul.f32.vlgmr.msra.gmra.mxu3 %v7278_v0 }
 0x1b3   : > { %1321 = vmatpush.xpose.msra.mxu3 %v1244_v22 }
 0x1ba   : > { %1219 = vmatmul.f32.vlgmr.msrb.gmra.mxu3 %v7278_v0 }
 0x1c2   : > { %1325 = vmatmul.f32.vlgmr.msra.gmra.mxu3 %v1248_v38  ;;  %v1477_v38 = vand.u32 4294901760, %v1476_v36 }
 0x1c4   : > { %v1478_v40 = vsub.f32 %v1476_v36, %v1477_v38  ;;  %1552 = vmatpush.msrb.mxu2 %v1477_v38 }
 0x1c9   : > { %v1779_v42 = vpop.xlane.xlu1 %1778 }
 0x1ca   : > { %v1783_v43 = vmax.f32 %v1779_v42, 1e-24  ;;  %v1479_v42 = vand.u32 4294901760, %v1478_v40 }
 0x1cc   : > { %6502 = vrsqrt.f32 %v1783_v43  ;;  %vm1791_vm13 = vweird.f32 %v1783_v43  ;;  %1480 = vmatpush.msrb.mxu3 %v1479_v42 }
 0x1ce   : > { %1574 = vmatpush.msra.mxu3 %v1449_v60 }
 0x1d2   : > { %v6503_v44 = vpop.eup %6502 }
 0x1d3   : > { %v1786_v45 = vmul.f32 %v6503_v44, %v1783_v43  ;;  %vm1792_vm14 = vweird.f32 %v6503_v44  ;;  %v1627_v43 = vsub.f32 %v7324_v39, %v1626_v41 }
 0x1d4   : > { %vm1793_vm15 = vmor %vm1791_vm13, %vm1792_vm14 }
 0x1d5   : > { %v1787_v46 = vmul.f32 %v6503_v44, %v1786_v45  ;;  %v1734_v45 = vpop.permute.xlu2 %1733 }
 0x1d7   : > { %v1788_v47 = vmul.f32 0.5, %v1787_v46  ;;  %v1739_v46 = vsel %vm1008_vm0, %v1734_v45, 0.0 }
 0x1d9   : > { %v1789_v48 = vsub.f32 1.5, %v1788_v47 }
 0x1db   : > { %v1790_v49 = vmul.f32 %v6503_v44, %v1789_v48 }
 0x1dd   : > { %v1794_v50 = vsel %vm1793_vm15, %v6503_v44, %v1790_v49  ;;  %v1628_v44 = vand.u32 4294901760, %v1627_v43 }
 0x1de   : > { %v1805_v52 = vmul.f32 %v1794_v50, %v7238_v57 }
 0x1df   : > { %1629 = vmatpush.msra.mxu1 %v1628_v44 }
 0x1e0   : > { %1811 = vrot.lane.b32.xlu1 %v1805_v52, %s6966_s29 }
 0x1e8   : > { %2528 = vrot.lane.b32.xlu1 %v7246_v59, %s6967_s30 }
 0x1f0   : > { %2530 = vrot.lane.b32.xlu1 %v7258_v1, %s6967_s30 }
 0x1f8   : > { %2494 = vrot.lane.b32.xlu1 %v7268_v4, %s6967_s30 }
 0x215   : > { %v1100_v61 = vpop.f32.mrf.mxu3 }
 0x218   : > { %v1278_v14 = vpop.f32.mrf.mxu1 }
 0x21d   : > { %v1126_v63 = vpop.f32.mrf.mxu3  ;;  %v1252_v10 = vpop.f32.mrf.mxu0 }
 0x21e   : > { %v1127_v51 = vadd.f32 %v1126_v63, %v1100_v61  ;;  %v1279_v16 = vadd.f32 %v1278_v14, %v1252_v10  ;;  %v1302_v19 = vpop.f32.mrf.mxu2 }
 0x220   : > { %v1303_v20 = vadd.f32 %v1302_v19, %v1279_v16  ;;  %v1372_v26 = vpop.f32.mrf.mxu1 }
 0x225   : > { %v1150_v0 = vpop.f32.mrf.mxu3  ;;  %v1350_v24 = vpop.f32.mrf.mxu0 }
 0x226   : > { %v1151_v6 = vadd.f32 %v1150_v0, %v1127_v51 }
 0x22d   : > { %v1174_v3 = vpop.f32.mrf.mxu3 }
 0x22e   : > { %v1175_v8 = vadd.f32 %v1174_v3, %v1151_v6 }
 0x235   : > { %v1198_v5 = vpop.f32.mrf.mxu3 }
 0x236   : > { %v1199_v9 = vadd.f32 %v1198_v5, %v1175_v8 }
 0x23d   : > { %v1220_v11 = vpop.f32.mrf.mxu3 }
 0x23e   : > { %v1221_v13 = vadd.f32 %v1220_v11, %v1199_v9 }
 0x240   : > { %v1377_v17 = vmul.f32 %v1376_v12, %v1221_v13 }
 0x242   : > { %v1380_v18 = vadd.f32 %v1379_v15, %v1377_v17 }
 0x244   : > { %v1383_v21 = vsel %vm1382_vm1, %v1380_v18, -inf }
 0x245   : > { %v1326_v22 = vpop.f32.mrf.mxu3  ;;  %1384 = vmax.xlane.f32.xlu0 %v1383_v21 }
 0x246   : > { %v1327_v23 = vadd.f32 %v1326_v22, %v1303_v20 }
 0x248   : > { %v1351_v25 = vadd.f32 %v1350_v24, %v1327_v23 }
 0x24a   : > { %v1373_v27 = vadd.f32 %v1372_v26, %v1351_v25 }
 0x24c   : > { %v1378_v28 = vmul.f32 %v1376_v12, %v1373_v27 }
 0x24e   : > { %v1381_v29 = vadd.f32 %v1379_v15, %v1378_v28 }
 0x250   : > { %v1386_v30 = vsel %vm1382_vm1, %v1381_v29, -inf }
 0x251   : > { %1387 = vmax.xlane.f32.xlu2 %v1386_v30 }
 0x252   : > { %v7309_v31 = vpop.permute.xlu1 %1811 }
 0x253   : > { %v1815_v30 = vsel %vm1008_vm0, %v7309_v31, 0 }
 0x254   : > { %v7351_v36 = vand.u32 4294901760, %v1815_v30 }
 0x259   : > { %1781 = vadd.xlane.f32.xlu2 %v1780_v32  ;;  %1735 = vrot.lane.b32.xlu0 %v7268_v4, %s6966_s29 }
 0x25a   : > { %v2529_v33 = vpop.permute.xlu1 %2528 }
 0x25b   : > { %v2534_v34 = vsel %vm1008_vm0, %v2529_v33, 0.0 }
 0x25c   : > { %2535 = vadd.xlane.f32.xlu1 %v2534_v34 }
 0x275   : > { %2176 = vrot.lane.b32.xlu1 %v7297_v56, %s6966_s29 }
 0x283   : > { %1740 = vadd.xlane.f32.xlu0 %v1739_v46  ;;  %v7354_v46 = vsub.f32 %v1815_v30, %v7351_v36 }
 0x2b8   : > { %v1385_v47 = vpop.xlane.xlu0 %1384 }
 0x2b9   : > { %v1389_v48 = vsub.f32 %v1380_v18, %v1385_v47 }
 0x2bb   : > { %v1391_v49 = vmul.f32 1.442695, %v1389_v48 }
 0x2bd   : > { %6504 = vpow2.f32 %v1391_v49 }
 0x2c3   : > { %v7334_v50 = vpop.eup %6504 }
 0x2c4   : > { %v1388_v52 = vpop.xlane.xlu2 %1387  ;;  %v1395_v53 = vsel %vm1382_vm1, %v7334_v50, 0.0 }
 0x2c5   : > { %v1390_v54 = vsub.f32 %v1381_v29, %v1388_v52  ;;  %1396 = vadd.xlane.f32.xlu2 %v1395_v53  ;;  %v1860_v53 = vand.u32 4294901760, %v7354_v46 }
 0x2c7   : > { %v1393_v60 = vmul.f32 1.442695, %v1390_v54 }
 0x2c9   : > { %6506 = vpow2.f32 %v1393_v60 }
 0x2cb   : > { %v1736_v61 = vpop.permute.xlu0 %1735 }
 0x2cc   : > { %v1782_v63 = vpop.xlane.xlu2 %1781  ;;  %v1742_v0 = vsel %vm1008_vm0, %v1736_v61, 0.0 }
 0x2cd   : > { %v1784_v3 = vmax.f32 %v1782_v63, 1e-24  ;;  %1743 = vadd.xlane.f32.xlu2 %v1742_v0 }
 0x2cf   : > { %6508 = vrsqrt.f32 %v1784_v3  ;;  %v7339_v5 = vpop.eup %6506  ;;  %vm1801_vm3 = vweird.f32 %v1784_v3 }
 0x2d0   : > { %v1398_v51 = vsel %vm1382_vm1, %v7339_v5, 0.0 }
 0x2d5   : > { %v6509_v6 = vpop.eup %6508  ;;  %1399 = vadd.xlane.f32.xlu2 %v1398_v51 }
 0x2d6   : > { %v1796_v7 = vmul.f32 %v6509_v6, %v1784_v3  ;;  %vm1802_vm2 = vweird.f32 %v6509_v6 }
 0x2d7   : > { %vm1803_vm4 = vmor %vm1801_vm3, %vm1802_vm2 }
 0x2d8   : > { %v1797_v8 = vmul.f32 %v6509_v6, %v1796_v7 }
 0x2da   : > { %v1798_v9 = vmul.f32 0.5, %v1797_v8 }
 0x2dc   : > { %v1799_v10 = vsub.f32 1.5, %v1798_v9 }
 0x2de   : > { %v1800_v11 = vmul.f32 %v6509_v6, %v1799_v10 }
 0x2e0   : > { %v1804_v12 = vsel %vm1803_vm4, %v6509_v6, %v1800_v11 }
 0x2e1   : > { %v1806_v13 = vmul.f32 %v1804_v12, %v7252_v62 }
 0x2ed   : > { %1967 = vrot.lane.b32.xlu2 %v1806_v13, %s6966_s29 }
 0x2f5   : > { %2492 = vrot.lane.b32.xlu2 %v7242_v58, %s6967_s30 }
 0x2f6   : > { %v1741_v14 = vpop.xlane.xlu0 %1740 }
 0x2f7   : > { %v1745_v15 = vmax.f32 %v1741_v14, 1e-24 }
 0x2f9   : > { %6510 = vrsqrt.f32 %v1745_v15  ;;  %vm1753_vm6 = vweird.f32 %v1745_v15 }
 0x2ff   : > { %v6511_v16 = vpop.eup %6510 }
 0x300   : > { %v1748_v17 = vmul.f32 %v6511_v16, %v1745_v15  ;;  %vm1754_vm5 = vweird.f32 %v6511_v16 }
 0x301   : > { %vm1755_vm7 = vmor %vm1753_vm6, %vm1754_vm5 }
 0x302   : > { %v1749_v18 = vmul.f32 %v6511_v16, %v1748_v17 }
 0x304   : > { %v1750_v19 = vmul.f32 0.5, %v1749_v18 }
 0x306   : > { %v1751_v20 = vsub.f32 1.5, %v1750_v19 }
 0x308   : > { %v1752_v21 = vmul.f32 %v6511_v16, %v1751_v20 }
 0x30a   : > { %v1756_v22 = vsel %vm1755_vm7, %v6511_v16, %v1752_v21 }
 0x30b   : > { %v1767_v23 = vmul.f32 %v1756_v22, %v7236_v55 }
 0x30d   : > { %1808 = vrot.lane.b32.xlu0 %v1767_v23, %s6966_s29  ;;  %v7372_v23 = vpop.permute.xlu1 %2530 }
 0x338   : > { %v1397_v24 = vpop.xlane.xlu2 %1396 }
 0x339   : > { %6512 = vrcp.f32 %v1397_v24  ;;  %v1412_v32 = vand.u32 2147483648, %v1397_v24  ;;  %v1410_v34 = vand.u32 2147483647, %v1397_v24  ;;  %vm1406_vm9 = vweird.f32 %v1397_v24 }
 0x33b   : > { %v1413_v40 = vor.u32 1.1754944e-38, %v1412_v32  ;;  %vm1411_vm11 = vcmp.eq.f32.partialorder %v1410_v34, 8.507059e+37 }
 0x33f   : > { %v6513_v25 = vpop.eup %6512 }
 0x340   : > { %v1402_v26 = vmul.f32 %v6513_v25, %v1397_v24  ;;  %v1744_v27 = vpop.xlane.xlu2 %1743  ;;  %vm1407_vm8 = vweird.f32 %v6513_v25 }
 0x341   : > { %v1746_v28 = vmax.f32 %v1744_v27, 1e-24  ;;  %vm1408_vm10 = vmor %vm1406_vm9, %vm1407_vm8 }
 0x342   : > { %v1403_v29 = vsub.f32 1.0, %v1402_v26 }
 0x343   : > { %6514 = vrsqrt.f32 %v1746_v28  ;;  %vm1763_vm13 = vweird.f32 %v1746_v28 }
 0x344   : > { %v1404_v33 = vmul.f32 %v6513_v25, %v1403_v29  ;;  %v7377_v29 = vpop.permute.xlu1 %2494 }
 0x346   : > { %v1405_v38 = vadd.f32 %v6513_v25, %v1404_v33 }
 0x348   : > { %v1409_v42 = vsel %vm1408_vm10, %v6513_v25, %v1405_v38  ;;  %v1400_v43 = vpop.xlane.xlu2 %1399 }
 0x349   : > { %v6515_v44 = vpop.eup %6514  ;;  %v1414_v45 = vsel %vm1411_vm11, %v1413_v40, %v1409_v42  ;;  %6516 = vrcp.f32 %v1400_v43  ;;  %v1425_v8 = vand.u32 2147483647, %v1400_v43  ;;  %v1427_v9 = vand.u32 2147483648, %v1400_v43 }
 0x34a   : > { %v1758_v31 = vmul.f32 %v6515_v44, %v1746_v28  ;;  %v1415_v47 = vmul.f32 %v7334_v50, %v1414_v45  ;;  %vm1764_vm12 = vweird.f32 %v6515_v44  ;;  %v1861_v50 = vsub.f32 %v7354_v46, %v1860_v53 }
 0x34b   : > { %vm1765_vm14 = vmor %vm1763_vm13, %vm1764_vm12  ;;  %vm1421_vm2 = vweird.f32 %v1400_v43  ;;  %vm1426_vm4 = vcmp.eq.f32.partialorder %v1425_v8, 8.507059e+37 }
 0x34c   : > { %v1759_v48 = vmul.f32 %v6515_v44, %v1758_v31  ;;  %v1432_v49 = vsel %vm1382_vm1, %v1415_v47, 0  ;;  %v1862_v16 = vand.u32 4294901760, %v1861_v50  ;;  %v7382_v32 = vpop.xlane.xlu1 %2535 }
 0x34d   : > { %v1451_v52 = vand.u32 4294901760, %v1432_v49 }
 0x34e   : > { %v1760_v54 = vmul.f32 0.5, %v1759_v48 }
 0x34f   : > { %v6517_v60 = vpop.eup %6516  ;;  %1482 = vmatmul.f32.vlgmr.msrb.gmra.mxu3 %v1451_v52  ;;  %v1452_v61 = vsub.f32 %v1432_v49, %v1451_v52 }
 0x350   : > { %v1761_v63 = vsub.f32 1.5, %v1760_v54  ;;  %v1417_v0 = vmul.f32 %v6517_v60, %v1400_v43  ;;  %1675 = vmatpush.msrb.mxu3 %v7320_v37  ;;  %v1968_v3 = vpop.permute.xlu2 %1967  ;;  %vm1422_vm15 = vweird.f32 %v6517_v60 }
 0x351   : > { %1506 = vmatmul.f32.vlgmr.msrb.gmra.mxu0 %v1452_v61  ;;  %v1453_v51 = vand.u32 4294901760, %v1452_v61  ;;  %v1971_v12 = vsel %vm1008_vm0, %v1968_v3, 0  ;;  %vm1423_vm3 = vmor %vm1421_vm2, %vm1422_vm15 }
 0x352   : > { %v1418_v6 = vsub.f32 1.0, %v1417_v0  ;;  %1701 = vmatpush.msrb.mxu0 %v1626_v41  ;;  %v1762_v7 = vmul.f32 %v6515_v44, %v1761_v63  ;;  %v1428_v41 = vor.u32 1.1754944e-38, %v1427_v9  ;;  %v1988_v18 = vand.u32 4294901760, %v1971_v12 }
 0x353   : > { %1530 = vmatmul.f32.vlgmr.msrb.gmra.mxu1 %v1453_v51  ;;  %v1454_v10 = vsub.f32 %v1452_v61, %v1453_v51 }
 0x354   : > { %v1419_v11 = vmul.f32 %v6517_v60, %v1418_v6  ;;  %1723 = vmatpush.msrb.mxu1 %v7320_v37  ;;  %v1766_v13 = vsel %vm1765_vm14, %v6515_v44, %v1762_v7  ;;  %v2015_v21 = vsub.f32 %v1971_v12, %v1988_v18  ;;  %v2177_v33 = vpop.permute.xlu1 %2176 }
 0x355   : > { %v1455_v14 = vand.u32 4294901760, %v1454_v10  ;;  %v1768_v15 = vmul.f32 %v1766_v13, %v7260_v2  ;;  %v2197_v34 = vand.u32 4294901760, %v2177_v33 }
 0x356   : > { %v1420_v17 = vadd.f32 %v6517_v60, %v1419_v11  ;;  %v2016_v25 = vand.u32 4294901760, %v2015_v21 }
 0x357   : > { %1456 = vmatmul.f32.vlgmr.msra.gmra.mxu2 %v1455_v14  ;;  %1576 = vmatmul.f32.vlgmr.msra.gmra.mxu3 %v1451_v52 }
 0x358   : > { %v1424_v19 = vsel %vm1423_vm3, %v6517_v60, %v1420_v17  ;;  %1652 = vmatpush.msra.mxu2 %v7324_v39  ;;  %1863 = vmatpush.xpose.msra.mxu3 %v1862_v16  ;;  %v2017_v27 = vsub.f32 %v2015_v21, %v2016_v25 }
 0x359   : > { %v1429_v20 = vsel %vm1426_vm4, %v1428_v41, %v1424_v19  ;;  %1964 = vrot.lane.b32.xlu0 %v1768_v15, %s6966_s29 }
 0x35a   : > { %v1430_v37 = vmul.f32 %v7339_v5, %v1429_v20  ;;  %v2018_v30 = vand.u32 4294901760, %v2017_v27 }
 0x35c   : > { %v1581_v22 = vsel %vm1382_vm1, %v1430_v37, 0 }
 0x35d   : > { %v1600_v24 = vand.u32 4294901760, %v1581_v22 }
 0x35f   : > { %1554 = vmatmul.f32.vlgmr.msrb.gmra.mxu2 %v1451_v52  ;;  %v1601_v26 = vsub.f32 %v1581_v22, %v1600_v24  ;;  %1631 = vmatmul.f32.vlgmr.msra.gmra.mxu1 %v1600_v24 }
 0x360   : > { %1833 = vmatpush.xpose.msrb.mxu2 %v7351_v36  ;;  %1909 = vmatpush.xpose.msra.mxu1 %v7351_v36 }
 0x361   : > { %v1602_v39 = vand.u32 4294901760, %v1601_v26 }
 0x363   : > { %1679 = vmatmul.f32.vlgmr.msrb.gmra.mxu3 %v1602_v39  ;;  %v1603_v28 = vsub.f32 %v1601_v26, %v1602_v39 }
 0x364   : > { %1957 = vmatpush.xpose.msrb.mxu3 %v7351_v36  ;;  %v2224_v36 = vsub.f32 %v2177_v33, %v2197_v34 }
 0x365   : > { %v1604_v5 = vand.u32 4294901760, %v1603_v28 }
 0x366   : > { %v2225_v43 = vand.u32 4294901760, %v2224_v36 }
 0x367   : > { %1605 = vmatmul.f32.vlgmr.msra.gmra.mxu0 %v1604_v5  ;;  %1655 = vmatmul.f32.vlgmr.msra.gmra.mxu2 %v1601_v26 }
 0x368   : > { %1725 = vmatmul.f32.vlgmr.msrb.gmra.mxu1 %v1600_v24  ;;  %1886 = vmatpush.xpose.msra.mxu0 %v7354_v46  ;;  %v2226_v46 = vsub.f32 %v2224_v36, %v2225_v43 }
 0x369   : > { %1935 = vmatpush.xpose.msra.mxu2 %v1860_v53  ;;  %2019 = vmatpush.xpose.msrb.mxu1 %v2018_v30 }
 0x36a   : > { %v2227_v48 = vand.u32 4294901760, %v2226_v46  ;;  %v2537_v46 = vsel %vm1008_vm0, %v7372_v23, 0.0  ;;  %v2501_v23 = vsel %vm1008_vm0, %v7377_v29, 0.0 }
 0x36f   : > { %1703 = vmatmul.f32.vlgmr.msrb.gmra.mxu0 %v1600_v24 }
 0x370   : > { %1989 = vmatpush.xpose.msrb.mxu0 %v1988_v18 }
 0x37f   : > { %v1809_v38 = vpop.permute.xlu0 %1808 }
 0x380   : > { %v1813_v40 = vsel %vm1008_vm0, %v1809_v38, 0  ;;  %v5948_v38 = vld [vmem:[%s8277_s12 + $0x8] sm:$0xff] }
 0x381   : > { %v1834_v42 = vand.u32 4294901760, %v1813_v40 }
 0x383   : > { %v1835_v44 = vsub.f32 %v1813_v40, %v1834_v42  ;;  %1865 = vmatmul.f32.vlgmr.msra.gmra.mxu3 %v1834_v42 }
 0x384   : > { %2065 = vmatpush.xpose.msra.mxu3 %v1988_v18 }
 0x385   : > { %v1836_v45 = vand.u32 4294901760, %v1835_v44  ;;  %1889 = vmatmul.f32.vlgmr.msra.gmra.mxu0 %v1835_v44 }
 0x386   : > { %2091 = vmatpush.xpose.msra.mxu0 %v2016_v25 }
 0x387   : > { %v1837_v31 = vsub.f32 %v1835_v44, %v1836_v45  ;;  %1913 = vmatmul.f32.vlgmr.msra.gmra.mxu1 %v1836_v45  ;;  %v2493_v44 = vpop.permute.xlu2 %2492 }
 0x388   : > { %2113 = vmatpush.xpose.msra.mxu1 %v1988_v18  ;;  %v2498_v45 = vsel %vm1008_vm0, %v2493_v44, 0.0 }
 0x389   : > { %v1838_v47 = vand.u32 4294901760, %v1837_v31 }
 0x38b   : > { %1839 = vmatmul.f32.vlgmr.msrb.gmra.mxu2 %v1838_v47  ;;  %1959 = vmatmul.f32.vlgmr.msrb.gmra.mxu3 %v1834_v42 }
 0x38c   : > { %2042 = vmatpush.xpose.msrb.mxu2 %v2015_v21  ;;  %2228 = vmatpush.msrb.mxu3 %v2227_v48 }
 0x393   : > { %1937 = vmatmul.f32.vlgmr.msra.gmra.mxu2 %v1834_v42 }
 0x394   : > { %2198 = vmatpush.msra.mxu2 %v2197_v34 }
 0x3cb   : > { %v1965_v49 = vpop.permute.xlu0 %1964 }
 0x3cc   : > { %v1969_v52 = vsel %vm1008_vm0, %v1965_v49, 0 }
 0x3cd   : > { %v1990_v53 = vand.u32 4294901760, %v1969_v52 }
 0x3ce   : > { %v1507_v50 = vpop.f32.mrf.mxu0 }
 0x3cf   : > { %v1991_v54 = vsub.f32 %v1969_v52, %v1990_v53  ;;  %2021 = vmatmul.f32.vlgmr.msrb.gmra.mxu1 %v1990_v53 }
 0x3d0   : > { %2274 = vmatpush.msrb.mxu1 %v2197_v34  ;;  %v1531_v7 = vpop.f32.mrf.mxu1 }
 0x3d1   : > { %v1992_v60 = vand.u32 4294901760, %v1991_v54  ;;  %2045 = vmatmul.f32.vlgmr.msrb.gmra.mxu2 %v1991_v54 }
 0x3d2   : > { %2300 = vmatpush.msrb.mxu2 %v2225_v43  ;;  %v1483_v0 = vpop.f32.mrf.mxu3 }
 0x3d3   : > { %v1993_v61 = vsub.f32 %v1991_v54, %v1992_v60  ;;  %2069 = vmatmul.f32.vlgmr.msra.gmra.mxu3 %v1992_v60 }
 0x3d4   : > { %2322 = vmatpush.msra.mxu3 %v2197_v34  ;;  %v2120_v34 = vstv %s5947_s3  ;;  %s6343_s3 = sshll.u32 %s7108_s0, 4  ;;  %s5658_s0 = scalar_lea.sflag [#allocation6], %s785_s28 }
 0x3d5   : > { %v1994_v63 = vand.u32 4294901760, %v1993_v61 }
 0x3d7   : > { %1995 = vmatmul.f32.vlgmr.msrb.gmra.mxu0 %v1994_v63  ;;  %2115 = vmatmul.f32.vlgmr.msra.gmra.mxu1 %v1990_v53 }
 0x3d8   : > { %2251 = vmatpush.msrb.mxu0 %v2224_v36 }
 0x3da   : > { %v1457_v3 = vpop.f32.mrf.mxu2  ;;  %v1577_v11 = vpop.f32.mrf.mxu3 }
 0x3db   : > { %v1484_v51 = vadd.f32 %v1483_v0, %v1457_v3 }
 0x3dc   : > { %v1632_v14 = vpop.f32.mrf.mxu1 }
 0x3dd   : > { %v1508_v6 = vadd.f32 %v1507_v50, %v1484_v51 }
 0x3df   : > { %2093 = vmatmul.f32.vlgmr.msra.gmra.mxu0 %v1990_v53  ;;  %v1532_v8 = vadd.f32 %v1531_v7, %v1508_v6 }
 0x3e2   : > { %v1555_v9 = vpop.f32.mrf.mxu2 }
 0x3e3   : > { %v1556_v10 = vadd.f32 %v1555_v9, %v1532_v8 }
 0x3e4   : > { %v1606_v12 = vpop.f32.mrf.mxu0 }
 0x3e5   : > { %v1578_v13 = vadd.f32 %v1577_v11, %v1556_v10  ;;  %v1633_v15 = vadd.f32 %v1632_v14, %v1606_v12  ;;  %v1726_v37 = vpop.f32.mrf.mxu1 }
 0x3e6   : > { %v1680_v41 = vpop.f32.mrf.mxu3 }
 0x3e7   : > { %1729 = vst.msk [vmem:[#allocation2] sm:$0xff] %vm1008_vm0, %v1578_v13 }
 0x3ea   : > { %v1656_v16 = vpop.f32.mrf.mxu2 }
 0x3eb   : > { %v1657_v17 = vadd.f32 %v1656_v16, %v1633_v15 }
 0x3ec   : > { %v1704_v19 = vpop.f32.mrf.mxu0 }
 0x3ed   : > { %v1681_v18 = vadd.f32 %v1680_v41, %v1657_v17 }
 0x3ef   : > { %v1705_v20 = vadd.f32 %v1704_v19, %v1681_v18  ;;  %v2540_v19 = vmax.f32 %v7382_v32, 1e-24 }
 0x3f1   : > { %v1727_v21 = vadd.f32 %v1726_v37, %v1705_v20  ;;  %vm2548_vm10 = vweird.f32 %v2540_v19 }
 0x3f3   : > { %1730 = vst.msk [vmem:[#allocation2 + $0x8] sm:$0xff] %vm1008_vm0, %v1727_v21 }
 0x402   : > { %v1890_v26 = vpop.f32.mrf.mxu0 }
 0x404   : > { %v1914_v27 = vpop.f32.mrf.mxu1 }
 0x406   : > { %v1866_v22 = vpop.f32.mrf.mxu3 }
 0x40e   : > { %v1840_v24 = vpop.f32.mrf.mxu2  ;;  %v1960_v33 = vpop.f32.mrf.mxu3 }
 0x40f   : > { %v1867_v25 = vadd.f32 %v1866_v22, %v1840_v24 }
 0x411   : > { %v1891_v39 = vadd.f32 %v1890_v26, %v1867_v25 }
 0x413   : > { %v1915_v28 = vadd.f32 %v1914_v27, %v1891_v39 }
 0x416   : > { %v1938_v5 = vpop.f32.mrf.mxu2 }
 0x417   : > { %v1939_v30 = vadd.f32 %v1938_v5, %v1915_v28 }
 0x419   : > { %v1961_v36 = vadd.f32 %v1960_v33, %v1939_v30 }
 0x41b   : > { %v2121_v40 = vmul.f32 %v2120_v34, %v1961_v36 }
 0x41d   : > { %v2125_v42 = vadd.f32 %v5948_v38, %v2121_v40 }
 0x41f   : > { %v2127_v43 = vsel %vm1382_vm1, %v2125_v42, -inf }
 0x420   : > { %2128 = vmax.xlane.f32.xlu0 %v2127_v43 }
 0x428   : > { %2499 = vadd.xlane.f32.xlu0 %v2498_v45 }
 0x430   : > { %2538 = vadd.xlane.f32.xlu0 %v2537_v46 }
 0x44c   : > { %v2022_v31 = vpop.f32.mrf.mxu1 }
 0x454   : > { %v1996_v47 = vpop.f32.mrf.mxu0  ;;  %v2046_v49 = vpop.f32.mrf.mxu2 }
 0x455   : > { %v2023_v48 = vadd.f32 %v2022_v31, %v1996_v47  ;;  %v2116_v63 = vpop.f32.mrf.mxu1 }
 0x456   : > { %v2070_v53 = vpop.f32.mrf.mxu3 }
 0x457   : > { %v2047_v52 = vadd.f32 %v2046_v49, %v2023_v48 }
 0x459   : > { %v2071_v54 = vadd.f32 %v2070_v53, %v2047_v52 }
 0x45c   : > { %v2094_v60 = vpop.f32.mrf.mxu0 }
 0x45d   : > { %v2095_v61 = vadd.f32 %v2094_v60, %v2071_v54 }
 0x45f   : > { %v2117_v0 = vadd.f32 %v2116_v63, %v2095_v61 }
 0x461   : > { %v2122_v3 = vmul.f32 %v2120_v34, %v2117_v0 }
 0x463   : > { %v2126_v51 = vadd.f32 %v5948_v38, %v2122_v3 }
 0x465   : > { %v2130_v50 = vsel %vm1382_vm1, %v2126_v51, -inf }
 0x466   : > { %2131 = vmax.xlane.f32.xlu2 %v2130_v50 }
 0x46e   : > { %2502 = vadd.xlane.f32.xlu2 %v2501_v23 }
 0x493   : > { %v2129_v6 = vpop.xlane.xlu0 %2128 }
 0x494   : > { %v2133_v7 = vsub.f32 %v2125_v42, %v2129_v6 }
 0x496   : > { %v2135_v8 = vmul.f32 1.442695, %v2133_v7 }
 0x498   : > { %6518 = vpow2.f32 %v2135_v8 }
 0x49b   : > { %v2500_v9 = vpop.xlane.xlu0 %2499 }
 0x49c   : > { %v2504_v10 = vmax.f32 %v2500_v9, 1e-24 }
 0x49e   : > { %v7398_v11 = vpop.eup %6518  ;;  %6520 = vrsqrt.f32 %v2504_v10  ;;  %vm2512_vm6 = vweird.f32 %v2504_v10 }
 0x49f   : > { %v2139_v12 = vsel %vm1382_vm1, %v7398_v11, 0.0  ;;  %6522 = vrsqrt.f32 %v2540_v19 }
 0x4a0   : > { %2140 = vadd.xlane.f32.xlu2 %v2139_v12 }
 0x4a3   : > { %v2539_v20 = vpop.xlane.xlu0 %2538 }
 0x4a4   : > { %v6521_v13 = vpop.eup %6520  ;;  %v2541_v22 = vmax.f32 %v2539_v20, 1e-24 }
 0x4a5   : > { %v2507_v14 = vmul.f32 %v6521_v13, %v2504_v10  ;;  %vm2513_vm5 = vweird.f32 %v6521_v13  ;;  %v6523_v25 = vpop.eup %6522 }
 0x4a6   : > { %vm2514_vm7 = vmor %vm2512_vm6, %vm2513_vm5  ;;  %v2543_v26 = vmul.f32 %v6523_v25, %v2540_v19  ;;  %vm2549_vm8 = vweird.f32 %v6523_v25  ;;  %vm2558_vm15 = vweird.f32 %v2541_v22 }
 0x4a7   : > { %v2508_v15 = vmul.f32 %v6521_v13, %v2507_v14  ;;  %vm2550_vm11 = vmor %vm2548_vm10, %vm2549_vm8 }
 0x4a9   : > { %v2509_v16 = vmul.f32 0.5, %v2508_v15 }
 0x4ab   : > { %v2510_v17 = vsub.f32 1.5, %v2509_v16 }
 0x4ad   : > { %v2511_v29 = vmul.f32 %v6521_v13, %v2510_v17 }
 0x4af   : > { %v2515_v41 = vsel %vm2514_vm7, %v6521_v13, %v2511_v29 }
 0x4b0   : > { %v2526_v18 = vmul.f32 %v2515_v41, %v7236_v55 }
 0x4b2   : > { %2565 = vrot.lane.b32.xlu1 %v2526_v18, %s6967_s30 }
 0x4b8   : > { %2329 = vrot.lane.b32.xlu2 %v7316_v35, %s6966_s29 }
 0x4ba   : > { %3283 = vrot.lane.b32.xlu1 %v7246_v59, %s6968_s25 }
 0x4c2   : > { %3285 = vrot.lane.b32.xlu1 %v7258_v1, %s6968_s25  ;;  %v2544_v1 = vmul.f32 %v6523_v25, %v2543_v26 }
 0x4c4   : > { %v2545_v28 = vmul.f32 0.5, %v2544_v1 }
 0x4c6   : > { %v2546_v34 = vsub.f32 1.5, %v2545_v28 }
 0x4c8   : > { %v2547_v44 = vmul.f32 %v6523_v25, %v2546_v34 }
 0x4ca   : > { %3249 = vrot.lane.b32.xlu1 %v7268_v4, %s6968_s25  ;;  %v2551_v47 = vsel %vm2550_vm11, %v6523_v25, %v2547_v44 }
 0x4cb   : > { %v2562_v49 = vmul.f32 %v2551_v47, %v7238_v57 }
 0x4d9   : > { %v2132_v37 = vpop.xlane.xlu2 %2131 }
 0x4da   : > { %v2134_v21 = vsub.f32 %v2126_v51, %v2132_v37 }
 0x4dc   : > { %v2137_v24 = vmul.f32 1.442695, %v2134_v21 }
 0x4de   : > { %6524 = vpow2.f32 %v2137_v24 }
 0x4df   : > { %6526 = vrsqrt.f32 %v2541_v22 }
 0x4e1   : > { %v2503_v39 = vpop.xlane.xlu2 %2502 }
 0x4e2   : > { %v2505_v59 = vmax.f32 %v2503_v39, 1e-24 }
 0x4e4   : > { %v7413_v27 = vpop.eup %6524  ;;  %6528 = vrsqrt.f32 %v2505_v59  ;;  %vm2522_vm12 = vweird.f32 %v2505_v59 }
 0x4e5   : > { %v2142_v4 = vsel %vm1382_vm1, %v7413_v27, 0.0  ;;  %v6527_v32 = vpop.eup %6526 }
 0x4e6   : > { %2143 = vadd.xlane.f32.xlu0 %v2142_v4  ;;  %v2553_v5 = vmul.f32 %v6527_v32, %v2541_v22  ;;  %vm2559_vm14 = vweird.f32 %v6527_v32 }
 0x4e7   : > { %vm2560_vm2 = vmor %vm2558_vm15, %vm2559_vm14 }
 0x4e8   : > { %v2554_v36 = vmul.f32 %v6527_v32, %v2553_v5 }
 0x4ea   : > { %v6529_v30 = vpop.eup %6528  ;;  %v2555_v42 = vmul.f32 0.5, %v2554_v36 }
 0x4eb   : > { %v2517_v33 = vmul.f32 %v6529_v30, %v2505_v59  ;;  %vm2523_vm9 = vweird.f32 %v6529_v30 }
 0x4ec   : > { %vm2524_vm13 = vmor %vm2522_vm12, %vm2523_vm9  ;;  %v2556_v46 = vsub.f32 1.5, %v2555_v42 }
 0x4ed   : > { %v2518_v38 = vmul.f32 %v6529_v30, %v2517_v33 }
 0x4ee   : > { %v2557_v52 = vmul.f32 %v6527_v32, %v2556_v46 }
 0x4ef   : > { %v2519_v40 = vmul.f32 0.5, %v2518_v38 }
 0x4f0   : > { %v2561_v53 = vsel %vm2560_vm2, %v6527_v32, %v2557_v52 }
 0x4f1   : > { %v2520_v43 = vsub.f32 1.5, %v2519_v40  ;;  %v2563_v54 = vmul.f32 %v2561_v53, %v7252_v62 }
 0x4f3   : > { %v2521_v45 = vmul.f32 %v6529_v30, %v2520_v43 }
 0x4f5   : > { %v2525_v31 = vsel %vm2524_vm13, %v6529_v30, %v2521_v45 }
 0x4f6   : > { %v2527_v48 = vmul.f32 %v2525_v31, %v7260_v2 }
 0x4f8   : > { %2721 = vrot.lane.b32.xlu2 %v2527_v48, %s6967_s30 }
 0x4fa   : > { %2568 = vrot.lane.b32.xlu0 %v2562_v49, %s6967_s30 }
 0x502   : > { %2724 = vrot.lane.b32.xlu0 %v2563_v54, %s6967_s30 }
 0x50a   : > { %3247 = vrot.lane.b32.xlu0 %v7242_v58, %s6968_s25 }
 0x513   : > { %v2141_v60 = vpop.xlane.xlu2 %2140 }
 0x514   : > { %6530 = vrcp.f32 %v2141_v60  ;;  %v2156_v50 = vand.u32 2147483648, %v2141_v60  ;;  %v2154_v7 = vand.u32 2147483647, %v2141_v60  ;;  %vm2150_vm4 = vweird.f32 %v2141_v60 }
 0x516   : > { %v2157_v10 = vor.u32 1.1754944e-38, %v2156_v50  ;;  %vm2155_vm6 = vcmp.eq.f32.partialorder %v2154_v7, 8.507059e+37 }
 0x51a   : > { %v6531_v61 = vpop.eup %6530 }
 0x51b   : > { %v2146_v63 = vmul.f32 %v6531_v61, %v2141_v60  ;;  %v2330_v0 = vpop.permute.xlu2 %2329  ;;  %vm2151_vm3 = vweird.f32 %v6531_v61 }
 0x51c   : > { %v2350_v3 = vand.u32 4294901760, %v2330_v0  ;;  %vm2152_vm5 = vmor %vm2150_vm4, %vm2151_vm3 }
 0x51d   : > { %v2147_v51 = vsub.f32 1.0, %v2146_v63 }
 0x51e   : > { %v2377_v23 = vsub.f32 %v2330_v0, %v2350_v3  ;;  %2351 = vmatpush.msra.mxu0 %v2350_v3 }
 0x51f   : > { %v2148_v6 = vmul.f32 %v6531_v61, %v2147_v51 }
 0x520   : > { %v2378_v8 = vand.u32 4294901760, %v2377_v23 }
 0x521   : > { %v2149_v9 = vadd.f32 %v6531_v61, %v2148_v6 }
 0x522   : > { %v2379_v12 = vsub.f32 %v2377_v23, %v2378_v8 }
 0x523   : > { %v2153_v58 = vsel %vm2152_vm5, %v6531_v61, %v2149_v9 }
 0x524   : > { %v2158_v13 = vsel %vm2155_vm6, %v2157_v10, %v2153_v58  ;;  %v2380_v14 = vand.u32 4294901760, %v2379_v12  ;;  %v2566_v15 = vpop.permute.xlu1 %2565 }
 0x525   : > { %v2159_v16 = vmul.f32 %v7398_v11, %v2158_v13  ;;  %v2570_v39 = vsel %vm1008_vm0, %v2566_v15, 0 }
 0x526   : > { %2381 = vmatpush.msra.mxu1 %v2380_v14  ;;  %v2591_v32 = vand.u32 4294901760, %v2570_v39 }
 0x527   : > { %v2180_v17 = vsel %vm1382_vm1, %v2159_v16, 0 }
 0x528   : > { %v2199_v29 = vand.u32 4294901760, %v2180_v17  ;;  %v2592_v34 = vsub.f32 %v2570_v39, %v2591_v32 }
 0x52a   : > { %2230 = vmatmul.f32.vlgmr.msrb.gmra.mxu3 %v2199_v29  ;;  %v2200_v41 = vsub.f32 %v2180_v17, %v2199_v29  ;;  %v2593_v44 = vand.u32 4294901760, %v2592_v34 }
 0x52b   : > { %2427 = vmatpush.msrb.mxu3 %v2350_v3 }
 0x52c   : > { %2254 = vmatmul.f32.vlgmr.msrb.gmra.mxu0 %v2200_v41  ;;  %v3284_v18 = vpop.permute.xlu1 %3283  ;;  %v2201_v19 = vand.u32 4294901760, %v2200_v41  ;;  %v2594_v48 = vsub.f32 %v2592_v34, %v2593_v44 }
 0x52d   : > { %2453 = vmatpush.msrb.mxu0 %v2378_v8  ;;  %v3289_v20 = vsel %vm1008_vm0, %v3284_v18, 0.0 }
 0x52e   : > { %2278 = vmatmul.f32.vlgmr.msrb.gmra.mxu1 %v2201_v19  ;;  %3290 = vadd.xlane.f32.xlu1 %v3289_v20  ;;  %v2202_v37 = vsub.f32 %v2200_v41, %v2201_v19  ;;  %v2595_v63 = vand.u32 4294901760, %v2594_v48 }
 0x52f   : > { %2475 = vmatpush.msrb.mxu1 %v2350_v3 }
 0x530   : > { %v2203_v21 = vand.u32 4294901760, %v2202_v37 }
 0x532   : > { %2204 = vmatmul.f32.vlgmr.msra.gmra.mxu2 %v2203_v21  ;;  %2324 = vmatmul.f32.vlgmr.msra.gmra.mxu3 %v2199_v29 }
 0x533   : > { %2404 = vmatpush.msra.mxu2 %v2377_v23 }
 0x534   : > { %v7436_v58 = vpop.permute.xlu1 %3285 }
 0x53a   : > { %2302 = vmatmul.f32.vlgmr.msrb.gmra.mxu2 %v2199_v29 }
 0x53c   : > { %v7438_v13 = vpop.permute.xlu1 %3249 }
 0x547   : > { %2932 = vrot.lane.b32.xlu1 %v7297_v56, %s6967_s30 }
 0x552   : > { %v2722_v0 = vpop.permute.xlu2 %2721 }
 0x553   : > { %v2726_v50 = vsel %vm1008_vm0, %v2722_v0, 0 }
 0x554   : > { %v2747_v6 = vand.u32 4294901760, %v2726_v50 }
 0x556   : > { %v2748_v8 = vsub.f32 %v2726_v50, %v2747_v6 }
 0x558   : > { %v2749_v9 = vand.u32 4294901760, %v2748_v8 }
 0x559   : > { %v2144_v11 = vpop.xlane.xlu0 %2143 }
 0x55a   : > { %6532 = vrcp.f32 %v2144_v11  ;;  %v2171_v26 = vand.u32 2147483648, %v2144_v11  ;;  %v2169_v1 = vand.u32 2147483647, %v2144_v11  ;;  %vm2165_vm8 = vweird.f32 %v2144_v11 }
 0x55b   : > { %v2750_v10 = vsub.f32 %v2748_v8, %v2749_v9 }
 0x55c   : > { %v2172_v28 = vor.u32 1.1754944e-38, %v2171_v26  ;;  %vm2170_vm10 = vcmp.eq.f32.partialorder %v2169_v1, 8.507059e+37 }
 0x55d   : > { %v2751_v12 = vand.u32 4294901760, %v2750_v10 }
 0x560   : > { %v6533_v22 = vpop.eup %6532 }
 0x561   : > { %v2161_v24 = vmul.f32 %v6533_v22, %v2144_v11  ;;  %vm2166_vm7 = vweird.f32 %v6533_v22 }
 0x562   : > { %vm2167_vm9 = vmor %vm2165_vm8, %vm2166_vm7 }
 0x563   : > { %v2162_v25 = vsub.f32 1.0, %v2161_v24 }
 0x565   : > { %v2163_v59 = vmul.f32 %v6533_v22, %v2162_v25 }
 0x567   : > { %v2164_v4 = vadd.f32 %v6533_v22, %v2163_v59 }
 0x569   : > { %v2168_v5 = vsel %vm2167_vm9, %v6533_v22, %v2164_v4 }
 0x56a   : > { %v2173_v30 = vsel %vm2170_vm10, %v2172_v28, %v2168_v5 }
 0x56b   : > { %v2174_v33 = vmul.f32 %v7413_v27, %v2173_v30 }
 0x56c   : > { %v2569_v36 = vpop.permute.xlu0 %2568 }
 0x56d   : > { %v2572_v38 = vsel %vm1008_vm0, %v2569_v36, 0  ;;  %v2333_v40 = vsel %vm1382_vm1, %v2174_v33, 0 }
 0x56e   : > { %v2589_v42 = vand.u32 4294901760, %v2572_v38  ;;  %v2352_v43 = vand.u32 4294901760, %v2333_v40 }
 0x570   : > { %v2616_v45 = vsub.f32 %v2572_v38, %v2589_v42  ;;  %2383 = vmatmul.f32.vlgmr.msra.gmra.mxu1 %v2352_v43  ;;  %2590 = vmatpush.xpose.msrb.mxu2 %v2589_v42  ;;  %v2353_v46 = vsub.f32 %v2333_v40, %v2352_v43 }
 0x571   : > { %2666 = vmatpush.xpose.msra.mxu1 %v2589_v42 }
 0x572   : > { %v2617_v31 = vand.u32 4294901760, %v2616_v45  ;;  %2407 = vmatmul.f32.vlgmr.msra.gmra.mxu2 %v2353_v46  ;;  %v2354_v47 = vand.u32 4294901760, %v2353_v46 }
 0x574   : > { %v2618_v49 = vsub.f32 %v2616_v45, %v2617_v31  ;;  %2431 = vmatmul.f32.vlgmr.msrb.gmra.mxu3 %v2354_v47  ;;  %2692 = vmatpush.xpose.msra.mxu2 %v2617_v31  ;;  %v2725_v27 = vpop.permute.xlu0 %2724  ;;  %v2355_v52 = vsub.f32 %v2353_v46, %v2354_v47 }
 0x575   : > { %v2728_v53 = vsel %vm1008_vm0, %v2725_v27, 0 }
 0x576   : > { %v2619_v54 = vand.u32 4294901760, %v2618_v49  ;;  %v2745_v60 = vand.u32 4294901760, %v2728_v53  ;;  %v2356_v61 = vand.u32 4294901760, %v2355_v52  ;;  %v2877_v52 = vstv %s5949_s23 }
 0x578   : > { %v2772_v3 = vsub.f32 %v2728_v53, %v2745_v60  ;;  %2357 = vmatmul.f32.vlgmr.msra.gmra.mxu0 %v2356_v61  ;;  %2477 = vmatmul.f32.vlgmr.msrb.gmra.mxu1 %v2352_v43  ;;  %v5950_v61 = vld [vmem:[%s8277_s12 + $0x10] sm:$0xff] }
 0x579   : > { %2620 = vmatpush.xpose.msra.mxu3 %v2619_v54  ;;  %2643 = vmatpush.xpose.msra.mxu0 %v2616_v45 }
 0x57a   : > { %v2773_v51 = vand.u32 4294901760, %v2772_v3  ;;  %2596 = vmatmul.f32.vlgmr.msrb.gmra.mxu2 %v2595_v63 }
 0x57b   : > { %2799 = vmatpush.xpose.msrb.mxu2 %v2772_v3 }
 0x57c   : > { %v2774_v23 = vsub.f32 %v2772_v3, %v2773_v51  ;;  %2622 = vmatmul.f32.vlgmr.msra.gmra.mxu3 %v2591_v32  ;;  %v3248_v10 = vpop.permute.xlu0 %3247 }
 0x57d   : > { %2714 = vmatpush.xpose.msrb.mxu3 %v2589_v42 }
 0x57e   : > { %v2775_v7 = vand.u32 4294901760, %v2774_v23 }
 0x580   : > { %2455 = vmatmul.f32.vlgmr.msrb.gmra.mxu0 %v2352_v43  ;;  %2670 = vmatmul.f32.vlgmr.msra.gmra.mxu1 %v2593_v44 }
 0x581   : > { %2822 = vmatpush.xpose.msra.mxu3 %v2745_v60  ;;  %2746 = vmatpush.xpose.msrb.mxu0 %v2745_v60 }
 0x582   : > { %2776 = vmatpush.xpose.msrb.mxu1 %v2775_v7  ;;  %2694 = vmatmul.f32.vlgmr.msra.gmra.mxu2 %v2591_v32 }
 0x584   : > { %2716 = vmatmul.f32.vlgmr.msrb.gmra.mxu3 %v2591_v32 }
 0x586   : > { %2870 = vmatpush.xpose.msra.mxu1 %v2745_v60 }
 0x588   : > { %2646 = vmatmul.f32.vlgmr.msra.gmra.mxu0 %v2592_v34  ;;  %2778 = vmatmul.f32.vlgmr.msrb.gmra.mxu1 %v2747_v6 }
 0x589   : > { %2848 = vmatpush.xpose.msra.mxu0 %v2773_v51 }
 0x58a   : > { %2802 = vmatmul.f32.vlgmr.msrb.gmra.mxu2 %v2748_v8 }
 0x58c   : > { %2826 = vmatmul.f32.vlgmr.msra.gmra.mxu3 %v2749_v9 }
 0x590   : > { %2752 = vmatmul.f32.vlgmr.msrb.gmra.mxu0 %v2751_v12  ;;  %2872 = vmatmul.f32.vlgmr.msra.gmra.mxu1 %v2747_v6 }
 0x598   : > { %2850 = vmatmul.f32.vlgmr.msra.gmra.mxu0 %v2747_v6 }
 0x5a1   : > { %v7440_v14 = vpop.xlane.xlu1 %3290 }
 0x5a9   : > { %v2255_v29 = vpop.f32.mrf.mxu0 }
 0x5ab   : > { %v2279_v18 = vpop.f32.mrf.mxu1 }
 0x5ad   : > { %v2231_v15 = vpop.f32.mrf.mxu3 }
 0x5b5   : > { %v2205_v16 = vpop.f32.mrf.mxu2  ;;  %v2325_v25 = vpop.f32.mrf.mxu3 }
 0x5b6   : > { %v2232_v17 = vadd.f32 %v2231_v15, %v2205_v16  ;;  %v3253_v16 = vsel %vm1008_vm0, %v3248_v10, 0.0 }
 0x5b8   : > { %v2256_v41 = vadd.f32 %v2255_v29, %v2232_v17 }
 0x5b9   : > { %v2933_v19 = vpop.permute.xlu1 %2932 }
 0x5ba   : > { %v2953_v20 = vand.u32 4294901760, %v2933_v19  ;;  %v2280_v37 = vadd.f32 %v2279_v18, %v2256_v41  ;;  %v3292_v18 = vsel %vm1008_vm0, %v7436_v58, 0.0 }
 0x5bc   : > { %v2980_v21 = vsub.f32 %v2933_v19, %v2953_v20  ;;  %2954 = vmatpush.msra.mxu2 %v2953_v20  ;;  %3030 = vmatpush.msrb.mxu1 %v2953_v20  ;;  %v3256_v19 = vsel %vm1008_vm0, %v7438_v13, 0.0 }
 0x5bd   : > { %v2303_v11 = vpop.f32.mrf.mxu2 }
 0x5be   : > { %v2981_v22 = vand.u32 4294901760, %v2980_v21  ;;  %v2304_v24 = vadd.f32 %v2303_v11, %v2280_v37  ;;  %3007 = vmatpush.msrb.mxu0 %v2980_v21 }
 0x5c0   : > { %v2982_v26 = vsub.f32 %v2980_v21, %v2981_v22  ;;  %v7442_v39 = vadd.f32 %v2325_v25, %v2304_v24  ;;  %3056 = vmatpush.msrb.mxu2 %v2981_v22  ;;  %v3295_v24 = vmax.f32 %v7440_v14, 1e-24 }
 0x5c2   : > { %v2983_v59 = vand.u32 4294901760, %v2982_v26  ;;  %vm3303_vm4 = vweird.f32 %v3295_v24 }
 0x5c4   : > { %2984 = vmatpush.msrb.mxu3 %v2983_v59 }
 0x5c6   : > { %3078 = vmatpush.msra.mxu3 %v2953_v20 }
 0x5ed   : > { %v2384_v1 = vpop.f32.mrf.mxu1 }
 0x5f5   : > { %v2358_v4 = vpop.f32.mrf.mxu0  ;;  %v2408_v32 = vpop.f32.mrf.mxu2 }
 0x5f6   : > { %v2385_v28 = vadd.f32 %v2384_v1, %v2358_v4  ;;  %v2478_v33 = vpop.f32.mrf.mxu1 }
 0x5f7   : > { %v2432_v5 = vpop.f32.mrf.mxu3 }
 0x5f8   : > { %v2409_v30 = vadd.f32 %v2408_v32, %v2385_v28 }
 0x5fa   : > { %v2433_v34 = vadd.f32 %v2432_v5, %v2409_v30 }
 0x5fd   : > { %v2456_v36 = vpop.f32.mrf.mxu0  ;;  %v2597_v38 = vpop.f32.mrf.mxu2 }
 0x5fe   : > { %v2457_v40 = vadd.f32 %v2456_v36, %v2433_v34  ;;  %v2671_v44 = vpop.f32.mrf.mxu1 }
 0x5ff   : > { %v2623_v42 = vpop.f32.mrf.mxu3 }
 0x600   : > { %v7444_v43 = vadd.f32 %v2478_v33, %v2457_v40  ;;  %v2624_v45 = vadd.f32 %v2623_v42, %v2597_v38 }
 0x605   : > { %v2647_v46 = vpop.f32.mrf.mxu0  ;;  %v2695_v31 = vpop.f32.mrf.mxu2 }
 0x606   : > { %v2648_v47 = vadd.f32 %v2647_v46, %v2624_v45  ;;  %v2779_v54 = vpop.f32.mrf.mxu1 }
 0x607   : > { %v2717_v49 = vpop.f32.mrf.mxu3 }
 0x608   : > { %v2672_v48 = vadd.f32 %v2671_v44, %v2648_v47 }
 0x60a   : > { %v2696_v27 = vadd.f32 %v2695_v31, %v2672_v48 }
 0x60c   : > { %v2718_v53 = vadd.f32 %v2717_v49, %v2696_v27 }
 0x60d   : > { %v2753_v60 = vpop.f32.mrf.mxu0  ;;  %v2803_v3 = vpop.f32.mrf.mxu2 }
 0x60e   : > { %v2878_v63 = vmul.f32 %v2877_v52, %v2718_v53  ;;  %v2780_v0 = vadd.f32 %v2779_v54, %v2753_v60  ;;  %v2873_v12 = vpop.f32.mrf.mxu1 }
 0x60f   : > { %v2827_v6 = vpop.f32.mrf.mxu3 }
 0x610   : > { %v2804_v51 = vadd.f32 %v2803_v3, %v2780_v0  ;;  %v2882_v50 = vadd.f32 %v5950_v61, %v2878_v63 }
 0x612   : > { %v2884_v23 = vsel %vm1382_vm1, %v2882_v50, -inf  ;;  %v2828_v7 = vadd.f32 %v2827_v6, %v2804_v51 }
 0x613   : > { %2885 = vmax.xlane.f32.xlu2 %v2884_v23 }
 0x615   : > { %v2851_v8 = vpop.f32.mrf.mxu0 }
 0x616   : > { %v2852_v9 = vadd.f32 %v2851_v8, %v2828_v7 }
 0x618   : > { %v2874_v15 = vadd.f32 %v2873_v12, %v2852_v9 }
 0x61a   : > { %v2879_v17 = vmul.f32 %v2877_v52, %v2874_v15 }
 0x61b   : > { %3254 = vadd.xlane.f32.xlu2 %v3253_v16 }
 0x61c   : > { %v2883_v29 = vadd.f32 %v5950_v61, %v2879_v17 }
 0x61e   : > { %v2887_v41 = vsel %vm1382_vm1, %v2883_v29, -inf }
 0x61f   : > { %2888 = vmax.xlane.f32.xlu0 %v2887_v41 }
 0x623   : > { %3293 = vadd.xlane.f32.xlu2 %v3292_v18 }
 0x627   : > { %3257 = vadd.xlane.f32.xlu0 %v3256_v19 }
 0x686   : > { %v2886_v20 = vpop.xlane.xlu2 %2885 }
 0x687   : > { %v2890_v37 = vsub.f32 %v2882_v50, %v2886_v20 }
 0x689   : > { %v2892_v21 = vmul.f32 1.442695, %v2890_v37 }
 0x68b   : > { %6534 = vpow2.f32 %v2892_v21 }
 0x68e   : > { %v3255_v11 = vpop.xlane.xlu2 %3254 }
 0x68f   : > { %v3259_v22 = vmax.f32 %v3255_v11, 1e-24 }
 0x691   : > { %v7457_v25 = vpop.eup %6534  ;;  %6536 = vrsqrt.f32 %v3259_v22  ;;  %vm3267_vm13 = vweird.f32 %v3259_v22 }
 0x692   : > { %v2889_v26 = vpop.xlane.xlu0 %2888  ;;  %v2896_v58 = vsel %vm1382_vm1, %v7457_v25, 0.0  ;;  %6538 = vrsqrt.f32 %v3295_v24 }
 0x693   : > { %v2891_v59 = vsub.f32 %v2883_v29, %v2889_v26  ;;  %2897 = vadd.xlane.f32.xlu0 %v2896_v58 }
 0x695   : > { %v2894_v13 = vmul.f32 1.442695, %v2891_v59 }
 0x696   : > { %v3294_v1 = vpop.xlane.xlu2 %3293 }
 0x697   : > { %v6537_v4 = vpop.eup %6536  ;;  %6540 = vpow2.f32 %v2894_v13  ;;  %v3296_v32 = vmax.f32 %v3294_v1, 1e-24 }
 0x698   : > { %v3262_v28 = vmul.f32 %v6537_v4, %v3259_v22  ;;  %v6539_v5 = vpop.eup %6538  ;;  %vm3268_vm11 = vweird.f32 %v6537_v4 }
 0x699   : > { %6542 = vrsqrt.f32 %v3296_v32  ;;  %v3298_v36 = vmul.f32 %v6539_v5, %v3295_v24  ;;  %vm3269_vm14 = vmor %vm3267_vm13, %vm3268_vm11  ;;  %vm3313_vm15 = vweird.f32 %v3296_v32  ;;  %vm3304_vm3 = vweird.f32 %v6539_v5 }
 0x69a   : > { %v3263_v30 = vmul.f32 %v6537_v4, %v3262_v28  ;;  %v3258_v14 = vpop.xlane.xlu0 %3257  ;;  %vm3305_vm5 = vmor %vm3303_vm4, %vm3304_vm3 }
 0x69b   : > { %v3260_v33 = vmax.f32 %v3258_v14, 1e-24  ;;  %v3299_v45 = vmul.f32 %v6539_v5, %v3298_v36 }
 0x69c   : > { %v3264_v38 = vmul.f32 0.5, %v3263_v30 }
 0x69d   : > { %v7461_v34 = vpop.eup %6540  ;;  %6544 = vrsqrt.f32 %v3260_v33  ;;  %v3300_v49 = vmul.f32 0.5, %v3299_v45  ;;  %vm3277_vm7 = vweird.f32 %v3260_v33 }
 0x69e   : > { %v2899_v40 = vsel %vm1382_vm1, %v7461_v34, 0.0  ;;  %v3265_v46 = vsub.f32 1.5, %v3264_v38 }
 0x69f   : > { %v6543_v42 = vpop.eup %6542  ;;  %2900 = vadd.xlane.f32.xlu2 %v2899_v40  ;;  %v3301_v60 = vsub.f32 1.5, %v3300_v49 }
 0x6a0   : > { %v3308_v44 = vmul.f32 %v6543_v42, %v3296_v32  ;;  %vm3314_vm12 = vweird.f32 %v6543_v42  ;;  %v3266_v53 = vmul.f32 %v6537_v4, %v3265_v46 }
 0x6a1   : > { %vm3315_vm2 = vmor %vm3313_vm15, %vm3314_vm12  ;;  %v3302_v23 = vmul.f32 %v6539_v5, %v3301_v60 }
 0x6a2   : > { %v3309_v31 = vmul.f32 %v6543_v42, %v3308_v44  ;;  %v3270_v0 = vsel %vm3269_vm14, %v6537_v4, %v3266_v53 }
 0x6a3   : > { %v6545_v47 = vpop.eup %6544  ;;  %v3281_v51 = vmul.f32 %v3270_v0, %v7236_v55  ;;  %v3306_v7 = vsel %vm3305_vm5, %v6539_v5, %v3302_v23 }
 0x6a4   : > { %v3310_v48 = vmul.f32 0.5, %v3309_v31  ;;  %v3272_v52 = vmul.f32 %v6545_v47, %v3260_v33  ;;  %v3317_v8 = vmul.f32 %v3306_v7, %v7238_v57  ;;  %vm3278_vm6 = vweird.f32 %v6545_v47 }
 0x6a5   : > { %vm3279_vm8 = vmor %vm3277_vm7, %vm3278_vm6 }
 0x6a6   : > { %v3311_v27 = vsub.f32 1.5, %v3310_v48  ;;  %v3273_v61 = vmul.f32 %v6545_v47, %v3272_v52 }
 0x6a7   : > { %3084 = vrot.lane.b32.xlu0 %v7316_v35, %s6967_s30 }
 0x6a8   : > { %v3312_v54 = vmul.f32 %v6543_v42, %v3311_v27  ;;  %v3274_v50 = vmul.f32 0.5, %v3273_v61 }
 0x6aa   : > { %v3316_v63 = vsel %vm3315_vm2, %v6543_v42, %v3312_v54  ;;  %v3275_v6 = vsub.f32 1.5, %v3274_v50 }
 0x6ab   : > { %v3318_v3 = vmul.f32 %v3316_v63, %v7252_v62 }
 0x6ac   : > { %v3276_v9 = vmul.f32 %v6545_v47, %v3275_v6 }
 0x6ad   : > { %3479 = vrot.lane.b32.xlu1 %v3318_v3, %s6968_s25 }
 0x6ae   : > { %v3280_v62 = vsel %vm3279_vm8, %v6545_v47, %v3276_v9 }
 0x6af   : > { %3320 = vrot.lane.b32.xlu0 %v3281_v51, %s6968_s25  ;;  %v3282_v55 = vmul.f32 %v3280_v62, %v7260_v2 }
 0x6b7   : > { %3323 = vrot.lane.b32.xlu2 %v3317_v8, %s6968_s25 }
 0x6bf   : > { %3476 = vrot.lane.b32.xlu2 %v3282_v55, %s6968_s25 }
 0x706   : > { %v2898_v10 = vpop.xlane.xlu0 %2897 }
 0x707   : > { %6546 = vrcp.f32 %v2898_v10  ;;  %v2913_v17 = vand.u32 2147483648, %v2898_v10  ;;  %v2911_v57 = vand.u32 2147483647, %v2898_v10  ;;  %vm2907_vm10 = vweird.f32 %v2898_v10 }
 0x709   : > { %v2914_v19 = vor.u32 1.1754944e-38, %v2913_v17  ;;  %vm2912_vm12 = vcmp.eq.f32.partialorder %v2911_v57, 8.507059e+37 }
 0x70d   : > { %v6547_v12 = vpop.eup %6546 }
 0x70e   : > { %v2903_v15 = vmul.f32 %v6547_v12, %v2898_v10  ;;  %vm2908_vm9 = vweird.f32 %v6547_v12 }
 0x70f   : > { %vm2909_vm11 = vmor %vm2907_vm10, %vm2908_vm9  ;;  %vm2489_vm10 = vcmask 523520  }
 0x710   : > { %v2904_v16 = vsub.f32 1.0, %v2903_v15 }
 0x712   : > { %v2905_v29 = vmul.f32 %v6547_v12, %v2904_v16  ;;  %v2901_v41 = vpop.xlane.xlu2 %2900 }
 0x713   : > { %6548 = vrcp.f32 %v2901_v41  ;;  %v2926_v28 = vand.u32 2147483647, %v2901_v41  ;;  %v2928_v5 = vand.u32 2147483648, %v2901_v41  ;;  %vm2922_vm14 = vweird.f32 %v2901_v41 }
 0x714   : > { %v2906_v18 = vadd.f32 %v6547_v12, %v2905_v29 }
 0x715   : > { %v2929_v46 = vor.u32 1.1754944e-38, %v2928_v5  ;;  %vm2927_vm2 = vcmp.eq.f32.partialorder %v2926_v28, 8.507059e+37 }
 0x716   : > { %v2910_v20 = vsel %vm2909_vm11, %v6547_v12, %v2906_v18  ;;  %vm3244_vm11 = vcmask 785920  }
 0x717   : > { %v2915_v2 = vsel %vm2912_vm12, %v2914_v19, %v2910_v20  ;;  %vm3999_vm12 = vcmask 1048320  }
 0x718   : > { %v2916_v37 = vmul.f32 %v7457_v25, %v2915_v2 }
 0x719   : > { %v6549_v21 = vpop.eup %6548  ;;  %v3085_v11 = vpop.permute.xlu0 %3084 }
 0x71a   : > { %v2918_v22 = vmul.f32 %v6549_v21, %v2901_v41  ;;  %v3105_v24 = vand.u32 4294901760, %v3085_v11  ;;  %v3324_v26 = vpop.permute.xlu2 %3323  ;;  %v2936_v58 = vsel %vm1382_vm1, %v2916_v37, 0  ;;  %vm2923_vm13 = vweird.f32 %v6549_v21 }
 0x71b   : > { %v3327_v59 = vsel %vm1008_vm0, %v3324_v26, 0  ;;  %v2955_v13 = vand.u32 4294901760, %v2936_v58  ;;  %vm2924_vm15 = vmor %vm2922_vm14, %vm2923_vm13 }
 0x71c   : > { %v2919_v1 = vsub.f32 1.0, %v2918_v22  ;;  %v3132_v4 = vsub.f32 %v3085_v11, %v3105_v24  ;;  %v3344_v32 = vand.u32 4294901760, %v3327_v59  ;;  %3106 = vmatpush.msra.mxu0 %v3105_v24 }
 0x71d   : > { %2986 = vmatmul.f32.vlgmr.msrb.gmra.mxu3 %v2955_v13  ;;  %v2956_v30 = vsub.f32 %v2936_v58, %v2955_v13 }
 0x71e   : > { %v2920_v14 = vmul.f32 %v6549_v21, %v2919_v1  ;;  %v3133_v25 = vand.u32 4294901760, %v3132_v4  ;;  %v3371_v33 = vsub.f32 %v3327_v59, %v3344_v32  ;;  %3182 = vmatpush.msrb.mxu3 %v3105_v24 }
 0x71f   : > { %v3480_v36 = vpop.permute.xlu1 %3479  ;;  %3010 = vmatmul.f32.vlgmr.msrb.gmra.mxu0 %v2956_v30  ;;  %v2957_v38 = vand.u32 4294901760, %v2956_v30 }
 0x720   : > { %v2921_v40 = vadd.f32 %v6549_v21, %v2920_v14  ;;  %v3134_v42 = vsub.f32 %v3132_v4, %v3133_v25  ;;  %v3372_v44 = vand.u32 4294901760, %v3371_v33  ;;  %v3483_v45 = vsel %vm1008_vm0, %v3480_v36, 0  ;;  %3208 = vmatpush.msrb.mxu0 %v3133_v25 }
 0x721   : > { %v3500_v31 = vand.u32 4294901760, %v3483_v45  ;;  %3034 = vmatmul.f32.vlgmr.msrb.gmra.mxu1 %v2957_v38  ;;  %v2958_v47 = vsub.f32 %v2956_v30, %v2957_v38  ;;  %v3321_v63 = vpop.permute.xlu0 %3320 }
 0x722   : > { %v2925_v48 = vsel %vm2924_vm15, %v6549_v21, %v2921_v40  ;;  %v3135_v49 = vand.u32 4294901760, %v3134_v42  ;;  %v3373_v27 = vsub.f32 %v3371_v33, %v3372_v44  ;;  %v3325_v50 = vsel %vm1008_vm0, %v3321_v63, 0  ;;  %v3477_v10 = vpop.permute.xlu2 %3476 }
 0x723   : > { %v2930_v52 = vsel %vm2927_vm2, %v2929_v46, %v2925_v48  ;;  %v3527_v54 = vsub.f32 %v3483_v45, %v3500_v31  ;;  %v2959_v60 = vand.u32 4294901760, %v2958_v47  ;;  %v3346_v8 = vand.u32 4294901760, %v3325_v50 }
 0x724   : > { %v3374_v53 = vand.u32 4294901760, %v3373_v27  ;;  %3136 = vmatpush.msra.mxu1 %v3135_v49  ;;  %v2931_v61 = vmul.f32 %v7461_v34, %v2930_v52  ;;  %v3481_v15 = vsel %vm1008_vm0, %v3477_v10, 0  ;;  %v3632_v47 = vstv %s5951_s24  ;;  %v5952_v27 = vld [vmem:[%s8277_s12 + $0x18] sm:$0xff] }
 0x725   : > { %3080 = vmatmul.f32.vlgmr.msra.gmra.mxu3 %v2955_v13  ;;  %2960 = vmatmul.f32.vlgmr.msra.gmra.mxu2 %v2959_v60  ;;  %v3528_v51 = vand.u32 4294901760, %v3527_v54  ;;  %v3347_v55 = vsub.f32 %v3325_v50, %v3346_v8  ;;  %v3502_v16 = vand.u32 4294901760, %v3481_v15 }
 0x726   : > { %3230 = vmatpush.msrb.mxu1 %v3105_v24  ;;  %3375 = vmatpush.xpose.msra.mxu3 %v3374_v53  ;;  %v3088_v0 = vsel %vm1382_vm1, %v2931_v61, 0 }
 0x727   : > { %3159 = vmatpush.msra.mxu2 %v3132_v4  ;;  %v3107_v3 = vand.u32 4294901760, %v3088_v0  ;;  %v3529_v7 = vsub.f32 %v3527_v54, %v3528_v51  ;;  %v3348_v12 = vand.u32 4294901760, %v3347_v55  ;;  %v3503_v29 = vsub.f32 %v3481_v15, %v3502_v16 }
 0x729   : > { %v3108_v23 = vsub.f32 %v3088_v0, %v3107_v3  ;;  %3138 = vmatmul.f32.vlgmr.msra.gmra.mxu1 %v3107_v3  ;;  %v3530_v62 = vand.u32 4294901760, %v3529_v7  ;;  %v3349_v17 = vsub.f32 %v3347_v55, %v3348_v12  ;;  %v3504_v41 = vand.u32 4294901760, %v3503_v29 }
 0x72a   : > { %3421 = vmatpush.xpose.msra.mxu1 %v3344_v32 }
 0x72b   : > { %v3109_v6 = vand.u32 4294901760, %v3108_v23  ;;  %v3350_v57 = vand.u32 4294901760, %v3349_v17  ;;  %v3505_v18 = vsub.f32 %v3503_v29, %v3504_v41 }
 0x72d   : > { %3186 = vmatmul.f32.vlgmr.msrb.gmra.mxu3 %v3109_v6  ;;  %v3110_v34 = vsub.f32 %v3108_v23, %v3109_v6  ;;  %3058 = vmatmul.f32.vlgmr.msrb.gmra.mxu2 %v2955_v13  ;;  %v3506_v19 = vand.u32 4294901760, %v3505_v18 }
 0x72e   : > { %3469 = vmatpush.xpose.msrb.mxu3 %v3344_v32  ;;  %3345 = vmatpush.xpose.msrb.mxu2 %v3344_v32 }
 0x72f   : > { %v3111_v9 = vand.u32 4294901760, %v3110_v34 }
 0x731   : > { %3112 = vmatmul.f32.vlgmr.msra.gmra.mxu0 %v3111_v9  ;;  %3232 = vmatmul.f32.vlgmr.msrb.gmra.mxu1 %v3107_v3 }
 0x732   : > { %3398 = vmatpush.xpose.msra.mxu0 %v3371_v33  ;;  %3531 = vmatpush.xpose.msrb.mxu1 %v3530_v62 }
 0x735   : > { %3377 = vmatmul.f32.vlgmr.msra.gmra.mxu3 %v3346_v8  ;;  %3162 = vmatmul.f32.vlgmr.msra.gmra.mxu2 %v3108_v23 }
 0x736   : > { %3577 = vmatpush.xpose.msra.mxu3 %v3500_v31  ;;  %3447 = vmatpush.xpose.msra.mxu2 %v3372_v44 }
 0x739   : > { %3210 = vmatmul.f32.vlgmr.msrb.gmra.mxu0 %v3107_v3  ;;  %3425 = vmatmul.f32.vlgmr.msra.gmra.mxu1 %v3348_v12 }
 0x73a   : > { %3501 = vmatpush.xpose.msrb.mxu0 %v3500_v31  ;;  %3625 = vmatpush.xpose.msra.mxu1 %v3500_v31 }
 0x73d   : > { %3471 = vmatmul.f32.vlgmr.msrb.gmra.mxu3 %v3346_v8  ;;  %3351 = vmatmul.f32.vlgmr.msrb.gmra.mxu2 %v3350_v57 }
 0x73e   : > { %3554 = vmatpush.xpose.msrb.mxu2 %v3527_v54 }
 0x741   : > { %3401 = vmatmul.f32.vlgmr.msra.gmra.mxu0 %v3347_v55  ;;  %3533 = vmatmul.f32.vlgmr.msrb.gmra.mxu1 %v3502_v16 }
 0x742   : > { %3603 = vmatpush.xpose.msra.mxu0 %v3528_v51 }
 0x745   : > { %3581 = vmatmul.f32.vlgmr.msra.gmra.mxu3 %v3504_v41  ;;  %3449 = vmatmul.f32.vlgmr.msra.gmra.mxu2 %v3346_v8 }
 0x749   : > { %3507 = vmatmul.f32.vlgmr.msrb.gmra.mxu0 %v3506_v19  ;;  %3627 = vmatmul.f32.vlgmr.msra.gmra.mxu1 %v3502_v16 }
 0x74d   : > { %3557 = vmatmul.f32.vlgmr.msrb.gmra.mxu2 %v3503_v29 }
 0x751   : > { %3605 = vmatmul.f32.vlgmr.msra.gmra.mxu0 %v3502_v16 }
 0x79c   : > { %v3011_v37 = vpop.f32.mrf.mxu0 }
 0x79e   : > { %v3035_v2 = vpop.f32.mrf.mxu1 }
 0x7a0   : > { %v2987_v20 = vpop.f32.mrf.mxu3 }
 0x7a6   : > { %v3139_v59 = vpop.f32.mrf.mxu1 }
 0x7a8   : > { %v2961_v21 = vpop.f32.mrf.mxu2  ;;  %v3081_v22 = vpop.f32.mrf.mxu3 }
 0x7a9   : > { %v2988_v11 = vadd.f32 %v2987_v20, %v2961_v21 }
 0x7ab   : > { %v3012_v24 = vadd.f32 %v3011_v37, %v2988_v11 }
 0x7ad   : > { %v3036_v58 = vadd.f32 %v3035_v2, %v3012_v24 }
 0x7ae   : > { %v3113_v26 = vpop.f32.mrf.mxu0  ;;  %v3233_v5 = vpop.f32.mrf.mxu1 }
 0x7af   : > { %v3140_v9 = vadd.f32 %v3139_v59, %v3113_v26 }
 0x7b0   : > { %v3059_v13 = vpop.f32.mrf.mxu2  ;;  %v3187_v32 = vpop.f32.mrf.mxu3 }
 0x7b1   : > { %v3060_v1 = vadd.f32 %v3059_v13, %v3036_v58 }
 0x7b3   : > { %v7483_v4 = vadd.f32 %v3081_v22, %v3060_v1 }
 0x7b6   : > { %v3211_v28 = vpop.f32.mrf.mxu0  ;;  %v3426_v38 = vpop.f32.mrf.mxu1 }
 0x7b8   : > { %v3163_v30 = vpop.f32.mrf.mxu2  ;;  %v3378_v14 = vpop.f32.mrf.mxu3 }
 0x7b9   : > { %v3164_v62 = vadd.f32 %v3163_v30, %v3140_v9 }
 0x7bb   : > { %v3188_v55 = vadd.f32 %v3187_v32, %v3164_v62 }
 0x7bd   : > { %v3212_v10 = vadd.f32 %v3211_v28, %v3188_v55 }
 0x7be   : > { %v3402_v25 = vpop.f32.mrf.mxu0  ;;  %v3534_v49 = vpop.f32.mrf.mxu1 }
 0x7bf   : > { %v3234_v12 = vadd.f32 %v3233_v5, %v3212_v10  ;;  %v6278_v10 = vld [vmem:[%s8223_s6 + $0x38] sm:$0xff] }
 0x7c0   : > { %v3352_v33 = vpop.f32.mrf.mxu2  ;;  %v3472_v44 = vpop.f32.mrf.mxu3 }
 0x7c1   : > { %v3379_v36 = vadd.f32 %v3378_v14, %v3352_v33 }
 0x7c3   : > { %v3403_v40 = vadd.f32 %v3402_v25, %v3379_v36 }
 0x7c5   : > { %v3427_v42 = vadd.f32 %v3426_v38, %v3403_v40 }
 0x7c6   : > { %v3508_v31 = vpop.f32.mrf.mxu0  ;;  %v3628_v23 = vpop.f32.mrf.mxu1 }
 0x7c7   : > { %v3535_v53 = vadd.f32 %v3534_v49, %v3508_v31 }
 0x7c8   : > { %v3450_v45 = vpop.f32.mrf.mxu2  ;;  %v3582_v0 = vpop.f32.mrf.mxu3 }
 0x7c9   : > { %v3451_v46 = vadd.f32 %v3450_v45, %v3427_v42 }
 0x7cb   : > { %v3473_v48 = vadd.f32 %v3472_v44, %v3451_v46 }
 0x7cd   : > { %v3633_v52 = vmul.f32 %v3632_v47, %v3473_v48 }
 0x7ce   : > { %v3606_v51 = vpop.f32.mrf.mxu0 }
 0x7cf   : > { %v3637_v54 = vadd.f32 %v5952_v27, %v3633_v52 }
 0x7d0   : > { %v3558_v60 = vpop.f32.mrf.mxu2 }
 0x7d1   : > { %v3559_v61 = vadd.f32 %v3558_v60, %v3535_v53  ;;  %v3639_v63 = vsel %vm1382_vm1, %v3637_v54, -inf }
 0x7d2   : > { %3640 = vmax.xlane.f32.xlu0 %v3639_v63 }
 0x7d3   : > { %v3583_v3 = vadd.f32 %v3582_v0, %v3559_v61 }
 0x7d5   : > { %v3607_v50 = vadd.f32 %v3606_v51, %v3583_v3 }
 0x7d7   : > { %v3629_v6 = vadd.f32 %v3628_v23, %v3607_v50 }
 0x7d9   : > { %v3634_v7 = vmul.f32 %v3632_v47, %v3629_v6 }
 0x7db   : > { %v3638_v8 = vadd.f32 %v5952_v27, %v3634_v7 }
 0x7dd   : > { %v3642_v34 = vsel %vm1382_vm1, %v3638_v8, -inf }
 0x7de   : > { %3643 = vmax.xlane.f32.xlu1 %v3642_v34 }
 0x7f7   : > { %3687 = vrot.lane.b32.xlu1 %v7297_v56, %s6968_s25 }
 0x7ff   : > { %3240 = vrot.lane.b32.xlu1 %v3234_v12, %s6967_s30  ;;  %v6277_v12 = vld [vmem:[%s8223_s6 + $0x30] sm:$0xff] }
 0x845   : > { %v3641_v15 = vpop.xlane.xlu0 %3640 }
 0x846   : > { %v3645_v16 = vsub.f32 %v3637_v54, %v3641_v15 }
 0x848   : > { %v3647_v17 = vmul.f32 1.442695, %v3645_v16  ;;  %v6276_v16 = vld [vmem:[%s8223_s6 + $0x28] sm:$0xff] }
 0x84a   : > { %6550 = vpow2.f32 %v3647_v17 }
 0x850   : > { %v6551_v29 = vpop.eup %6550 }
 0x851   : > { %v3644_v57 = vpop.xlane.xlu1 %3643  ;;  %v3651_v41 = vsel %vm1382_vm1, %v6551_v29, 0.0 }
 0x852   : > { %v3646_v18 = vsub.f32 %v3638_v8, %v3644_v57  ;;  %3652 = vadd.xlane.f32.xlu2 %v3651_v41 }
 0x854   : > { %v3649_v19 = vmul.f32 1.442695, %v3646_v18 }
 0x856   : > { %6552 = vpow2.f32 %v3649_v19 }
 0x85c   : > { %v7494_v20 = vpop.eup %6552 }
 0x85d   : > { %v3654_v56 = vsel %vm1382_vm1, %v7494_v20, 0.0 }
 0x85e   : > { %3655 = vadd.xlane.f32.xlu0 %v3654_v56 }
 0x869   : > { %v3688_v2 = vpop.permute.xlu1 %3687 }
 0x86a   : > { %v3708_v37 = vand.u32 4294901760, %v3688_v2  ;;  %3839 = vrot.lane.b32.xlu2 %v7316_v35, %s6968_s25 }
 0x86c   : > { %v3735_v21 = vsub.f32 %v3688_v2, %v3708_v37  ;;  %3709 = vmatpush.msra.mxu2 %v3708_v37  ;;  %3785 = vmatpush.msrb.mxu1 %v3708_v37 }
 0x86e   : > { %v3736_v11 = vand.u32 4294901760, %v3735_v21  ;;  %3762 = vmatpush.msrb.mxu0 %v3735_v21 }
 0x870   : > { %v3737_v22 = vsub.f32 %v3735_v21, %v3736_v11  ;;  %3811 = vmatpush.msrb.mxu2 %v3736_v11 }
 0x871   : > { %v3241_v62 = vpop.permute.xlu1 %3240 }
 0x872   : > { %v3738_v24 = vand.u32 4294901760, %v3737_v22  ;;  %2483 = vrot.lane.b32.xlu0 %v7442_v39, %s6968_s25  ;;  %3238 = vrot.lane.b32.xlu2 %v7483_v4, %s6967_s30  ;;  %s8282_s30 = sld [smem:[#allocation43_spill]] }
 0x874   : > { %3739 = vmatpush.msrb.mxu3 %v3738_v24 }
 0x876   : > { %3833 = vmatpush.msra.mxu3 %v3708_v37 }
 0x87a   : > { %2485 = vrot.lane.b32.xlu0 %v7444_v43, %s6968_s25  ;;  %s8284_s25 = sld [smem:[#allocation44_spill]] }
 0x880   : > { %s5669_s23 = scalar_lea.hbm %s8284_s25, %s6343_s3  ;;  %s6883_s4 = scalar_lea.hbm %s8284_s25, 32 }
 0x881   : > { %s5672_s24 = sshll.u32 %s5669_s23, 4  ;;  %s5673_s24 = int_to_ptr.hbm [resolvable:$true] %s5672_s24 }
 0x882   : > { %s6877_s5 = sshra.s32 %s5673_s24, 4  ;;  %s6878_s5 = int_to_ptr.hbm [resolvable:$true] %s6877_s5 }
 0x883   : > { %s6879_s26 = scalar_lea.hbm %s6878_s5, 16  ;;  %p6884_p3 = scmp.lt.s32.totalorder %s6878_s5, %s8284_s25 }
 0x884   : > { %p6880_p0 = scmp.ne.s32.totalorder %s6878_s5, %s6879_s26  ;;  %p6885_p4 = scmp.lt.s32.totalorder %s6883_s4, %s6879_s26 }
 0x886   : > { %p6881_p1 = pnand %p6880_p0, %p7125_p5  ;;  %p6886_p7 = por %p6885_p4, %p6884_p3 }
 0x888   : > { %p6882_p2 = pneg %p6881_p1 }
 0x88a   : > { %p6887_p8 = pnand %p6886_p7, %p6882_p2 }
 0x8c5   : > { %v3653_v35 = vpop.xlane.xlu2 %3652 }
 0x8c6   : > { %6554 = vrcp.f32 %v3653_v35  ;;  %v3668_v32 = vand.u32 2147483648, %v3653_v35  ;;  %v3666_v39 = vand.u32 2147483647, %v3653_v35  ;;  %vm3662_vm3 = vweird.f32 %v3653_v35 }
 0x8c8   : > { %v3669_v43 = vor.u32 1.1754944e-38, %v3668_v32  ;;  %vm3667_vm5 = vcmp.eq.f32.partialorder %v3666_v39, 8.507059e+37  ;;  %v6273_v39 = vld [vmem:[%s8223_s6 + $0x10] sm:$0xff] }
 0x8cc   : > { %v6555_v26 = vpop.eup %6554 }
 0x8cd   : > { %v3658_v58 = vmul.f32 %v6555_v26, %v3653_v35  ;;  %v3840_v59 = vpop.permute.xlu2 %3839  ;;  %vm3663_vm0 = vweird.f32 %v6555_v26 }
 0x8ce   : > { %v3860_v13 = vand.u32 4294901760, %v3840_v59  ;;  %vm3664_vm4 = vmor %vm3662_vm3, %vm3663_vm0 }
 0x8cf   : > { %v3659_v1 = vsub.f32 1.0, %v3658_v58 }
 0x8d0   : > { %v3887_v28 = vsub.f32 %v3840_v59, %v3860_v13  ;;  %3861 = vmatpush.msra.mxu0 %v3860_v13 }
 0x8d1   : > { %v3660_v5 = vmul.f32 %v6555_v26, %v3659_v1  ;;  %v3656_v30 = vpop.xlane.xlu0 %3655 }
 0x8d2   : > { %v3888_v4 = vand.u32 4294901760, %v3887_v28  ;;  %6556 = vrcp.f32 %v3656_v30  ;;  %v3683_v47 = vand.u32 2147483648, %v3656_v30  ;;  %v3681_v27 = vand.u32 2147483647, %v3656_v30 }
 0x8d3   : > { %v3661_v14 = vadd.f32 %v6555_v26, %v3660_v5  ;;  %vm3677_vm7 = vweird.f32 %v3656_v30  ;;  %v6274_v5 = vld [vmem:[%s8223_s6 + $0x18] sm:$0xff] }
 0x8d4   : > { %v3889_v25 = vsub.f32 %v3887_v28, %v3888_v4  ;;  %v3684_v54 = vor.u32 1.1754944e-38, %v3683_v47  ;;  %vm3682_vm9 = vcmp.eq.f32.partialorder %v3681_v27, 8.507059e+37 }
 0x8d5   : > { %v3665_v33 = vsel %vm3664_vm4, %v6555_v26, %v3661_v14  ;;  %v3239_v50 = vpop.permute.xlu2 %3238 }
 0x8d6   : > { %v3670_v36 = vsel %vm3667_vm5, %v3669_v43, %v3665_v33  ;;  %v3890_v38 = vand.u32 4294901760, %v3889_v25 }
 0x8d7   : > { %v3671_v40 = vmul.f32 %v6551_v29, %v3670_v36 }
 0x8d8   : > { %v6557_v42 = vpop.eup %6556  ;;  %3891 = vmatpush.msra.mxu1 %v3890_v38  ;;  %v6488_v38 = vld [vmem:[%s8224_s7] ss:$0 sm:$0xff] }
 0x8d9   : > { %v3673_v44 = vmul.f32 %v6557_v42, %v3656_v30  ;;  %v3691_v45 = vsel %vm1382_vm1, %v3671_v40, 0  ;;  %vm3678_vm6 = vweird.f32 %v6557_v42  ;;  %v6272_v30 = vld [vmem:[%s8223_s6 + $0x8] sm:$0xff] }
 0x8da   : > { %v3710_v46 = vand.u32 4294901760, %v3691_v45  ;;  %vm3679_vm8 = vmor %vm3677_vm7, %vm3678_vm6 }
 0x8db   : > { %v3674_v31 = vsub.f32 1.0, %v3673_v44 }
 0x8dc   : > { %3741 = vmatmul.f32.vlgmr.msrb.gmra.mxu3 %v3710_v46  ;;  %v3711_v48 = vsub.f32 %v3691_v45, %v3710_v46 }
 0x8dd   : > { %v3675_v49 = vmul.f32 %v6557_v42, %v3674_v31  ;;  %3937 = vmatpush.msrb.mxu3 %v3860_v13 }
 0x8de   : > { %3765 = vmatmul.f32.vlgmr.msrb.gmra.mxu0 %v3711_v48  ;;  %v3712_v52 = vand.u32 4294901760, %v3711_v48 }
 0x8df   : > { %v3676_v53 = vadd.f32 %v6557_v42, %v3675_v49  ;;  %3963 = vmatpush.msrb.mxu0 %v3888_v4  ;;  %v6271_v4 = vld [vmem:[%s8223_s6] sm:$0xff] }
 0x8e0   : > { %3789 = vmatmul.f32.vlgmr.msrb.gmra.mxu1 %v3712_v52  ;;  %v3713_v60 = vsub.f32 %v3711_v48, %v3712_v52 }
 0x8e1   : > { %v3680_v61 = vsel %vm3679_vm8, %v6557_v42, %v3676_v53  ;;  %3985 = vmatpush.msrb.mxu1 %v3860_v13 }
 0x8e2   : > { %v3685_v63 = vsel %vm3682_vm9, %v3684_v54, %v3680_v61  ;;  %v3714_v0 = vand.u32 4294901760, %v3713_v60 }
 0x8e3   : > { %v3686_v3 = vmul.f32 %v7494_v20, %v3685_v63 }
 0x8e4   : > { %3715 = vmatmul.f32.vlgmr.msra.gmra.mxu2 %v3714_v0  ;;  %3835 = vmatmul.f32.vlgmr.msra.gmra.mxu3 %v3710_v46  ;;  %v2484_v51 = vpop.permute.xlu0 %2483 }
 0x8e5   : > { %3914 = vmatpush.msra.mxu2 %v3887_v28  ;;  %2490 = vst.msk [vmem:[#allocation2] sm:$0xff] %vm2489_vm10, %v2484_v51  ;;  %v3843_v23 = vsel %vm1382_vm1, %v3686_v3, 0  ;;  %v6275_v28 = vld [vmem:[%s8223_s6 + $0x20] sm:$0xff] }
 0x8e6   : > { %v3862_v6 = vand.u32 4294901760, %v3843_v23  ;;  %3245 = vst.msk [vmem:[#allocation2] sm:$0xff] %vm3244_vm11, %v3239_v50  ;;  %v6099_v50 = vld [vmem:[#allocation11 + $0xe0] sm:$0xf] }
 0x8e8   : > { %v3863_v7 = vsub.f32 %v3843_v23, %v3862_v6  ;;  %3893 = vmatmul.f32.vlgmr.msra.gmra.mxu1 %v3862_v6  ;;  %v6309_v23 = vld [vmem:[#allocation11 + $0xec] sm:$0xf0] }
 0x8ea   : > { %v3864_v8 = vand.u32 4294901760, %v3863_v7 }
 0x8ec   : > { %3813 = vmatmul.f32.vlgmr.msrb.gmra.mxu2 %v3710_v46  ;;  %3941 = vmatmul.f32.vlgmr.msrb.gmra.mxu3 %v3864_v8  ;;  %v2486_v34 = vpop.permute.xlu0 %2485  ;;  %v3865_v9 = vsub.f32 %v3863_v7, %v3864_v8  ;;  %v6969_v46 = vmov 128.0   ;;  %v6101_v8 = vld [vmem:[#allocation11 + $0xf0] sm:$0xf0] }
 0x8ed   : > { %2491 = vst.msk [vmem:[#allocation2 + $0x8] sm:$0xff] %vm2489_vm10, %v2486_v34  ;;  %4073 = vmatpush.bf16.msrb.mxu2 %v6278_v10  ;;  %6558 = vrcp.f32 %v6969_v46  ;;  %v6107_v34 = vld [vmem:[#allocation11 + $0xe8] sm:$0xf]  ;;  %v6308_v10 = vld [vmem:[#allocation11 + $0xec] sm:$0xf] }
 0x8ee   : > { %v3866_v55 = vand.u32 4294901760, %v3865_v9  ;;  %3246 = vst.msk [vmem:[#allocation2 + $0x8] sm:$0xff] %vm3244_vm11, %v3241_v62  ;;  %v6310_v9 = vld [vmem:[#allocation11 + $0xf4] sm:$0xf0]  ;;  %v6293_v46 = vld [vmem:[#allocation11 + $0x6c] sm:$0xf0] }
 0x8f0   : > { %3867 = vmatmul.f32.vlgmr.msra.gmra.mxu0 %v3866_v55  ;;  %3987 = vmatmul.f32.vlgmr.msrb.gmra.mxu1 %v3862_v6  ;;  %v6108_v55 = vor.u32 %v6310_v9, %v6107_v34  ;;  %v6290_v34 = vld [vmem:[#allocation11 + $0x54] sm:$0xf0] }
 0x8f1   : > { %4074 = vmatpush.bf16.msrb.mxu2 %v6277_v12  ;;  %v6109_v12 = vld [vmem:[#allocation11 + $0xf8] sm:$0xf0] }
 0x8f2   : > { %4379 = vmatpush.bf16.msra.mxu1 %v6108_v55  ;;  %v6288_v55 = vld [vmem:[#allocation11 + $0x4c] sm:$0xf] }
 0x8f3   : > { %v6559_v31 = vpop.eup %6558 }
 0x8f4   : > { %3917 = vmatmul.f32.vlgmr.msra.gmra.mxu2 %v3863_v7  ;;  %v4094_v47 = vmul.f32 128.0, %v6559_v31  ;;  %vm4098_vm13 = vweird.f32 %v6559_v31  ;;  %v6100_v7 = vor.u32 %v6309_v23, %v6099_v50  ;;  %v6289_v50 = vld [vmem:[#allocation11 + $0x4c] sm:$0xf0]  ;;  %v6287_v23 = vld [vmem:[#allocation11 + $0x44] sm:$0xf] }
 0x8f5   : > { %4075 = vmatpush.bf16.msrb.mxu2 %v6276_v16  ;;  %v6083_v16 = vld [vmem:[#allocation11 + $0xc0] sm:$0xf] }
 0x8f6   : > { %v4095_v48 = vsub.f32 1.0, %v4094_v47  ;;  %4351 = vmatpush.bf16.msra.mxu3 %v6100_v7  ;;  %v6021_v7 = vld [vmem:[#allocation11 + $0x50] sm:$0xf0] }
 0x8f7   : > { %v6024_v9 = vor.u32 %v6287_v23, %v6021_v7 }
 0x8f8   : > { %3965 = vmatmul.f32.vlgmr.msrb.gmra.mxu0 %v3862_v6  ;;  %v4096_v49 = vmul.f32 %v6559_v31, %v4095_v48  ;;  %v6307_v6 = vld [vmem:[#allocation11 + $0xe4] sm:$0xf]  ;;  %v6037_v48 = vld [vmem:[#allocation11 + $0x70] sm:$0xf0] }
 0x8f9   : > { %4076 = vmatpush.bf16.msrb.mxu2 %v6275_v28  ;;  %v6104_v62 = vor.u32 %v6307_v6, %v6101_v8  ;;  %v6077_v28 = vld [vmem:[#allocation11 + $0xb8] sm:$0xf0]  ;;  %v6027_v8 = vld [vmem:[#allocation11 + $0x48] sm:$0xf] }
 0x8fa   : > { %v4097_v27 = vadd.f32 %v6559_v31, %v4096_v49  ;;  %v6043_v49 = vld [vmem:[#allocation11 + $0x68] sm:$0xf] }
 0x8fb   : > { %4365 = vmatpush.bf16.msra.mxu0 %v6104_v62  ;;  %v6028_v62 = vor.u32 %v6290_v34, %v6027_v8 }
 0x8fc   : > { %v7542_v52 = vsel %vm4098_vm13, %v6559_v31, %v4097_v27  ;;  %v6291_v31 = vld [vmem:[#allocation11 + $0x64] sm:$0xf]  ;;  %v6294_v27 = vld [vmem:[#allocation11 + $0x74] sm:$0xf0] }
 0x8fd   : > { %4077 = vmatpush.bf16.msrb.mxu2 %v6274_v5 }
 0x901   : > { %4078 = vmatpush.bf16.msrb.mxu2 %v6273_v39  ;;  %v6051_v39 = vld [vmem:[#allocation11 + $0x80] sm:$0xf] }
 0x905   : > { %4079 = vmatpush.bf16.msrb.mxu2 %v6272_v30  ;;  %v6297_v30 = vld [vmem:[#allocation11 + $0x8c] sm:$0xf0] }
 0x909   : > { %4080 = vmatpush.bf16.msrb.mxu2 %v6271_v4  ;;  %v6295_v4 = vld [vmem:[#allocation11 + $0x84] sm:$0xf] }
 0x95b   : > { %v3766_v57 = vpop.f32.mrf.mxu0 }
 0x95d   : > { %v3790_v41 = vpop.f32.mrf.mxu1 }
 0x95f   : > { %v3742_v15 = vpop.f32.mrf.mxu3 }
 0x965   : > { %v3894_v11 = vpop.f32.mrf.mxu1 }
 0x967   : > { %v3716_v17 = vpop.f32.mrf.mxu2  ;;  %v3836_v20 = vpop.f32.mrf.mxu3 }
 0x968   : > { %v3743_v29 = vadd.f32 %v3742_v15, %v3716_v17  ;;  %v6112_v15 = vor.u32 %v6308_v10, %v6109_v12  ;;  %v6305_v17 = vld [vmem:[#allocation11 + $0xcc] sm:$0xf0]  ;;  %v6029_v10 = vld [vmem:[#allocation11 + $0x58] sm:$0xf0] }
 0x969   : > { %v6032_v12 = vor.u32 %v6288_v55, %v6029_v10 }
 0x96a   : > { %v3767_v18 = vadd.f32 %v3766_v57, %v3743_v29  ;;  %v6303_v29 = vld [vmem:[#allocation11 + $0xc4] sm:$0xf]  ;;  %4393 = vmatpush.bf16.msra.mxu2 %v6112_v15  ;;  %v6084_v57 = vor.u32 %v6305_v17, %v6083_v16  ;;  %v6003_v16 = vld [vmem:[#allocation11 + $0x20] sm:$0xf]  ;;  %v6285_v17 = vld [vmem:[#allocation11 + $0x2c] sm:$0xf0] }
 0x96c   : > { %v3791_v19 = vadd.f32 %v3790_v41, %v3767_v18  ;;  %v6085_v41 = vld [vmem:[#allocation11 + $0xd0] sm:$0xf0]  ;;  %v6091_v18 = vld [vmem:[#allocation11 + $0xc8] sm:$0xf]  ;;  %4352 = vmatpush.bf16.msra.mxu3 %v6084_v57 }
 0x96d   : > { %v3868_v37 = vpop.f32.mrf.mxu0  ;;  %v3988_v1 = vpop.f32.mrf.mxu1 }
 0x96e   : > { %v3895_v22 = vadd.f32 %v3894_v11, %v3868_v37  ;;  %v6093_v37 = vld [vmem:[#allocation11 + $0xd8] sm:$0xf0]  ;;  %v6067_v11 = vld [vmem:[#allocation11 + $0xa0] sm:$0xf] }
 0x96f   : > { %v3814_v56 = vpop.f32.mrf.mxu2  ;;  %v3942_v26 = vpop.f32.mrf.mxu3 }
 0x970   : > { %v3815_v2 = vadd.f32 %v3814_v56, %v3791_v19  ;;  %v6306_v19 = vld [vmem:[#allocation11 + $0xd4] sm:$0xf0] }
 0x971   : > { %v6092_v56 = vor.u32 %v6306_v19, %v6091_v18  ;;  %v6005_v18 = vld [vmem:[#allocation11 + $0x30] sm:$0xf0]  ;;  %v6011_v19 = vld [vmem:[#allocation11 + $0x28] sm:$0xf] }
 0x972   : > { %v3837_v21 = vadd.f32 %v3836_v20, %v3815_v2  ;;  %v6088_v20 = vor.u32 %v6303_v29, %v6085_v41  ;;  %v6304_v2 = vld [vmem:[#allocation11 + $0xcc] sm:$0xf]  ;;  %v6283_v29 = vld [vmem:[#allocation11 + $0x24] sm:$0xf]  ;;  %v6004_v41 = vor.u32 %v6285_v17, %v6003_v16 }
 0x973   : > { %4380 = vmatpush.bf16.msra.mxu1 %v6092_v56  ;;  %v6008_v56 = vor.u32 %v6283_v29, %v6005_v18 }
 0x974   : > { %3993 = vrot.lane.b32.xlu0 %v3837_v21, %s6966_s29  ;;  %v6096_v21 = vor.u32 %v6304_v2, %v6093_v37  ;;  %4366 = vmatpush.bf16.msra.mxu0 %v6088_v20  ;;  %v6286_v20 = vld [vmem:[#allocation11 + $0x34] sm:$0xf0]  ;;  %v6284_v37 = vld [vmem:[#allocation11 + $0x2c] sm:$0xf] }
 0x975   : > { %v3966_v59 = vpop.f32.mrf.mxu0  ;;  %v6012_v2 = vor.u32 %v6286_v20, %v6011_v19 }
 0x976   : > { %4394 = vmatpush.bf16.msra.mxu2 %v6096_v21  ;;  %v6013_v21 = vld [vmem:[#allocation11 + $0x38] sm:$0xf0] }
 0x977   : > { %v3918_v24 = vpop.f32.mrf.mxu2 }
 0x978   : > { %v3919_v35 = vadd.f32 %v3918_v24, %v3895_v22  ;;  %v6301_v22 = vld [vmem:[#allocation11 + $0xac] sm:$0xf0]  ;;  %v6299_v24 = vld [vmem:[#allocation11 + $0xa4] sm:$0xf] }
 0x97a   : > { %v3943_v58 = vadd.f32 %v3942_v26, %v3919_v35  ;;  %v6068_v35 = vor.u32 %v6301_v22, %v6067_v11  ;;  %v6069_v26 = vld [vmem:[#allocation11 + $0xb0] sm:$0xf0]  ;;  %v6016_v22 = vor.u32 %v6284_v37, %v6013_v21 }
 0x97c   : > { %v3967_v13 = vadd.f32 %v3966_v59, %v3943_v58  ;;  %v6075_v58 = vld [vmem:[#allocation11 + $0xa8] sm:$0xf]  ;;  %v6302_v59 = vld [vmem:[#allocation11 + $0xb4] sm:$0xf0]  ;;  %4353 = vmatpush.bf16.msra.mxu3 %v6068_v35  ;;  %v6281_v35 = vld [vmem:[#allocation11 + $0xc] sm:$0xf0] }
 0x97e   : > { %v3989_v32 = vadd.f32 %v3988_v1, %v3967_v13  ;;  %v6072_v13 = vor.u32 %v6299_v24, %v6069_v26  ;;  %v6076_v1 = vor.u32 %v6302_v59, %v6075_v58  ;;  %v5987_v24 = vld [vmem:[#allocation11] sm:$0xf]  ;;  %v6279_v58 = vld [vmem:[#allocation11 + $0x4] sm:$0xf]  ;;  %v5989_v59 = vld [vmem:[#allocation11 + $0x10] sm:$0xf0] }
 0x97f   : > { %v5988_v26 = vor.u32 %v6281_v35, %v5987_v24 }
 0x980   : > { %3995 = vrot.lane.b32.xlu2 %v3989_v32, %s6966_s29  ;;  %v6300_v32 = vld [vmem:[#allocation11 + $0xac] sm:$0xf]  ;;  %4367 = vmatpush.bf16.msra.mxu0 %v6072_v13  ;;  %v5995_v13 = vld [vmem:[#allocation11 + $0x8] sm:$0xf] }
 0x981   : > { %v6080_v5 = vor.u32 %v6300_v32, %v6077_v28  ;;  %4381 = vmatpush.bf16.msra.mxu1 %v6076_v1  ;;  %v5992_v1 = vor.u32 %v6279_v58, %v5989_v59  ;;  %v6282_v32 = vld [vmem:[#allocation11 + $0x14] sm:$0xf0]  ;;  %v6280_v28 = vld [vmem:[#allocation11 + $0xc] sm:$0xf] }
 0x983   : > { %4395 = vmatpush.bf16.msra.mxu2 %v6080_v5  ;;  %v5997_v5 = vld [vmem:[#allocation11 + $0x18] sm:$0xf0] }
 0x9da   : > { %v3996_v14 = vpop.permute.xlu2 %3995 }
 0x9db   : > { %4001 = vst.msk [vmem:[#allocation2 + $0x8] sm:$0xff] %vm3999_vm12, %v3996_v14  ;;  %v6052_v14 = vor.u32 %v6297_v30, %v6051_v39  ;;  %v5996_v39 = vor.u32 %v6282_v32, %v5995_v13  ;;  %v6000_v30 = vor.u32 %v6280_v28, %v5997_v5 }
 0x9dd   : > { %4354 = vmatpush.bf16.msra.mxu3 %v6052_v14 }
 0x9e2   : > { %v4003_v33 = vld [vmem:[#allocation2 + $0x8] sm:$0xff] }
 0x9e6   : > { %v3994_v43 = vpop.permute.xlu0 %3993 }
 0x9e7   : > { %4000 = vst.msk [vmem:[#allocation2] sm:$0xff] %vm3999_vm12, %v3994_v43  ;;  %v6053_v43 = vld [vmem:[#allocation11 + $0x90] sm:$0xf0] }
 0x9ee   : > { %v4002_v25 = vld [vmem:[#allocation2] sm:$0xff] }
 0x9ef   : > { %v4004_v36 = vpack.c.bf16 %v4003_v33, %v4002_v25  ;;  %v6059_v25 = vld [vmem:[#allocation11 + $0x88] sm:$0xf]  ;;  %v6298_v33 = vld [vmem:[#allocation11 + $0x94] sm:$0xf0] }
 0x9f1   : > { %4081 = vmatmul.bf16.vlgmr.msrb.gmra.mxu2 %v4004_v36  ;;  %v6056_v36 = vor.u32 %v6295_v4, %v6053_v43 }
 0x9f3   : > { %4368 = vmatpush.bf16.msra.mxu0 %v6056_v36 }
 0xa74   : > { %v4082_v40 = vpop.f32.mrf.mxu2 }
 0xa75   : > { %v4083_v42 = vadd.f32 %v6488_v38, %v4082_v40  ;;  %v6296_v40 = vld [vmem:[#allocation11 + $0x8c] sm:$0xf] }
 0xa77   : > { %4089 = vadd.xlane.f32.xlu1 %v4083_v42 }
 0xa7c   : > { %v4084_v44 = vpop.f32.mrf.mxu2 }
 0xa7d   : > { %v4085_v45 = vadd.f32 %v6488_v38, %v4084_v44  ;;  %v6060_v38 = vor.u32 %v6298_v33, %v6059_v25 }
 0xa7f   : > { %4091 = vadd.xlane.f32.xlu0 %v4085_v45  ;;  %4382 = vmatpush.bf16.msra.mxu1 %v6060_v38 }
 0xaea   : > { %v4090_v53 = vpop.xlane.xlu1 %4089 }
 0xaeb   : > { %v4100_v54 = vmul.f32 %v7542_v52, %v4090_v53  ;;  %v6040_v53 = vor.u32 %v6291_v31, %v6037_v48  ;;  %v6489_v48 = vld [vmem:[%s8225_s8] ss:$0 sm:$0xff] }
 0xaed   : > { %v7545_v60 = vsub.f32 %v4083_v42, %v4100_v54  ;;  %v6061_v42 = vld [vmem:[#allocation11 + $0x98] sm:$0xf0]  ;;  %v6044_v54 = vor.u32 %v6294_v27, %v6043_v49  ;;  %4369 = vmatpush.bf16.msra.mxu0 %v6040_v53 }
 0xaee   : > { %v6064_v44 = vor.u32 %v6296_v40, %v6061_v42 }
 0xaef   : > { %v4104_v61 = vmul.f32 %v7545_v60, %v7545_v60  ;;  %4383 = vmatpush.bf16.msra.mxu1 %v6044_v54  ;;  %v6490_v54 = vld [vmem:[%s8226_s9] ss:$0 sm:$0xff] }
 0xaf0   : > { %4396 = vmatpush.bf16.msra.mxu2 %v6064_v44 }
 0xaf1   : > { %4106 = vadd.xlane.f32.xlu2 %v4104_v61  ;;  %v6292_v61 = vld [vmem:[#allocation11 + $0x6c] sm:$0xf]  ;;  %4370 = vmatpush.bf16.msra.mxu0 %v6024_v9 }
 0xaf2   : > { %v4092_v63 = vpop.xlane.xlu0 %4091 }
 0xaf3   : > { %v4101_v0 = vmul.f32 %v7542_v52, %v4092_v63  ;;  %v6045_v63 = vld [vmem:[#allocation11 + $0x78] sm:$0xf0]  ;;  %4384 = vmatpush.bf16.msra.mxu1 %v6028_v62 }
 0xaf5   : > { %v7550_v3 = vsub.f32 %v4085_v45, %v4101_v0  ;;  %v6035_v45 = vld [vmem:[#allocation11 + $0x60] sm:$0xf]  ;;  %v6048_v0 = vor.u32 %v6292_v61, %v6045_v63  ;;  %4371 = vmatpush.bf16.msra.mxu0 %v6008_v56 }
 0xaf6   : > { %v6036_v47 = vor.u32 %v6293_v46, %v6035_v45 }
 0xaf7   : > { %v4105_v51 = vmul.f32 %v7550_v3, %v7550_v3  ;;  %4397 = vmatpush.bf16.msra.mxu2 %v6048_v0  ;;  %4385 = vmatpush.bf16.msra.mxu1 %v6012_v2 }
 0xaf8   : > { %4355 = vmatpush.bf16.msra.mxu3 %v6036_v47 }
 0xaf9   : > { %4108 = vadd.xlane.f32.xlu1 %v4105_v51  ;;  %v6019_v51 = vld [vmem:[#allocation11 + $0x40] sm:$0xf]  ;;  %4372 = vmatpush.bf16.msra.mxu0 %v5992_v1 }
 0xafa   : > { %v6020_v6 = vor.u32 %v6289_v50, %v6019_v51 }
 0xafb   : > { %4398 = vmatpush.bf16.msra.mxu2 %v6032_v12  ;;  %4386 = vmatpush.bf16.msra.mxu1 %v5996_v39 }
 0xafc   : > { %4356 = vmatpush.bf16.msra.mxu3 %v6020_v6  ;;  %v6606_v6 = vld [vmem:[%s7224_s22] sm:$0xff] }
 0xaff   : > { %4399 = vmatpush.bf16.msra.mxu2 %v6016_v22 }
 0xb00   : > { %4357 = vmatpush.bf16.msra.mxu3 %v6004_v41 }
 0xb03   : > { %4400 = vmatpush.bf16.msra.mxu2 %v6000_v30 }
 0xb04   : > { %4358 = vmatpush.bf16.msra.mxu3 %v5988_v26 }
 0xb64   : > { %v4107_v15 = vpop.xlane.xlu2 %4106 }
 0xb65   : > { %v4110_v57 = vmul.f32 %v4107_v15, %v7542_v52 }
 0xb67   : > { %v4112_v11 = vadd.f32 1e-05, %v4110_v57 }
 0xb69   : > { %6560 = vrsqrt.f32 %v4112_v11  ;;  %vm4120_vm15 = vweird.f32 %v4112_v11 }
 0xb6c   : > { %v4109_v4 = vpop.xlane.xlu1 %4108 }
 0xb6d   : > { %v4111_v14 = vmul.f32 %v4109_v4, %v7542_v52 }
 0xb6f   : > { %v6561_v43 = vpop.eup %6560  ;;  %v4113_v25 = vadd.f32 1e-05, %v4111_v14 }
 0xb70   : > { %v4115_v33 = vmul.f32 %v6561_v43, %v4112_v11  ;;  %vm4121_vm14 = vweird.f32 %v6561_v43 }
 0xb71   : > { %6562 = vrsqrt.f32 %v4113_v25  ;;  %vm4122_vm2 = vmor %vm4120_vm15, %vm4121_vm14  ;;  %vm4130_vm3 = vweird.f32 %v4113_v25 }
 0xb72   : > { %v4116_v36 = vmul.f32 %v6561_v43, %v4115_v33 }
 0xb74   : > { %v4117_v38 = vmul.f32 0.5, %v4116_v36 }
 0xb76   : > { %v4118_v40 = vsub.f32 1.5, %v4117_v38 }
 0xb77   : > { %v6563_v42 = vpop.eup %6562 }
 0xb78   : > { %v4119_v44 = vmul.f32 %v6561_v43, %v4118_v40  ;;  %v4125_v45 = vmul.f32 %v6563_v42, %v4113_v25  ;;  %vm4131_vm0 = vweird.f32 %v6563_v42 }
 0xb79   : > { %vm4132_vm4 = vmor %vm4130_vm3, %vm4131_vm0 }
 0xb7a   : > { %v4123_v46 = vsel %vm4122_vm2, %v6561_v43, %v4119_v44  ;;  %v4126_v31 = vmul.f32 %v6563_v42, %v4125_v45 }
 0xb7b   : > { %v4134_v49 = vmul.f32 %v4123_v46, %v7545_v60  ;;  %v6607_v60 = vld [vmem:[%s7224_s22 + $0x8] sm:$0xff]  ;;  %s5132_s22 = sld [smem:[#allocation3]] }
 0xb7c   : > { %v4127_v47 = vmul.f32 0.5, %v4126_v31 }
 0xb7d   : > { %v4139_v61 = vmul.f32 %v6489_v48, %v4134_v49 }
 0xb7e   : > { %v4128_v27 = vsub.f32 1.5, %v4127_v47 }
 0xb7f   : > { %v4144_v51 = vadd.f32 %v6490_v54, %v4139_v61 }
 0xb80   : > { %v4129_v53 = vmul.f32 %v6563_v42, %v4128_v27 }
 0xb81   : > { %v7565_v7 = vadd.f32 %v6606_v6, %v4144_v51 }
 0xb82   : > { %v4133_v63 = vsel %vm4132_vm4, %v6563_v42, %v4129_v53 }
 0xb83   : > { %v4135_v0 = vmul.f32 %v4133_v63, %v7550_v3  ;;  %v7575_v3 = vld [vmem:[%s8228_s11] sm:$0xf] }
 0xb84   : > { %v4184_v9 = vperm.slane %v7575_v3, 1  ;;  %v4185_v62 = vperm.slane %v7575_v3, 2  ;;  %v4183_v17 = vperm.slane %v7575_v3, 0  ;;  %v4186_v57 = vperm.slane %v7575_v3, 3 }
 0xb85   : > { %v4140_v50 = vmul.f32 %v6489_v48, %v4135_v0 }
 0xb87   : > { %v4145_v23 = vadd.f32 %v6490_v54, %v4140_v50 }
 0xb89   : > { %v7568_v8 = vadd.f32 %v6607_v60, %v4145_v23 }
 0xb8b   : > { %v4148_v34 = vpack.c.bf16 %v7568_v8, %v7565_v7 }
 0xb8d   : > { %4359 = vmatmul.bf16.vlgmr.msra.gmra.mxu3 %v4148_v34  ;;  %4373 = vmatmul.bf16.vlgmr.msra.gmra.mxu0 %v4148_v34 }
 0xb8e   : > { %4387 = vmatmul.bf16.vlgmr.msra.gmra.mxu1 %v4148_v34  ;;  %4401 = vmatmul.bf16.vlgmr.msra.gmra.mxu2 %v4148_v34 }
 0xc0a   : > { %v4374_v55 = vpop.f32.mrf.mxu0 }
 0xc0b   : > { %v7579_v10 = vadd.f32 %v4374_v55, %v4184_v9  ;;  %v4388_v12 = vpop.f32.mrf.mxu1 }
 0xc0c   : > { %v7581_v15 = vadd.f32 %v4388_v12, %v4185_v62 }
 0xc0d   : > { %v7584_v16 = vmul.f32 0.70710677, %v7579_v10 }
 0xc0e   : > { %v7588_v29 = vmul.f32 0.70710677, %v7581_v15 }
 0xc0f   : > { %v7592_v41 = vand.u32 2147483647, %v7584_v16  ;;  %vm4424_vm2 = vcmp.ge.f32.partialorder %v7584_v16, 0.0 }
 0xc10   : > { %v7595_v18 = vand.u32 2147483647, %v7588_v29  ;;  %v4360_v19 = vpop.f32.mrf.mxu3 }
 0xc11   : > { %v4448_v20 = vmul.f32 0.3275911, %v7592_v41  ;;  %v7600_v56 = vadd.f32 %v4360_v19, %v4183_v17  ;;  %v4402_v2 = vpop.f32.mrf.mxu2 }
 0xc12   : > { %v4449_v37 = vmul.f32 0.3275911, %v7595_v18  ;;  %v7605_v21 = vadd.f32 %v4402_v2, %v4186_v57  ;;  %v4376_v5 = vpop.f32.mrf.mxu0 }
 0xc13   : > { %v4456_v11 = vadd.f32 1.0, %v4448_v20  ;;  %v7608_v24 = vmul.f32 0.70710677, %v7600_v56  ;;  %v4390_v4 = vpop.f32.mrf.mxu1  ;;  %v7626_v38 = vadd.f32 %v4376_v5, %v4184_v9 }
 0xc14   : > { %v4457_v22 = vadd.f32 1.0, %v4449_v37  ;;  %v7611_v35 = vmul.f32 0.70710677, %v7605_v21  ;;  %v7628_v44 = vadd.f32 %v4390_v4, %v4185_v62 }
 0xc15   : > { %6564 = vrcp.f32 %v4456_v11  ;;  %v7614_v26 = vand.u32 2147483647, %v7608_v24  ;;  %v4487_v43 = vand.u32 2147483647, %v4456_v11  ;;  %v4489_v25 = vand.u32 2147483648, %v4456_v11 }
 0xc16   : > { %6566 = vrcp.f32 %v4457_v22  ;;  %v7618_v59 = vand.u32 2147483647, %v7611_v35  ;;  %v4504_v42 = vand.u32 2147483648, %v4457_v22  ;;  %v4502_v46 = vand.u32 2147483647, %v4457_v22 }
 0xc17   : > { %v4447_v58 = vmul.f32 0.3275911, %v7614_v26  ;;  %vm4483_vm7 = vweird.f32 %v4456_v11  ;;  %v4490_v47 = vor.u32 1.1754944e-38, %v4489_v25  ;;  %vm4498_vm9 = vweird.f32 %v4457_v22 }
 0xc18   : > { %v4450_v30 = vmul.f32 0.3275911, %v7618_v59  ;;  %v7632_v49 = vmul.f32 0.70710677, %v7626_v38  ;;  %vm4488_vm10 = vcmp.eq.f32.partialorder %v4487_v43, 8.507059e+37  ;;  %v4505_v54 = vor.u32 1.1754944e-38, %v4504_v42 }
 0xc19   : > { %v7620_v28 = vadd.f32 1.0, %v4447_v58  ;;  %v7635_v61 = vmul.f32 0.70710677, %v7628_v44  ;;  %vm4503_vm12 = vcmp.eq.f32.partialorder %v4502_v46, 8.507059e+37 }
 0xc1a   : > { %v7624_v36 = vadd.f32 1.0, %v4450_v30  ;;  %v7645_v34 = vand.u32 2147483647, %v7632_v49  ;;  %v4657_v30 = vsub.f32 0.0, %v7595_v18 }
 0xc1b   : > { %v6565_v13 = vpop.eup %6564  ;;  %6568 = vrcp.f32 %v7620_v28  ;;  %v7650_v55 = vand.u32 2147483647, %v7635_v61  ;;  %v4474_v5 = vand.u32 2147483648, %v7620_v28  ;;  %vm4468_vm14 = vweird.f32 %v7620_v28 }
 0xc1c   : > { %v6567_v1 = vpop.eup %6566  ;;  %v4479_v32 = vmul.f32 %v6565_v13, %v4456_v11  ;;  %vm4484_vm5 = vweird.f32 %v6565_v13  ;;  %6570 = vrcp.f32 %v7624_v36  ;;  %v4452_v2 = vmul.f32 0.3275911, %v7645_v34 }
 0xc1d   : > { %v4494_v39 = vmul.f32 %v6567_v1, %v4457_v22  ;;  %vm4499_vm6 = vweird.f32 %v6567_v1  ;;  %vm4485_vm8 = vmor %vm4483_vm7, %vm4484_vm5  ;;  %v4453_v11 = vmul.f32 0.3275911, %v7650_v55  ;;  %v4472_v4 = vand.u32 2147483647, %v7620_v28 }
 0xc1e   : > { %v4480_v14 = vsub.f32 1.0, %v4479_v32  ;;  %vm4500_vm11 = vmor %vm4498_vm9, %vm4499_vm6  ;;  %v4475_v42 = vor.u32 1.1754944e-38, %v4474_v5  ;;  %v4517_v16 = vand.u32 2147483647, %v7624_v36  ;;  %vm4513_vm4 = vweird.f32 %v7624_v36 }
 0xc1f   : > { %v4495_v33 = vsub.f32 1.0, %v4494_v39  ;;  %v7662_v39 = vadd.f32 1.0, %v4453_v11  ;;  %vm4473_vm0 = vcmp.eq.f32.partialorder %v4472_v4, 8.507059e+37  ;;  %vm4425_vm9 = vcmp.ge.f32.partialorder %v7588_v29, 0.0  ;;  %v6340_v29 = vld [vmem:[#allocation12 + $0xe8] sm:$0xff] }
 0xc20   : > { %v4481_v40 = vmul.f32 %v6565_v13, %v4480_v14  ;;  %vm4518_vm6 = vcmp.eq.f32.partialorder %v4517_v16, 8.507059e+37 }
 0xc21   : > { %v4496_v45 = vmul.f32 %v6567_v1, %v4495_v33  ;;  %v6569_v27 = vpop.eup %6568 }
 0xc22   : > { %v4482_v31 = vadd.f32 %v6565_v13, %v4481_v40  ;;  %v4464_v51 = vmul.f32 %v6569_v27, %v7620_v28  ;;  %v7647_v9 = vpop.eup %6570  ;;  %vm4469_vm13 = vweird.f32 %v6569_v27  ;;  %v7674_v28 = vmul.f32 0.5, %v7579_v10 }
 0xc23   : > { %v4497_v48 = vadd.f32 %v6567_v1, %v4496_v45  ;;  %v4509_v20 = vmul.f32 %v7647_v9, %v7624_v36  ;;  %vm4470_vm15 = vmor %vm4468_vm14, %vm4469_vm13  ;;  %v4665_v45 = vmul.f32 %v4657_v30, %v7595_v18  ;;  %vm4514_vm3 = vweird.f32 %v7647_v9 }
 0xc24   : > { %v4486_v53 = vsel %vm4485_vm8, %v6565_v13, %v4482_v31  ;;  %v4465_v60 = vsub.f32 1.0, %v4464_v51  ;;  %v7657_v13 = vadd.f32 1.0, %v4452_v2  ;;  %v7678_v31 = vmul.f32 0.5, %v7581_v15  ;;  %vm7704_vm5 = vmor %vm4513_vm4, %vm4514_vm3 }
 0xc25   : > { %v7637_v63 = vsel %vm4488_vm10, %v4490_v47, %v4486_v53  ;;  %v4501_v0 = vsel %vm4500_vm11, %v6567_v1, %v4497_v48  ;;  %v4510_v58 = vsub.f32 1.0, %v4509_v20  ;;  %v4656_v1 = vsub.f32 0.0, %v7592_v41  ;;  %v4362_v48 = vpop.f32.mrf.mxu3 }
 0xc26   : > { %v4584_v50 = vmul.f32 1.0614054, %v7637_v63  ;;  %v7641_v23 = vsel %vm4503_vm12, %v4505_v54, %v4501_v0  ;;  %v4466_v19 = vmul.f32 %v6569_v27, %v4465_v60  ;;  %6572 = vrcp.f32 %v7657_v13 }
 0xc27   : > { %v4585_v6 = vmul.f32 1.0614054, %v7641_v23  ;;  %v4511_v25 = vmul.f32 %v7647_v9, %v4510_v58  ;;  %6574 = vrcp.f32 %v7662_v39  ;;  %v4664_v33 = vmul.f32 %v4656_v1, %v7592_v41  ;;  %v6326_v1 = vld [vmem:[#allocation12 + $0x78] sm:$0xff] }
 0xc28   : > { %v4592_v62 = vadd.f32 -1.4531521, %v4584_v50  ;;  %v4467_v22 = vadd.f32 %v6569_v27, %v4466_v19  ;;  %v4519_v18 = vand.u32 2147483648, %v7624_v36  ;;  %v6970_v53 = vmov -1.0   ;;  %5005 = vmatpush.bf16.msrb.mxu0 %v6326_v1  ;;  %v6318_v19 = vld [vmem:[#allocation12 + $0x38] sm:$0xff]  ;;  %v6332_v1 = vld [vmem:[#allocation12 + $0xa8] sm:$0xff] }
 0xc29   : > { %v4593_v12 = vadd.f32 -1.4531521, %v4585_v6  ;;  %v4512_v41 = vadd.f32 %v7647_v9, %v4511_v25  ;;  %v7687_v10 = vsel %vm4424_vm2, 1.0, %v6970_v53  ;;  %v4673_v54 = vmul.f32 1.442695, %v4664_v33  ;;  %4991 = vmatpush.bf16.msrb.mxu3 %v6318_v19 }
 0xc2a   : > { %v4600_v37 = vmul.f32 %v4592_v62, %v7637_v63  ;;  %v4471_v43 = vsel %vm4470_vm15, %v6569_v27, %v4467_v22  ;;  %v7693_v50 = vmul.f32 1.442695, %v4665_v45  ;;  %v7699_v60 = vadd.f32 %v4362_v48, %v4183_v17  ;;  %v6325_v48 = vld [vmem:[#allocation12 + $0x70] sm:$0xff] }
 0xc2b   : > { %v4601_v32 = vmul.f32 %v4593_v12, %v7641_v23  ;;  %v7680_v47 = vsel %vm4473_vm0, %v4475_v42, %v4471_v43  ;;  %v4655_v12 = vsub.f32 0.0, %v7614_v26  ;;  %v4549_v2 = vand.u32 2147483648, %v7657_v13 }
 0xc2c   : > { %v4608_v14 = vadd.f32 1.4214138, %v4600_v37  ;;  %v6573_v27 = vpop.eup %6572  ;;  %v4583_v6 = vmul.f32 1.0614054, %v7680_v47  ;;  %v4516_v36 = vsel %vm7704_vm5, %v7647_v9, %v4512_v41  ;;  %v4520_v37 = vor.u32 1.1754944e-38, %v4519_v18  ;;  %v6333_v41 = vld [vmem:[#allocation12 + $0xb0] sm:$0xff]  ;;  %5006 = vmatpush.bf16.msrb.mxu0 %v6325_v48 }
 0xc2d   : > { %v4609_v40 = vadd.f32 1.4214138, %v4601_v32  ;;  %v4539_v0 = vmul.f32 %v6573_v27, %v7657_v13  ;;  %v7691_v51 = vpop.eup %6574  ;;  %vm4544_vm7 = vweird.f32 %v6573_v27  ;;  %v4547_v58 = vand.u32 2147483647, %v7657_v13  ;;  %v6334_v32 = vld [vmem:[#allocation12 + $0xb8] sm:$0xff]  ;;  %v6331_v48 = vld [vmem:[#allocation12 + $0xa0] sm:$0xff] }
 0xc2e   : > { %v4616_v46 = vmul.f32 %v4608_v14, %v7637_v63  ;;  %v4554_v17 = vmul.f32 %v7691_v51, %v7662_v39  ;;  %v4591_v5 = vadd.f32 -1.4531521, %v4583_v6  ;;  %vm4543_vm8 = vweird.f32 %v7657_v13  ;;  %5019 = vmatpush.bf16.msrb.mxu1 %v6334_v32 }
 0xc2f   : > { %v4617_v15 = vmul.f32 %v4609_v40, %v7641_v23  ;;  %v4540_v20 = vsub.f32 1.0, %v4539_v0  ;;  %v7717_v4 = vmul.f32 0.70710677, %v7699_v60  ;;  %v7721_v14 = vsel %vm4518_vm6, %v4520_v37, %v4516_v36  ;;  %vm4545_vm10 = vmor %vm4543_vm8, %vm4544_vm7 }
 0xc30   : > { %v4624_v62 = vadd.f32 -0.28449672, %v4616_v46  ;;  %v4555_v30 = vsub.f32 1.0, %v4554_v17  ;;  %v4550_v25 = vor.u32 1.1754944e-38, %v4549_v2  ;;  %vm4559_vm11 = vweird.f32 %v7691_v51 }
 0xc31   : > { %v4625_v11 = vadd.f32 -0.28449672, %v4617_v15  ;;  %v4541_v22 = vmul.f32 %v6573_v27, %v4540_v20  ;;  %v4564_v13 = vand.u32 2147483648, %v7662_v39  ;;  %v7728_v40 = vand.u32 2147483647, %v7717_v4  ;;  %v6342_v20 = vld [vmem:[#allocation12 + $0xf8] sm:$0xff] }
 0xc32   : > { %v4632_v9 = vmul.f32 %v4624_v62, %v7637_v63  ;;  %v4556_v33 = vmul.f32 %v7691_v51, %v4555_v30  ;;  %vm4548_vm12 = vcmp.eq.f32.partialorder %v4547_v58, 8.507059e+37  ;;  %v4660_v45 = vsub.f32 0.0, %v7645_v34  ;;  %5020 = vmatpush.bf16.msrb.mxu1 %v6333_v41  ;;  %5033 = vmatpush.bf16.msrb.mxu2 %v6342_v20  ;;  %v6324_v58 = vld [vmem:[#allocation12 + $0x68] sm:$0xff] }
 0xc33   : > { %v4542_v43 = vadd.f32 %v6573_v27, %v4541_v22  ;;  %v4562_v46 = vand.u32 2147483647, %v7662_v39  ;;  %v4633_v16 = vmul.f32 %v4625_v11, %v7641_v23  ;;  %vm4558_vm13 = vweird.f32 %v7662_v39  ;;  %v4404_v22 = vpop.f32.mrf.mxu2  ;;  %5007 = vmatpush.bf16.msrb.mxu0 %v6324_v58 }
 0xc34   : > { %v4557_v15 = vadd.f32 %v7691_v51, %v4556_v33  ;;  %v4599_v0 = vmul.f32 %v4591_v5, %v7680_v47  ;;  %v4586_v6 = vmul.f32 1.0614054, %v7721_v14  ;;  %vm7742_vm14 = vmor %vm4558_vm13, %vm4559_vm11  ;;  %v4640_v2 = vadd.f32 0.2548296, %v4632_v9  ;;  %v6341_v33 = vld [vmem:[#allocation12 + $0xf0] sm:$0xff] }
 0xc35   : > { %v4546_v42 = vsel %vm4545_vm10, %v6573_v27, %v4542_v43  ;;  %v4565_v36 = vor.u32 1.1754944e-38, %v4564_v13  ;;  %v4451_v37 = vmul.f32 0.3275911, %v7728_v40  ;;  %6576 = vpow2.f32 %v4673_v54 }
 0xc36   : > { %v7733_v18 = vsel %vm4548_vm12, %v4550_v25, %v4546_v42  ;;  %v4561_v39 = vsel %vm7742_vm14, %v7691_v51, %v4557_v15  ;;  %v4668_v11 = vmul.f32 %v4660_v45, %v7645_v34  ;;  %vm4563_vm15 = vcmp.eq.f32.partialorder %v4562_v46, 8.507059e+37  ;;  %5021 = vmatpush.bf16.msrb.mxu1 %v6332_v1  ;;  %v6317_v25 = vld [vmem:[#allocation12 + $0x30] sm:$0xff]  ;;  %5034 = vmatpush.bf16.msrb.mxu2 %v6341_v33  ;;  %v6323_v46 = vld [vmem:[#allocation12 + $0x60] sm:$0xff] }
 0xc37   : > { %v4588_v27 = vmul.f32 1.0614054, %v7733_v18  ;;  %v4641_v32 = vadd.f32 0.2548296, %v4633_v16  ;;  %v7751_v5 = vsel %vm4563_vm15, %v4565_v36, %v4561_v39  ;;  %v4661_v30 = vsub.f32 0.0, %v7650_v55  ;;  %4992 = vmatpush.bf16.msrb.mxu3 %v6317_v25  ;;  %5008 = vmatpush.bf16.msrb.mxu0 %v6323_v46  ;;  %v6322_v36 = vld [vmem:[#allocation12 + $0x58] sm:$0xff] }
 0xc38   : > { %v7754_v9 = vadd.f32 1.0, %v4451_v37  ;;  %v4607_v51 = vadd.f32 1.4214138, %v4599_v0  ;;  %v4663_v54 = vmul.f32 %v4655_v12, %v7614_v26  ;;  %v4589_v43 = vmul.f32 1.0614054, %v7751_v5  ;;  %v6330_v37 = vld [vmem:[#allocation12 + $0x98] sm:$0xff] }
 0xc39   : > { %v4596_v17 = vadd.f32 -1.4531521, %v4588_v27  ;;  %v4648_v13 = vmul.f32 %v4640_v2, %v7637_v63  ;;  %v4594_v42 = vadd.f32 -1.4531521, %v4586_v6  ;;  %v7765_v45 = vadd.f32 %v4404_v22, %v4186_v57  ;;  %v6316_v27 = vld [vmem:[#allocation12 + $0x28] sm:$0xff] }
 0xc3a   : > { %6578 = vrcp.f32 %v7754_v9  ;;  %v4597_v12 = vadd.f32 -1.4531521, %v4589_v43  ;;  %v7771_v41 = vsel %vm4425_vm9, 1.0, %v6970_v53  ;;  %v4658_v63 = vsub.f32 0.0, %v7618_v59  ;;  %5022 = vmatpush.bf16.msrb.mxu1 %v6331_v48  ;;  %5035 = vmatpush.bf16.msrb.mxu2 %v6340_v29 }
 0xc3b   : > { %v4604_v34 = vmul.f32 %v4596_v17, %v7733_v18  ;;  %6580 = vpow2.f32 %v7693_v50  ;;  %v4681_v16 = vmul.f32 1.442695, %v4668_v11  ;;  %v4669_v3 = vmul.f32 %v4661_v30, %v7650_v55  ;;  %v6577_v57 = vpop.eup %6576  ;;  %4993 = vmatpush.bf16.msrb.mxu3 %v6316_v27  ;;  %5009 = vmatpush.bf16.msrb.mxu0 %v6322_v36  ;;  %v6338_v27 = vld [vmem:[#allocation12 + $0xd8] sm:$0xff]  ;;  %v6320_v36 = vld [vmem:[#allocation12 + $0x48] sm:$0xff] }
 0xc3c   : > { %v4615_v15 = vmul.f32 %v4607_v51, %v7680_v47  ;;  %v7776_v50 = vmul.f32 1.442695, %v4663_v54  ;;  %v4605_v6 = vmul.f32 %v4597_v12, %v7751_v5  ;;  %v4688_v62 = vmul.f32 %v6577_v57, %v4648_v13  ;;  %v6315_v51 = vld [vmem:[#allocation12 + $0x20] sm:$0xff]  ;;  %v6321_v12 = vld [vmem:[#allocation12 + $0x50] sm:$0xff] }
 0xc3d   : > { %v4612_v26 = vadd.f32 1.4214138, %v4604_v34  ;;  %v4649_v19 = vmul.f32 %v4641_v32, %v7641_v23  ;;  %v4602_v20 = vmul.f32 %v4594_v42, %v7721_v14  ;;  %v7783_v55 = vmul.f32 0.70710677, %v7765_v45  ;;  %v6339_v54 = vld [vmem:[#allocation12 + $0xe0] sm:$0xff] }
 0xc3e   : > { %v4613_v39 = vadd.f32 1.4214138, %v4605_v6  ;;  %vm4428_vm2 = vcmp.ge.f32.partialorder %v7632_v49, 0.0  ;;  %6582 = vpow2.f32 %v4681_v16  ;;  %v4683_v11 = vmul.f32 1.442695, %v4669_v3  ;;  %5023 = vmatpush.bf16.msrb.mxu1 %v6330_v37  ;;  %5036 = vmatpush.bf16.msrb.mxu2 %v6339_v54  ;;  %v6329_v3 = vld [vmem:[#allocation12 + $0x90] sm:$0xff] }
 0xc3f   : > { %v4620_v0 = vmul.f32 %v4612_v26, %v7733_v18  ;;  %v7789_v22 = vand.u32 2147483647, %v7783_v55  ;;  %v4623_v58 = vadd.f32 -0.28449672, %v4615_v15  ;;  %v4696_v34 = vsub.f32 1.0, %v4688_v62  ;;  %4994 = vmatpush.bf16.msrb.mxu3 %v6315_v51  ;;  %5010 = vmatpush.bf16.msrb.mxu0 %v6321_v12  ;;  %v6314_v6 = vld [vmem:[#allocation12 + $0x18] sm:$0xff] }
 0xc40   : > { %v7785_v17 = vpop.eup %6578  ;;  %v4621_v32 = vmul.f32 %v4613_v39, %v7751_v5  ;;  %v4610_v25 = vadd.f32 1.4214138, %v4602_v20  ;;  %6584 = vpow2.f32 %v4683_v11  ;;  %v4532_v46 = vand.u32 2147483647, %v7754_v9  ;;  %v6328_v37 = vld [vmem:[#allocation12 + $0x88] sm:$0xff] }
 0xc41   : > { %v4628_v2 = vadd.f32 -0.28449672, %v4620_v0  ;;  %v6581_v23 = vpop.eup %6580  ;;  %v4524_v30 = vmul.f32 %v7785_v17, %v7754_v9  ;;  %v4454_v33 = vmul.f32 0.3275911, %v7789_v22  ;;  %v4534_v48 = vand.u32 2147483648, %v7754_v9 }
 0xc42   : > { %v4689_v43 = vmul.f32 %v6581_v23, %v4649_v19  ;;  %v4629_v42 = vadd.f32 -0.28449672, %v4621_v32  ;;  %vm4529_vm0 = vweird.f32 %v7785_v17  ;;  %v4704_v62 = vmul.f32 %v4696_v34, %v7687_v10  ;;  %5024 = vmatpush.bf16.msrb.mxu1 %v6329_v3  ;;  %5037 = vmatpush.bf16.msrb.mxu2 %v6338_v27 }
 0xc43   : > { %v4636_v1 = vmul.f32 %v4628_v2, %v7733_v18  ;;  %v4525_v26 = vsub.f32 1.0, %v4524_v30  ;;  %v7798_v16 = vadd.f32 1.0, %v4454_v33  ;;  %v4436_v20 = vsel %vm4428_vm2, 1.0, %v6970_v53  ;;  %4995 = vmatpush.bf16.msrb.mxu3 %v6314_v6  ;;  %5011 = vmatpush.bf16.msrb.mxu0 %v6320_v36  ;;  %v6337_v30 = vld [vmem:[#allocation12 + $0xd0] sm:$0xff] }
 0xc44   : > { %v4637_v15 = vmul.f32 %v4629_v42, %v7751_v5  ;;  %v6583_v29 = vpop.eup %6582  ;;  %v4697_v19 = vsub.f32 1.0, %v4689_v43  ;;  %vm4528_vm3 = vweird.f32 %v7754_v9  ;;  %v4631_v10 = vmul.f32 %v4623_v58, %v7680_v47  ;;  %v6313_v9 = vld [vmem:[#allocation12 + $0x10] sm:$0xff]  ;;  %v6327_v42 = vld [vmem:[#allocation12 + $0x80] sm:$0xff] }
 0xc45   : > { %v4644_v13 = vadd.f32 0.2548296, %v4636_v1  ;;  %v4526_v0 = vmul.f32 %v7785_v17, %v4525_v26  ;;  %6586 = vrcp.f32 %v7798_v16  ;;  %v4618_v11 = vmul.f32 %v4610_v25, %v7721_v14  ;;  %vm4530_vm5 = vmor %vm4528_vm3, %vm4529_vm0 }
 0xc46   : > { %v4645_v2 = vadd.f32 0.2548296, %v4637_v15  ;;  %vm4429_vm4 = vcmp.ge.f32.partialorder %v7635_v61, 0.0  ;;  %v4535_v49 = vor.u32 1.1754944e-38, %v4534_v48  ;;  %vm4533_vm6 = vcmp.eq.f32.partialorder %v4532_v46, 8.507059e+37  ;;  %v6585_v51 = vpop.eup %6584  ;;  %5025 = vmatpush.bf16.msrb.mxu1 %v6328_v37  ;;  %5038 = vmatpush.bf16.msrb.mxu2 %v6337_v30  ;;  %v6312_v15 = vld [vmem:[#allocation12 + $0x8] sm:$0xff] }
 0xc47   : > { %v4652_v57 = vmul.f32 %v4644_v13, %v7733_v18  ;;  %v4527_v39 = vadd.f32 %v7785_v17, %v4526_v0  ;;  %v4712_v54 = vadd.f32 1.0, %v4704_v62  ;;  %v4705_v58 = vmul.f32 %v4697_v19, %v7771_v41  ;;  %4996 = vmatpush.bf16.msrb.mxu3 %v6313_v9  ;;  %v6336_v0 = vld [vmem:[#allocation12 + $0xc8] sm:$0xff] }
 0xc48   : > { %v4653_v1 = vmul.f32 %v4645_v2, %v7751_v5  ;;  %v4659_v43 = vsub.f32 0.0, %v7728_v40  ;;  %v4412_v25 = vmul.f32 0.5, %v7626_v38  ;;  %v4639_v12 = vadd.f32 0.2548296, %v4631_v10  ;;  %v6335_v10 = vld [vmem:[#allocation12 + $0xc0] sm:$0xff] }
 0xc49   : > { %v4692_v18 = vmul.f32 %v6583_v29, %v4652_v57  ;;  %v4531_v32 = vsel %vm4530_vm5, %v7785_v17, %v4527_v39  ;;  %v6319_v17 = vld [vmem:[#allocation12 + $0x40] sm:$0xff]  ;;  %6588 = vpow2.f32 %v7776_v50  ;;  %v4413_v41 = vmul.f32 0.5, %v7628_v44 }
 0xc4a   : > { %v7819_v34 = vsel %vm4533_vm6, %v4535_v49, %v4531_v32  ;;  %v4693_v13 = vmul.f32 %v6585_v51, %v4653_v1  ;;  %v4437_v46 = vsel %vm4429_vm4, 1.0, %v6970_v53  ;;  %5012 = vmatpush.bf16.msrb.mxu0 %v6319_v17  ;;  %v4720_v6 = vmul.f32 %v4712_v54, %v7674_v28  ;;  %5026 = vmatpush.bf16.msrb.mxu1 %v6327_v42 }
 0xc4b   : > { %v4700_v23 = vsub.f32 1.0, %v4692_v18  ;;  %v4587_v5 = vmul.f32 1.0614054, %v7819_v34  ;;  %v6587_v26 = vpop.eup %6586  ;;  %v4713_v27 = vadd.f32 1.0, %v4705_v58  ;;  %v4626_v29 = vadd.f32 -0.28449672, %v4618_v11  ;;  %4997 = vmatpush.bf16.msrb.mxu3 %v6312_v15  ;;  %5039 = vmatpush.bf16.msrb.mxu2 %v6336_v0 }
 0xc4c   : > { %v4701_v38 = vsub.f32 1.0, %v4693_v13  ;;  %v4569_v57 = vmul.f32 %v6587_v26, %v7798_v16  ;;  %v4667_v50 = vmul.f32 %v4659_v43, %v7728_v40  ;;  %vm4574_vm7 = vweird.f32 %v6587_v26  ;;  %v6311_v40 = vld [vmem:[#allocation12] sm:$0xff] }
 0xc4d   : > { %v4708_v33 = vmul.f32 %v4700_v23, %v4436_v20  ;;  %v4595_v3 = vadd.f32 -1.4531521, %v4587_v5  ;;  %v4647_v20 = vmul.f32 %v4639_v12, %v7680_v47  ;;  %v4577_v18 = vand.u32 2147483647, %v7798_v16 }
 0xc4e   : > { %v4709_v62 = vmul.f32 %v4701_v38, %v4437_v46  ;;  %v4570_v19 = vsub.f32 1.0, %v4569_v57  ;;  %v4579_v2 = vand.u32 2147483648, %v7798_v16  ;;  %v4721_v49 = vmul.f32 %v4713_v27, %v7678_v31 }
 0xc4f   : > { %v4716_v48 = vadd.f32 1.0, %v4708_v33  ;;  %v4603_v61 = vmul.f32 %v4595_v3, %v7819_v34  ;;  %v6589_v11 = vpop.eup %6588  ;;  %v4666_v23 = vmul.f32 %v4658_v63, %v7618_v59  ;;  %v4679_v1 = vmul.f32 1.442695, %v4667_v50  ;;  %4998 = vmatpush.bf16.msrb.mxu3 %v6311_v40  ;;  %5040 = vmatpush.bf16.msrb.mxu2 %v6335_v10 }
 0xc50   : > { %v4717_v39 = vadd.f32 1.0, %v4709_v62  ;;  %v4571_v37 = vmul.f32 %v6587_v26, %v4570_v19  ;;  %vm4573_vm8 = vweird.f32 %v7798_v16  ;;  %v4687_v30 = vmul.f32 %v6589_v11, %v4647_v20 }
 0xc51   : > { %v4724_v44 = vmul.f32 %v4716_v48, %v4412_v25  ;;  %v4611_v36 = vadd.f32 1.4214138, %v4603_v61  ;;  %v4634_v51 = vmul.f32 %v4626_v29, %v7721_v14  ;;  %vm4575_vm9 = vmor %vm4573_vm8, %vm4574_vm7  ;;  %v4580_v54 = vor.u32 1.1754944e-38, %v4579_v2 }
 0xc52   : > { %v4725_v47 = vmul.f32 %v4717_v39, %v4413_v41  ;;  %v4572_v9 = vadd.f32 %v6587_v26, %v4571_v37  ;;  %vm4578_vm10 = vcmp.eq.f32.partialorder %v4577_v18, 8.507059e+37  ;;  %v4677_v59 = vmul.f32 1.442695, %v4666_v23 }
 0xc53   : > { %v4728_v28 = vpack.c.bf16 %v4724_v44, %v4720_v6  ;;  %v4619_v32 = vmul.f32 %v4611_v36, %v7819_v34  ;;  %6590 = vpow2.f32 %v4679_v1  ;;  %v4662_v25 = vsub.f32 0.0, %v7789_v22 }
 0xc54   : > { %v4729_v31 = vpack.c.bf16 %v4725_v47, %v4721_v49  ;;  %v4576_v43 = vsel %vm4575_vm9, %v6587_v26, %v4572_v9  ;;  %v4642_v13 = vadd.f32 0.2548296, %v4634_v51  ;;  %vm4423_vm11 = vcmp.ge.f32.partialorder %v7608_v24, 0.0 }
 0xc55   : > { %5013 = vmatmul.bf16.vlgmr.msrb.gmra.mxu0 %v4728_v28  ;;  %v4627_v58 = vadd.f32 -0.28449672, %v4619_v32  ;;  %v4581_v63 = vsel %vm4578_vm10, %v4580_v54, %v4576_v43  ;;  %v4695_v5 = vsub.f32 1.0, %v4687_v30  ;;  %6592 = vpow2.f32 %v4677_v59  ;;  %v6491_v30 = vld [vmem:[#allocation14] ss:$0 sm:$0xff] }
 0xc56   : > { %v4590_v33 = vmul.f32 1.0614054, %v4581_v63  ;;  %5027 = vmatmul.bf16.vlgmr.msrb.gmra.mxu1 %v4729_v31  ;;  %v4670_v12 = vmul.f32 %v4662_v25, %v7789_v22  ;;  %v4431_v48 = vsel %vm4423_vm11, 1.0, %v6970_v53  ;;  %vm4427_vm12 = vcmp.ge.f32.partialorder %v7717_v4, 0.0 }
 0xc57   : > { %v4635_v16 = vmul.f32 %v4627_v58, %v7819_v34  ;;  %v4703_v38 = vmul.f32 %v4695_v5, %v4431_v48  ;;  %v4650_v3 = vmul.f32 %v4642_v13, %v7721_v14  ;;  %v4435_v29 = vsel %vm4427_vm12, 1.0, %v6970_v53 }
 0xc58   : > { %v4598_v42 = vadd.f32 -1.4531521, %v4590_v33  ;;  %v4685_v24 = vmul.f32 1.442695, %v4670_v12  ;;  %v4407_v62 = vmul.f32 0.5, %v7600_v56  ;;  %v4411_v4 = vmul.f32 0.5, %v7699_v60 }
 0xc59   : > { %v4643_v17 = vadd.f32 0.2548296, %v4635_v16  ;;  %v6591_v46 = vpop.eup %6590  ;;  %v4711_v22 = vadd.f32 1.0, %v4703_v38  ;;  %vm4426_vm13 = vcmp.ge.f32.partialorder %v7611_v35, 0.0  ;;  %vm4430_vm14 = vcmp.ge.f32.partialorder %v7783_v55, 0.0 }
 0xc5a   : > { %v4606_v41 = vmul.f32 %v4598_v42, %v4581_v63  ;;  %6594 = vpow2.f32 %v4685_v24  ;;  %v4434_v37 = vsel %vm4426_vm13, 1.0, %v6970_v53  ;;  %v4438_v60 = vsel %vm4430_vm14, 1.0, %v6970_v53 }
 0xc5b   : > { %v4651_v26 = vmul.f32 %v4643_v17, %v7819_v34  ;;  %v6593_v27 = vpop.eup %6592  ;;  %v4719_v14 = vmul.f32 %v4711_v22, %v4407_v62  ;;  %v4410_v35 = vmul.f32 0.5, %v7605_v21  ;;  %v4414_v23 = vmul.f32 0.5, %v7765_v45 }
 0xc5c   : > { %v4614_v15 = vadd.f32 1.4214138, %v4606_v41  ;;  %v4690_v50 = vmul.f32 %v6593_v27, %v4650_v3  ;;  %v5131_v3 = vld [vmem:[%s8233_s16 + $0x78] sm:$0xff] }
 0xc5d   : > { %v4691_v57 = vmul.f32 %v6591_v46, %v4651_v26 }
 0xc5e   : > { %v4622_v6 = vmul.f32 %v4614_v15, %v4581_v63  ;;  %v4698_v20 = vsub.f32 1.0, %v4690_v50  ;;  %v5130_v15 = vld [vmem:[%s8233_s16 + $0x70] sm:$0xff]  ;;  %v5128_v50 = vld [vmem:[%s8233_s16 + $0x60] sm:$0xff] }
 0xc5f   : > { %v4699_v0 = vsub.f32 1.0, %v4691_v57  ;;  %v7874_v57 = vand.u32 4294901760, %v5131_v3 }
 0xc60   : > { %v4630_v44 = vadd.f32 -0.28449672, %v4622_v6  ;;  %v6595_v36 = vpop.eup %6594  ;;  %v4706_v40 = vmul.f32 %v4698_v20, %v4434_v37  ;;  %v5129_v6 = vld [vmem:[%s8233_s16 + $0x68] sm:$0xff] }
 0xc61   : > { %v4707_v34 = vmul.f32 %v4699_v0, %v4435_v29  ;;  %v7880_v24 = vsub.f32 %v5131_v3, %v7874_v57  ;;  %v7882_v0 = vand.u32 4294901760, %v5130_v15  ;;  %5137 = vmatpush.msra.mxu3 %v7874_v57  ;;  %5333 = vmatpush.msra.mxu2 %v7874_v57  ;;  %v7893_v22 = vand.u32 4294901760, %v5129_v6 }
 0xc62   : > { %v4638_v19 = vmul.f32 %v4630_v44, %v4581_v63  ;;  %v4714_v11 = vadd.f32 1.0, %v4706_v40 }
 0xc63   : > { %v4715_v61 = vadd.f32 1.0, %v4707_v34  ;;  %v5179_v27 = vand.u32 4294901760, %v7880_v24  ;;  %v7891_v29 = vsub.f32 %v5130_v15, %v7882_v0  ;;  %5139 = vmatpush.msra.mxu3 %v7882_v0  ;;  %5280 = vmatpush.msra.mxu1 %v7880_v24  ;;  %v7906_v62 = vsub.f32 %v5129_v6, %v7893_v22 }
 0xc64   : > { %v4646_v2 = vadd.f32 0.2548296, %v4638_v19  ;;  %v4722_v47 = vmul.f32 %v4714_v11, %v4410_v35  ;;  %5335 = vmatpush.msra.mxu2 %v7882_v0 }
 0xc65   : > { %v4723_v18 = vmul.f32 %v4715_v61, %v4411_v4  ;;  %v5180_v34 = vsub.f32 %v7880_v24, %v5179_v27  ;;  %v5185_v44 = vand.u32 4294901760, %v7891_v29  ;;  %v7908_v4 = vand.u32 4294901760, %v5128_v50  ;;  %5141 = vmatpush.msra.mxu3 %v7893_v22  ;;  %5283 = vmatpush.msra.mxu1 %v7891_v29  ;;  %v5127_v61 = vld [vmem:[%s8233_s16 + $0x58] sm:$0xff] }
 0xc66   : > { %v4654_v39 = vmul.f32 %v4646_v2, %v4581_v63  ;;  %5337 = vmatpush.msra.mxu2 %v7893_v22  ;;  %v5191_v20 = vand.u32 4294901760, %v7906_v62  ;;  %v7925_v2 = vand.u32 4294901760, %v5127_v61 }
 0xc67   : > { %v4727_v28 = vpack.c.bf16 %v4723_v18, %v4719_v14  ;;  %v5181_v19 = vand.u32 4294901760, %v5180_v34  ;;  %v5186_v14 = vsub.f32 %v7891_v29, %v5185_v44  ;;  %v7921_v18 = vsub.f32 %v5128_v50, %v7908_v4  ;;  %5143 = vmatpush.msra.mxu3 %v7908_v4  ;;  %5286 = vmatpush.msra.mxu1 %v7906_v62  ;;  %v5119_v50 = vld [vmem:[%s8233_s16 + $0x18] sm:$0xff] }
 0xc68   : > { %v4694_v10 = vmul.f32 %v6595_v36, %v4654_v39  ;;  %5339 = vmatpush.msra.mxu2 %v7908_v4  ;;  %v5192_v36 = vsub.f32 %v7906_v62, %v5191_v20 }
 0xc69   : > { %4999 = vmatmul.bf16.vlgmr.msrb.gmra.mxu3 %v4727_v28  ;;  %v5126_v28 = vld [vmem:[%s8233_s16 + $0x50] sm:$0xff]  ;;  %5182 = vmatpush.msra.mxu0 %v5181_v19  ;;  %v5187_v39 = vand.u32 4294901760, %v5186_v14  ;;  %v5197_v37 = vand.u32 4294901760, %v7921_v18  ;;  %v8038_v14 = vand.u32 4294901760, %v5119_v50 }
 0xc6a   : > { %v4702_v56 = vsub.f32 1.0, %v4694_v10  ;;  %v7935_v40 = vand.u32 4294901760, %v5126_v28  ;;  %5289 = vmatpush.msra.mxu1 %v7921_v18  ;;  %v7939_v10 = vsub.f32 %v5127_v61, %v7925_v2  ;;  %5145 = vmatpush.msra.mxu3 %v7925_v2 }
 0xc6b   : > { %5341 = vmatpush.msra.mxu2 %v7925_v2  ;;  %5188 = vmatpush.msra.mxu0 %v5187_v39  ;;  %v5198_v11 = vsub.f32 %v7921_v18, %v5197_v37  ;;  %v5118_v39 = vld [vmem:[%s8233_s16 + $0x10] sm:$0xff] }
 0xc6c   : > { %v4710_v49 = vmul.f32 %v4702_v56, %v4438_v60  ;;  %v5125_v56 = vld [vmem:[%s8233_s16 + $0x48] sm:$0xff]  ;;  %v5193_v60 = vand.u32 4294901760, %v5192_v36  ;;  %5147 = vmatpush.msra.mxu3 %v7935_v40  ;;  %5292 = vmatpush.msra.mxu1 %v7939_v10 }
 0xc6d   : > { %v7952_v35 = vand.u32 4294901760, %v5125_v56  ;;  %5343 = vmatpush.msra.mxu2 %v7935_v40 }
 0xc6e   : > { %v4718_v1 = vadd.f32 1.0, %v4710_v49  ;;  %v7950_v49 = vsub.f32 %v5126_v28, %v7935_v40  ;;  %5194 = vmatpush.msra.mxu0 %v5193_v60  ;;  %v8054_v60 = vsub.f32 %v5119_v50, %v8038_v14 }
 0xc6f   : > { %5149 = vmatpush.msra.mxu3 %v7952_v35  ;;  %5345 = vmatpush.msra.mxu2 %v7952_v35 }
 0xc70   : > { %v4726_v32 = vmul.f32 %v4718_v1, %v4414_v23  ;;  %v5203_v23 = vand.u32 4294901760, %v7939_v10  ;;  %v5124_v1 = vld [vmem:[%s8233_s16 + $0x40] sm:$0xff]  ;;  %5295 = vmatpush.msra.mxu1 %v7950_v49 }
 0xc72   : > { %v4730_v9 = vpack.c.bf16 %v4726_v32, %v4722_v47  ;;  %v5199_v47 = vand.u32 4294901760, %v5198_v11  ;;  %v5209_v32 = vand.u32 4294901760, %v7950_v49  ;;  %v8056_v11 = vand.u32 4294901760, %v5118_v39 }
 0xc74   : > { %5041 = vmatmul.bf16.vlgmr.msrb.gmra.mxu2 %v4730_v9  ;;  %v7962_v9 = vsub.f32 %v5125_v56, %v7952_v35  ;;  %5200 = vmatpush.msra.mxu0 %v5199_v47  ;;  %v5117_v47 = vld [vmem:[%s8233_s16 + $0x8] sm:$0xff] }
 0xc76   : > { %5298 = vmatpush.msra.mxu1 %v7962_v9 }
 0xcd2   : > { %v5014_v55 = vpop.f32.mrf.mxu0 }
 0xcd3   : > { %v5028_v58 = vpop.f32.mrf.mxu1 }
 0xcda   : > { %v5016_v63 = vpop.f32.mrf.mxu0 }
 0xcdb   : > { %v5030_v45 = vpop.f32.mrf.mxu1 }
 0xcec   : > { %v5000_v51 = vpop.f32.mrf.mxu3 }
 0xced   : > { %v5001_v54 = vadd.f32 %v6491_v30, %v5000_v51  ;;  %v5204_v51 = vsub.f32 %v7939_v10, %v5203_v23  ;;  %v6971_v10 = vmov 16.0  }
 0xcef   : > { %v5015_v31 = vadd.f32 %v5014_v55, %v5001_v54  ;;  %v5123_v54 = vld [vmem:[%s8233_s16 + $0x38] sm:$0xff]  ;;  %v5210_v55 = vsub.f32 %v7950_v49, %v5209_v32 }
 0xcf1   : > { %v5029_v59 = vadd.f32 %v5028_v58, %v5015_v31  ;;  %v5215_v31 = vand.u32 4294901760, %v7962_v9 }
 0xcf4   : > { %v5002_v43 = vpop.f32.mrf.mxu3 }
 0xcf5   : > { %v5003_v53 = vadd.f32 %v6491_v30, %v5002_v43  ;;  %v7964_v30 = vand.u32 4294901760, %v5124_v1  ;;  %v7982_v43 = vand.u32 4294901760, %v5123_v54 }
 0xcf7   : > { %v5042_v25 = vpop.f32.mrf.mxu2  ;;  %v5017_v21 = vadd.f32 %v5016_v63, %v5003_v53  ;;  %v7980_v58 = vsub.f32 %v5124_v1, %v7964_v30  ;;  %v5122_v53 = vld [vmem:[%s8233_s16 + $0x30] sm:$0xff]  ;;  %5151 = vmatpush.msra.mxu3 %v7964_v30  ;;  %v5211_v63 = vand.u32 4294901760, %v5210_v55  ;;  %5347 = vmatpush.msra.mxu2 %v7964_v30  ;;  %v5251_v55 = vand.u32 4294901760, %v8054_v60 }
 0xcf8   : > { %v5043_v16 = vadd.f32 %v5042_v25, %v5029_v59  ;;  %v5205_v59 = vand.u32 4294901760, %v5204_v51  ;;  %v5216_v25 = vsub.f32 %v7962_v9, %v5215_v31 }
 0xcf9   : > { %v5031_v33 = vadd.f32 %v5030_v45, %v5017_v21  ;;  %v7995_v21 = vsub.f32 %v5123_v54, %v7982_v43  ;;  %v7998_v45 = vand.u32 4294901760, %v5122_v53  ;;  %5153 = vmatpush.msra.mxu3 %v7982_v43  ;;  %5301 = vmatpush.msra.mxu1 %v7980_v58 }
 0xcfa   : > { %5049 = vadd.xlane.f32.xlu2 %v5043_v16  ;;  %5206 = vmatpush.msra.mxu0 %v5205_v59  ;;  %v8069_v59 = vsub.f32 %v5118_v39, %v8056_v11 }
 0xcfb   : > { %5349 = vmatpush.msra.mxu2 %v7982_v43  ;;  %5155 = vmatpush.msra.mxu3 %v7998_v45 }
 0xcfc   : > { %5212 = vmatpush.msra.mxu0 %v5211_v63  ;;  %5304 = vmatpush.msra.mxu1 %v7995_v21  ;;  %v5116_v63 = vld [vmem:[%s8233_s16] sm:$0xff] }
 0xcfd   : > { %5351 = vmatpush.msra.mxu2 %v7998_v45 }
 0xcff   : > { %v5044_v13 = vpop.f32.mrf.mxu2 }
 0xd00   : > { %v5045_v5 = vadd.f32 %v5044_v13, %v5031_v33  ;;  %v5121_v33 = vld [vmem:[%s8233_s16 + $0x28] sm:$0xff]  ;;  %v5217_v13 = vand.u32 4294901760, %v5216_v25 }
 0xd02   : > { %5051 = vadd.xlane.f32.xlu0 %v5045_v5  ;;  %5218 = vmatpush.msra.mxu0 %v5217_v13  ;;  %v5257_v13 = vand.u32 4294901760, %v8069_v59 }
 0xd04   : > { %v5258_v50 = vsub.f32 %v8069_v59, %v5257_v13 }
 0xd6d   : > { %v5050_v17 = vpop.xlane.xlu2 %5049 }
 0xd6e   : > { %v5053_v42 = vmul.f32 %v5050_v17, %v7542_v52  ;;  %v5227_v17 = vand.u32 4294901760, %v7995_v21 }
 0xd70   : > { %v7862_v12 = vsub.f32 %v5043_v16, %v5053_v42  ;;  %v5221_v16 = vand.u32 4294901760, %v7980_v58  ;;  %v8008_v42 = vand.u32 4294901760, %v5121_v33 }
 0xd72   : > { %v5057_v26 = vmul.f32 %v7862_v12, %v7862_v12  ;;  %v8023_v3 = vsub.f32 %v5121_v33, %v8008_v42  ;;  %5157 = vmatpush.msra.mxu3 %v8008_v42  ;;  %5353 = vmatpush.msra.mxu2 %v8008_v42  ;;  %v5252_v33 = vsub.f32 %v8054_v60, %v5251_v55 }
 0xd74   : > { %5059 = vadd.xlane.f32.xlu1 %v5057_v26  ;;  %v8013_v26 = vsub.f32 %v5122_v53, %v7998_v45  ;;  %v5239_v61 = vand.u32 4294901760, %v8023_v3  ;;  %v8073_v53 = vand.u32 4294901760, %v5117_v47 }
 0xd75   : > { %v5052_v41 = vpop.xlane.xlu0 %5051 }
 0xd76   : > { %v5054_v46 = vmul.f32 %v5052_v41, %v7542_v52  ;;  %v5120_v41 = vld [vmem:[%s8233_s16 + $0x20] sm:$0xff]  ;;  %v5233_v6 = vand.u32 4294901760, %v8013_v26  ;;  %5307 = vmatpush.msra.mxu1 %v8013_v26  ;;  %v5240_v36 = vsub.f32 %v8023_v3, %v5239_v61 }
 0xd77   : > { %v8025_v15 = vand.u32 4294901760, %v5120_v41 }
 0xd78   : > { %v7867_v48 = vsub.f32 %v5045_v5, %v5054_v46  ;;  %v5222_v5 = vsub.f32 %v7980_v58, %v5221_v16  ;;  %v5234_v28 = vsub.f32 %v8013_v26, %v5233_v6  ;;  %5310 = vmatpush.msra.mxu1 %v8023_v3  ;;  %v5241_v51 = vand.u32 4294901760, %v5240_v36 }
 0xd79   : > { %v8036_v19 = vsub.f32 %v5120_v41, %v8025_v15  ;;  %5159 = vmatpush.msra.mxu3 %v8025_v15  ;;  %5355 = vmatpush.msra.mxu2 %v8025_v15  ;;  %v8088_v41 = vsub.f32 %v5117_v47, %v8073_v53  ;;  %v5259_v36 = vand.u32 4294901760, %v5258_v50 }
 0xd7a   : > { %v5058_v38 = vmul.f32 %v7867_v48, %v7867_v48  ;;  %v5223_v46 = vand.u32 4294901760, %v5222_v5  ;;  %v5235_v1 = vand.u32 4294901760, %v5234_v28  ;;  %v8083_v5 = vand.u32 4294901760, %v5116_v63 }
 0xd7b   : > { %v5245_v56 = vand.u32 4294901760, %v8036_v19  ;;  %5161 = vmatpush.msra.mxu3 %v8038_v14  ;;  %5313 = vmatpush.msra.mxu1 %v8036_v19  ;;  %v5263_v39 = vand.u32 4294901760, %v8088_v41 }
 0xd7c   : > { %5061 = vadd.xlane.f32.xlu2 %v5058_v38  ;;  %v5228_v38 = vsub.f32 %v7995_v21, %v5227_v17  ;;  %5224 = vmatpush.msra.mxu0 %v5223_v46 }
 0xd7d   : > { %v5246_v54 = vsub.f32 %v8036_v19, %v5245_v56  ;;  %5357 = vmatpush.msra.mxu2 %v8038_v14  ;;  %5163 = vmatpush.msra.mxu3 %v8056_v11 }
 0xd7e   : > { %v5229_v34 = vand.u32 4294901760, %v5228_v38  ;;  %5316 = vmatpush.msra.mxu1 %v8054_v60  ;;  %v5253_v38 = vand.u32 4294901760, %v5252_v33 }
 0xd7f   : > { %v5247_v25 = vand.u32 4294901760, %v5246_v54  ;;  %5359 = vmatpush.msra.mxu2 %v8056_v11  ;;  %5165 = vmatpush.msra.mxu3 %v8073_v53 }
 0xd80   : > { %5230 = vmatpush.msra.mxu0 %v5229_v34  ;;  %v8095_v34 = vsub.f32 %v5116_v63, %v8083_v5  ;;  %5319 = vmatpush.msra.mxu1 %v8069_v59 }
 0xd81   : > { %5361 = vmatpush.msra.mxu2 %v8073_v53  ;;  %5167 = vmatpush.msra.mxu3 %v8083_v5 }
 0xd82   : > { %5236 = vmatpush.msra.mxu0 %v5235_v1  ;;  %v5269_v1 = vand.u32 4294901760, %v8095_v34  ;;  %5322 = vmatpush.msra.mxu1 %v8088_v41 }
 0xd83   : > { %5374 = vmatpush.msrb.mxu3 %v5179_v27  ;;  %5363 = vmatpush.msra.mxu2 %v8083_v5 }
 0xd84   : > { %5242 = vmatpush.msra.mxu0 %v5241_v51  ;;  %v5264_v51 = vsub.f32 %v8088_v41, %v5263_v39  ;;  %v5270_v54 = vsub.f32 %v8095_v34, %v5269_v1  ;;  %5325 = vmatpush.msra.mxu1 %v8095_v34 }
 0xd85   : > { %5378 = vmatpush.msrb.mxu3 %v5185_v44 }
 0xd86   : > { %5248 = vmatpush.msra.mxu0 %v5247_v25  ;;  %v5265_v24 = vand.u32 4294901760, %v5264_v51  ;;  %v5271_v27 = vand.u32 4294901760, %v5270_v54 }
 0xd87   : > { %5382 = vmatpush.msrb.mxu3 %v5191_v20 }
 0xd88   : > { %5254 = vmatpush.msra.mxu0 %v5253_v38  ;;  %v5134_v38 = vstv %s5132_s22  ;;  %s787_s22 = scalar_lea.vmem [#allocation20], %s5848_s20 }
 0xd89   : > { %5386 = vmatpush.msrb.mxu3 %v5197_v37  ;;  %v6492_v37 = vld [vmem:[#allocation15] ss:$0 sm:$0xff]  ;;  %s5670_s2 = sshll.u32 %s787_s22, 4  ;;  %s5671_s2 = int_to_ptr.vmem [resolvable:$true] %s5670_s2 }
 0xd8a   : > { %5260 = vmatpush.msra.mxu0 %v5259_v36 }
 0xd8b   : > { %5390 = vmatpush.msrb.mxu3 %v5203_v23  ;;  %v6493_v23 = vld [vmem:[#allocation17] ss:$0 sm:$0xff] }
 0xd8c   : > { %5266 = vmatpush.msra.mxu0 %v5265_v24 }
 0xd8d   : > { %5394 = vmatpush.msrb.mxu3 %v5209_v32 }
 0xd8e   : > { %5272 = vmatpush.msra.mxu0 %v5271_v27 }
 0xd8f   : > { %5398 = vmatpush.msrb.mxu3 %v5215_v31 }
 0xd90   : > { %5441 = vmatpush.msrb.mxu0 %v7874_v57 }
 0xd91   : > { %5402 = vmatpush.msrb.mxu3 %v5221_v16 }
 0xd92   : > { %5443 = vmatpush.msrb.mxu0 %v7882_v0 }
 0xd93   : > { %5406 = vmatpush.msrb.mxu3 %v5227_v17 }
 0xd94   : > { %5445 = vmatpush.msrb.mxu0 %v7893_v22 }
 0xd95   : > { %5410 = vmatpush.msrb.mxu3 %v5233_v6 }
 0xd96   : > { %5447 = vmatpush.msrb.mxu0 %v7908_v4 }
 0xd97   : > { %5414 = vmatpush.msrb.mxu3 %v5239_v61 }
 0xd98   : > { %5449 = vmatpush.msrb.mxu0 %v7925_v2 }
 0xd99   : > { %5418 = vmatpush.msrb.mxu3 %v5245_v56 }
 0xd9a   : > { %5451 = vmatpush.msrb.mxu0 %v7935_v40 }
 0xd9b   : > { %5422 = vmatpush.msrb.mxu3 %v5251_v55 }
 0xd9c   : > { %5453 = vmatpush.msrb.mxu0 %v7952_v35 }
 0xd9d   : > { %5426 = vmatpush.msrb.mxu3 %v5257_v13 }
 0xd9e   : > { %5455 = vmatpush.msrb.mxu0 %v7964_v30 }
 0xd9f   : > { %5430 = vmatpush.msrb.mxu3 %v5263_v39 }
 0xda0   : > { %5457 = vmatpush.msrb.mxu0 %v7982_v43 }
 0xda1   : > { %5434 = vmatpush.msrb.mxu3 %v5269_v1 }
 0xda2   : > { %5459 = vmatpush.msrb.mxu0 %v7998_v45 }
 0xda4   : > { %5461 = vmatpush.msrb.mxu0 %v8008_v42 }
 0xda6   : > { %5463 = vmatpush.msrb.mxu0 %v8025_v15 }
 0xda8   : > { %5465 = vmatpush.msrb.mxu0 %v8038_v14 }
 0xdaa   : > { %5467 = vmatpush.msrb.mxu0 %v8056_v11 }
 0xdac   : > { %5469 = vmatpush.msrb.mxu0 %v8073_v53  ;;  %v5480_v53 = vld [vmem:[%s8236_s19] sm:$0xff] }
 0xdad   : > { %v5500_v13 = vand.u32 4294901760, %v5480_v53 }
 0xdae   : > { %5471 = vmatpush.msrb.mxu0 %v8083_v5 }
 0xdaf   : > { %v5527_v5 = vsub.f32 %v5480_v53, %v5500_v13  ;;  %5501 = vmatpush.msrb.mxu1 %v5500_v13 }
 0xdb1   : > { %v5528_v41 = vand.u32 4294901760, %v5527_v5 }
 0xdb3   : > { %5603 = vmatpush.msrb.mxu2 %v5528_v41  ;;  %v5529_v50 = vsub.f32 %v5527_v5, %v5528_v41 }
 0xde7   : > { %v5060_v46 = vpop.xlane.xlu1 %5059 }
 0xde8   : > { %v5063_v28 = vmul.f32 %v5060_v46, %v7542_v52  ;;  %v5133_v46 = vld [vmem:[%s8234_s17] sm:$0x1] }
 0xde9   : > { %v5135_v34 = vmul.f32 %v5134_v38, %v5133_v46 }
 0xdea   : > { %v5065_v47 = vadd.f32 1e-05, %v5063_v28  ;;  %v5530_v28 = vand.u32 4294901760, %v5529_v50 }
 0xdec   : > { %6596 = vrsqrt.f32 %v5065_v47  ;;  %vm5073_vm2 = vweird.f32 %v5065_v47 }
 0xdef   : > { %v5062_v63 = vpop.xlane.xlu2 %5061 }
 0xdf0   : > { %v5064_v25 = vmul.f32 %v5062_v63, %v7542_v52 }
 0xdf2   : > { %v6597_v29 = vpop.eup %6596  ;;  %v5066_v44 = vadd.f32 1e-05, %v5064_v25 }
 0xdf3   : > { %v5068_v33 = vmul.f32 %v6597_v29, %v5065_v47  ;;  %vm5074_vm15 = vweird.f32 %v6597_v29 }
 0xdf4   : > { %6598 = vrsqrt.f32 %v5066_v44  ;;  %vm5075_vm0 = vmor %vm5073_vm2, %vm5074_vm15  ;;  %vm5083_vm4 = vweird.f32 %v5066_v44 }
 0xdf5   : > { %v5069_v62 = vmul.f32 %v6597_v29, %v5068_v33  ;;  %6600 = vrcp.f32 %v6971_v10 }
 0xdf7   : > { %v5070_v52 = vmul.f32 0.5, %v5069_v62 }
 0xdf9   : > { %v5071_v57 = vsub.f32 1.5, %v5070_v52 }
 0xdfa   : > { %v6599_v0 = vpop.eup %6598 }
 0xdfb   : > { %v5072_v20 = vmul.f32 %v6597_v29, %v5071_v57  ;;  %v5078_v22 = vmul.f32 %v6599_v0, %v5066_v44  ;;  %vm5084_vm3 = vweird.f32 %v6599_v0  ;;  %v6601_v9 = vpop.eup %6600  ;;  %v5477_v44 = vld [vmem:[#allocation18] sm:$0x1] }
 0xdfc   : > { %vm5085_vm5 = vmor %vm5083_vm4, %vm5084_vm3  ;;  %v5109_v43 = vmul.f32 16.0, %v6601_v9  ;;  %vm5113_vm6 = vweird.f32 %v6601_v9 }
 0xdfd   : > { %v5076_v4 = vsel %vm5075_vm0, %v6597_v29, %v5072_v20  ;;  %v5079_v18 = vmul.f32 %v6599_v0, %v5078_v22 }
 0xdfe   : > { %v5087_v40 = vmul.f32 %v5076_v4, %v7862_v12 }
 0xdff   : > { %v5080_v2 = vmul.f32 0.5, %v5079_v18 }
 0xe00   : > { %v5092_v32 = vmul.f32 %v6492_v37, %v5087_v40  ;;  %v5481_v40 = vld [vmem:[%s8282_s30] sm:$0x1] }
 0xe01   : > { %v5081_v49 = vsub.f32 1.5, %v5080_v2 }
 0xe02   : > { %v5097_v31 = vadd.f32 %v6493_v23, %v5092_v32 }
 0xe03   : > { %v5082_v35 = vmul.f32 %v6599_v0, %v5081_v49 }
 0xe04   : > { %v8162_v21 = vadd.f32 %v5097_v31, %v7565_v7 }
 0xe05   : > { %v5086_v12 = vsel %vm5085_vm5, %v6599_v0, %v5082_v35 }
 0xe06   : > { %v5088_v30 = vmul.f32 %v5086_v12, %v7867_v48  ;;  %v5110_v48 = vsub.f32 1.0, %v5109_v43 }
 0xe08   : > { %v5093_v58 = vmul.f32 %v6492_v37, %v5088_v30  ;;  %v5111_v26 = vmul.f32 %v6601_v9, %v5110_v48 }
 0xe0a   : > { %v5098_v16 = vadd.f32 %v6493_v23, %v5093_v58  ;;  %v5112_v6 = vadd.f32 %v6601_v9, %v5111_v26 }
 0xe0c   : > { %v8165_v45 = vadd.f32 %v5098_v16, %v7568_v8  ;;  %v5114_v19 = vsel %vm5113_vm6, %v6601_v9, %v5112_v6 }
 0xe0e   : > { %v5101_v17 = vadd.f32 %v8165_v45, %v8162_v21 }
 0xe10   : > { %v5102_v42 = vrot.slane %v5101_v17, 4 }
 0xe12   : > { %v5103_v3 = vadd.f32 %v5102_v42, %v5101_v17 }
 0xe14   : > { %v5104_v15 = vrot.slane %v5103_v3, 2 }
 0xe16   : > { %v5105_v61 = vadd.f32 %v5104_v15, %v5103_v3 }
 0xe18   : > { %v5106_v7 = vrot.slane %v5105_v61, 1 }
 0xe1a   : > { %v5107_v14 = vadd.f32 %v5106_v7, %v5105_v61 }
 0xe1c   : > { %v5115_v8 = vmul.f32 %v5114_v19, %v5107_v14 }
 0xe1e   : > { %v5168_v56 = vand.u32 4294901760, %v5115_v8 }
 0xe20   : > { %5274 = vmatmul.f32.vlgmr.msra.gmra.mxu0 %v5168_v56  ;;  %v5169_v60 = vsub.f32 %v5115_v8, %v5168_v56 }
 0xe22   : > { %5328 = vmatmul.f32.vlgmr.msra.gmra.mxu1 %v5169_v60  ;;  %v5170_v11 = vand.u32 4294901760, %v5169_v60 }
 0xe23   : > { %5531 = vmatpush.msra.mxu1 %v5530_v28 }
 0xe24   : > { %5367 = vmatmul.f32.vlgmr.msra.gmra.mxu2 %v5170_v11  ;;  %v5171_v55 = vsub.f32 %v5169_v60, %v5170_v11 }
 0xe26   : > { %v5172_v59 = vand.u32 4294901760, %v5171_v55 }
 0xe28   : > { %5173 = vmatmul.f32.vlgmr.msra.gmra.mxu3 %v5172_v59  ;;  %5473 = vmatmul.f32.vlgmr.msrb.gmra.mxu0 %v5168_v56 }
 0xe29   : > { %5625 = vmatpush.msra.mxu3 %v5500_v13 }
 0xe30   : > { %5436 = vmatmul.f32.vlgmr.msrb.gmra.mxu3 %v5168_v56 }
 0xe9d   : > { %v5275_v39 = vpop.f32.mrf.mxu0 }
 0xe9f   : > { %v5329_v51 = vpop.f32.mrf.mxu1 }
 0xea5   : > { %v5474_v29 = vpop.f32.mrf.mxu0 }
 0xea7   : > { %v5368_v24 = vpop.f32.mrf.mxu2 }
 0xeab   : > { %v5174_v36 = vpop.f32.mrf.mxu3 }
 0xeac   : > { %v5175_v1 = vadd.f32 %v5174_v36, %v5135_v34 }
 0xeae   : > { %v5276_v47 = vadd.f32 %v5275_v39, %v5175_v1 }
 0xeb0   : > { %v5330_v54 = vadd.f32 %v5329_v51, %v5276_v47 }
 0xeb2   : > { %v5369_v27 = vadd.f32 %v5368_v24, %v5330_v54 }
 0xeb3   : > { %v5437_v63 = vpop.f32.mrf.mxu3 }
 0xeb4   : > { %v5438_v25 = vadd.f32 %v5437_v63, %v5369_v27 }
 0xeb6   : > { %v5475_v33 = vadd.f32 %v5474_v29, %v5438_v25 }
 0xeb8   : > { %v5478_v62 = vadd.f32 %v5477_v44, %v5475_v33 }
 0xeba   : > { %v5479_v52 = vmax.f32 %v5478_v62, 0.0 }
 0xebc   : > { %v5483_v57 = vsel %vm1382_vm1, %v5479_v52, 0 }
 0xebd   : > { %v5502_v0 = vand.u32 4294901760, %v5483_v57 }
 0xebf   : > { %v5503_v20 = vsub.f32 %v5483_v57, %v5502_v0  ;;  %5605 = vmatmul.f32.vlgmr.msrb.gmra.mxu2 %v5502_v0  ;;  %5627 = vmatmul.f32.vlgmr.msra.gmra.mxu3 %v5502_v0 }
 0xec1   : > { %v5504_v22 = vand.u32 4294901760, %v5503_v20 }
 0xec3   : > { %v5505_v4 = vsub.f32 %v5503_v20, %v5504_v22 }
 0xec5   : > { %v5506_v18 = vand.u32 4294901760, %v5505_v4 }
 0xec7   : > { %5507 = vmatmul.f32.vlgmr.msrb.gmra.mxu1 %v5506_v18 }
 0xec8   : > { %5554 = vmatpush.msrb.mxu1 %v5527_v5 }
 0xecf   : > { %5533 = vmatmul.f32.vlgmr.msra.gmra.mxu1 %v5502_v0 }
 0xed0   : > { %5577 = vmatpush.msra.mxu1 %v5500_v13 }
 0xed7   : > { %5557 = vmatmul.f32.vlgmr.msrb.gmra.mxu1 %v5503_v20 }
 0xedf   : > { %5581 = vmatmul.f32.vlgmr.msra.gmra.mxu1 %v5504_v22 }
 0xf42   : > { %v5606_v9 = vpop.f32.mrf.mxu2  ;;  %v5628_v31 = vpop.f32.mrf.mxu3 }
 0xf44   : > { %v5508_v2 = vpop.f32.mrf.mxu1 }
 0xf45   : > { %v5509_v49 = vadd.f32 %v5508_v2, %v5481_v40 }
 0xf4c   : > { %v5534_v37 = vpop.f32.mrf.mxu1 }
 0xf4d   : > { %v5535_v35 = vadd.f32 %v5534_v37, %v5509_v49 }
 0xf54   : > { %v5558_v10 = vpop.f32.mrf.mxu1 }
 0xf55   : > { %v5559_v23 = vadd.f32 %v5558_v10, %v5535_v35 }
 0xf5c   : > { %v5582_v32 = vpop.f32.mrf.mxu1 }
 0xf5d   : > { %v5583_v12 = vadd.f32 %v5582_v32, %v5559_v23 }
 0xf5f   : > { %v5607_v30 = vadd.f32 %v5606_v9, %v5583_v12 }
 0xf61   : > { %v5629_v58 = vadd.f32 %v5628_v31, %v5607_v30 }
 0xf63   : > { %v5631_v43 = vsub.f32 0.0, %v5629_v58 }
 0xf65   : > { %v5632_v16 = vmul.f32 1.442695, %v5631_v43 }
 0xf67   : > { %6602 = vpow2.f32 %v5632_v16 }
 0xf6d   : > { %v6603_v48 = vpop.eup %6602 }
 0xf6e   : > { %v5634_v17 = vadd.f32 1.0, %v6603_v48 }
 0xf70   : > { %6604 = vrcp.f32 %v5634_v17  ;;  %v5646_v15 = vand.u32 2147483648, %v5634_v17  ;;  %v5644_v61 = vand.u32 2147483647, %v5634_v17  ;;  %vm5640_vm7 = vweird.f32 %v5634_v17 }
 0xf72   : > { %v5647_v19 = vor.u32 1.1754944e-38, %v5646_v15  ;;  %vm5645_vm9 = vcmp.eq.f32.partialorder %v5644_v61, 8.507059e+37 }
 0xf76   : > { %v6605_v42 = vpop.eup %6604 }
 0xf77   : > { %v5636_v26 = vmul.f32 %v6605_v42, %v5634_v17  ;;  %vm5641_vm1 = vweird.f32 %v6605_v42 }
 0xf78   : > { %vm5642_vm8 = vmor %vm5640_vm7, %vm5641_vm1 }
 0xf79   : > { %v5637_v3 = vsub.f32 1.0, %v5636_v26 }
 0xf7b   : > { %v5638_v6 = vmul.f32 %v6605_v42, %v5637_v3 }
 0xf7d   : > { %v5639_v7 = vadd.f32 %v6605_v42, %v5638_v6 }
 0xf7f   : > { %v5643_v14 = vsel %vm5642_vm8, %v6605_v42, %v5639_v7 }
 0xf80   : > { %v5648_v8 = vsel %vm5645_vm9, %v5647_v19, %v5643_v14 }
 0xf81   : > { %v5650_v56 = vperm.slane %v5648_v8, 0 }
 0xf83   : > { %v5651_v60 = vmul.f32 %v5650_v56, %v8162_v21  ;;  %v5652_v11 = vmul.f32 %v5650_v56, %v8165_v45 }
 0xf85   : > { %v5653_v55 = vadd.f32 %v5651_v60, %v8162_v21  ;;  %v5654_v59 = vadd.f32 %v5652_v11, %v8165_v45 }
 0xf87   : > { %5655 = vst [vmem:[%s787_s22] sm:$0xff] %v5653_v55 }
 0xf88   : > { %5656 = vst [vmem:[%s787_s22 + $0x8] sm:$0xff] %v5654_v59 }
 0xf89   : > { %6890 = shalt.err (!%p6887_p8)
}
 0xf8a   : > { %s6972_s28 = smov 128   ;;  %s6973_s21 = smov 8  }
 0xf8b   : > { %6380 = dma.vmem_to_hbm [thread:$0]  (%p7125_p5), %s5671_s2, 256, %s5673_s24, %s5658_s0, %s6972_s28, %s6972_s28, %s6973_s21  }
 0xf8c PF: > { %s8286_s1 = sld [smem:[#allocation31_spill]] }
 0xf8d   : > { %s8287_s23 = sld [smem:[#allocation28_spill]] }
 0xf92   : > { %p6432_p9 = scmp.ge.s32.totalorder %s8286_s1, 2 }
 0xf93   : > { %s5687_s29 = sand.u32 1, %s8287_s23  }
 0xf94   : > { %p6411_p10 = pnand %p6432_p9, %p7129_p6  ;;  %s5688_s30 = scalar_lea.sflag [#allocation6], %s5687_s29 }
 0xf96   : > { %p6412_p11 = pneg %p6411_p10 }
 0xf98   : > { %6932 = dma.done.wait (%p6412_p11), %s5688_s30, 256  }
 0xf99   : > { %6934 = vsyncadd (%p6412_p11), %s5688_s30, 4294967040  ;;  %s8289_s29 = sld [smem:[#allocation32_spill]] }
 0xf9a   : > { %s8290_s27 = sld [smem:[#allocation29_spill]] }
 0xf9b   : > { %s8291_s3 = sld [smem:[#allocation30_spill]] }
 0xf9c   : > { %s8292_s28 = sld [smem:[#allocation33_spill]] }
 0xf9f   : > { %p38_p12 = scmp.ge.s32.totalorder %s8289_s29, 4  }
 0xfa1   :  { %40 = sbr.rel (!%p38_p12) target bundleno = 26 (0x1a), region = 180 }
 0xfa6   :  { %5694 = vsyncpa [#allocation5], 1 }
 0xfa7   :  { %5696 = vsyncpa [#allocation5 + $0x1], 1 }
 0xfa8   :  { %5697 = vsyncpa [#allocation10], 1 }
 0xfa9   :  { %5698 = vsyncpa [#allocation13], 1 }
 0xfaa   :  { %5699 = vsyncpa [#allocation16], 1 }
 0xfab   :  { %5700 = vsyncpa [#allocation19], 1 }
 0xfac   :  { %5701 = vsyncpa [#allocation6], 1 }
 0xfad   :  { %5703 = vsyncpa [#allocation6 + $0x1], 1 }
 0xfae   :  { %5704 = vsyncpa [#allocation7], 1 }
 0xfaf   :  { %5706 = vsyncpa [#allocation7 + $0x1], 1 }

</bundles_post_ra>
